<compile_context>
chip_gen: v6e
topology: v6e:2x2x1
jax: 0.10.0
libtpu: 0.0.40
codegen_flags: <defaults>
</compile_context>

<pallas_src>
import functools
import jax
import jax.numpy as jnp
from jax import lax
from jax.experimental import pallas as pl
from jax.experimental.pallas import tpu as pltpu

NUM_HEADS = 4


# --------------------------------------------------------------------------
# Chip-generation-aware kernel configuration.
# --------------------------------------------------------------------------
@functools.lru_cache(maxsize=1)
def _chip_config():
    kind = ""
    try:
        kind = jax.devices()[0].device_kind.lower()
    except Exception:
        pass
    is_v5 = "v5" in kind
    is_v7 = ("v7" in kind) or ("7x" in kind)
    return {
        # v6e/v7x have bf16 VALUs -> run the bias/ReLU/max epilogue in bf16
        # (halves vreg footprint + ld/st bytes); v5e has no bf16 VPU -> f32.
        "bf16_epilogue": not is_v5,
        # v7x has 2 TensorCores/chip: keep >=2 (even) grid steps so the
        # "parallel" grid axis can split across cores; single-step grids are
        # fine (and cheaper) on single-TC v5e/v6e.
        "need_even_split": is_v7,
        # Groups per grid step (perf review: 64-128, not 256).
        "max_tile": 128,
        # v7x VMEM is 64 MiB/TC -> leave headroom; v5e/v6e have 128 MiB.
        "vmem_limit": (32 if is_v7 else 48) * 1024 * 1024,
    }


# --------------------------------------------------------------------------
# Pallas kernel: fused (1x1-conv stack == matmul) + ReLU + per-group max.
# --------------------------------------------------------------------------
def _sa_mlp_max_kernel(x_ref, w1_ref, b1_ref, w2_ref, b2_ref, w3_ref, b3_ref,
                       o_ref, *, nsample, bf16_epilogue):
    # x_ref: [tile*nsample, Cin] bf16 (pre-flattened -> no in-kernel reshape
    # of the input tile). Weights bf16; MXU dots accumulate in f32.
    # Epilogue (bias add / ReLU / group max) in bf16 on v6e/v7x, f32 on v5e.
    act_dt = jnp.bfloat16 if bf16_epilogue else jnp.float32
    h = jnp.dot(x_ref[...], w1_ref[...], preferred_element_type=jnp.float32)
    h = jnp.maximum(h.astype(act_dt) + b1_ref[...], 0.0)
    h = jnp.dot(h.astype(jnp.bfloat16), w2_ref[...],
                preferred_element_type=jnp.float32)
    h = jnp.maximum(h.astype(act_dt) + b2_ref[...], 0.0)
    h = jnp.dot(h.astype(jnp.bfloat16), w3_ref[...],
                preferred_element_type=jnp.float32)
    h = jnp.maximum(h.astype(act_dt) + b3_ref[...], 0.0)
    rows, c3 = h.shape
    # (rows, c3) -> (rows//ns, ns, c3): last (lane) dim preserved (>=128),
    # split dim a multiple of 8 -> cheap; then the per-group max over nsample.
    o_ref[...] = jnp.max(h.reshape(rows // nsample, nsample, c3),
                         axis=1).astype(o_ref.dtype)


def _pick_tile(r, cfg):
    """Groups per grid step."""
    if r <= 8:
        return r
    t = min(cfg["max_tile"], r)
    if cfg["need_even_split"]:
        # >=2 (even) grid steps so both v7x TensorCores get equal work.
        t = min(t, max(8, r // 2))
    return max(8, (t // 8) * 8)


def sa_pointwise_mlp_max(grouped, layers):
    """grouped: [R, nsample, Cin] f32 -> [R, C_out] f32.

    Fused shared-MLP (three 1x1 convs + ReLU) and max-pool over nsample.
    """
    cfg = _chip_config()
    r, ns, cin = grouped.shape
    (w1, b1), (w2, b2), (w3, b3) = layers
    c1, c2, c3 = w1.shape[1], w2.shape[1], w3.shape[1]

    # Lane-dense output store: pad the last MLP's output channels up to 128
    # (only hits SA1 where c3 == 64); slice the extra lanes off afterwards.
    c3p = max(128, ((c3 + 127) // 128) * 128)
    if c3p != c3:
        w3 = jnp.pad(w3, ((0, 0), (0, c3p - c3)))
        b3 = jnp.pad(b3, (0, c3p - c3))

    tile = _pick_tile(r, cfg)
    r_pad = pl.cdiv(r, tile) * tile

    flat = grouped.reshape(r * ns, cin)
    if r_pad != r:  # tail handling for non-divisible group counts
        flat = jnp.pad(flat, ((0, (r_pad - r) * ns), (0, 0)))
    flat = flat.astype(jnp.bfloat16)
    # TODO(synk): a channel-major [Cin, R*ns] input layout would make this
    #             block lane-dense in VMEM (no 12->128 lane padding); needs a
    #             transposed dot_general contraction, not done here.

    bias_dt = jnp.bfloat16 if cfg["bf16_epilogue"] else jnp.float32
    w1b, w2b, w3b = (w.astype(jnp.bfloat16) for w in (w1, w2, w3))
    b1f, b2f, b3f = (b.reshape(1, -1).astype(bias_dt) for b in (b1, b2, b3))

    out = pl.pallas_call(
        functools.partial(_sa_mlp_max_kernel, nsample=ns,
                          bf16_epilogue=cfg["bf16_epilogue"]),
        out_shape=jax.ShapeDtypeStruct((r_pad, c3p), jnp.float32),
        grid=(r_pad // tile,),
        in_specs=[
            pl.BlockSpec((tile * ns, cin), lambda i: (i, 0)),
            pl.BlockSpec((cin, c1), lambda i: (0, 0)),
            pl.BlockSpec((1, c1), lambda i: (0, 0)),
            pl.BlockSpec((c1, c2), lambda i: (0, 0)),
            pl.BlockSpec((1, c2), lambda i: (0, 0)),
            pl.BlockSpec((c2, c3p), lambda i: (0, 0)),
            pl.BlockSpec((1, c3p), lambda i: (0, 0)),
        ],
        out_specs=pl.BlockSpec((tile, c3p), lambda i: (i, 0)),
        compiler_params=pltpu.CompilerParams(
            dimension_semantics=("parallel",),
            vmem_limit_bytes=cfg["vmem_limit"]),
    )(flat, w1b, b1f, w2b, b2f, w3b, b3f)
    return out[:r, :c3]


def sa_pointwise_mlp_max_ref(grouped, layers):
    """Pure-f32 JAX reference of the fused SA-MLP + max (for tolerance test)."""
    h = grouped
    for w, b in layers:
        h = jnp.maximum(
            jnp.einsum("rnc,cd->rnd", h, w,
                       preferred_element_type=jnp.float32) + b, 0.0)
    return jnp.max(h, axis=1)


# --------------------------------------------------------------------------
# Tiny dense layers (2-8 rows): plain XLA beats a Pallas launch here.
# --------------------------------------------------------------------------
def dense(x, w, b, act="none"):
    h = jnp.dot(x, w, preferred_element_type=jnp.float32) + b
    if act == "relu":
        h = jnp.maximum(h, 0.0)
    elif act == "sigmoid":
        h = jax.nn.sigmoid(h)
    return h


# --------------------------------------------------------------------------
# Plain-JAX glue: _ply2data, FPS, ball query, grouping, attention
# --------------------------------------------------------------------------
def ply2data(neigh, voxel_length):
    """[B, 3, W, D, H] voxel grid -> [B, W*D*H, 9] S3DIS-style pointcloud."""
    b = neigh.shape[0]
    w, d, h = neigh.shape[2], neigh.shape[3], neigh.shape[4]
    n = w * d * h
    ww, dd, hh = jnp.meshgrid(jnp.arange(w), jnp.arange(d), jnp.arange(h),
                              indexing="ij")
    pos1 = jnp.stack([ww, dd, hh], axis=-1).reshape(n, 3).astype(jnp.float32)
    pos1 = pos1 * voxel_length
    center = jnp.sum(pos1, axis=0) / n
    # The torch strided-view trick is a numerical no-op (pos identical across
    # the batch); broadcast directly.
    dec = jnp.broadcast_to(pos1 - center, (b, n, 3))
    pmin = jnp.min(pos1, axis=0)
    pmax = jnp.max(pos1, axis=0)
    norm = jnp.broadcast_to((pos1 - pmin) / (pmax - pmin), (b, n, 3))

    occ = neigh[:, 0].reshape(-1) != 0
    permit = neigh[:, 1].reshape(-1) != 0
    vis_val = neigh[:, 2].reshape(-1)
    vis = vis_val > 0
    gray = jnp.array([128.0, 128.0, 128.0], jnp.float32)
    yellow = jnp.array([255.0, 255.0, 0.0], jnp.float32)
    green = jnp.array([0.0, 255.0, 0.0], jnp.float32)
    color = jnp.zeros((b * n, 3), jnp.float32)
    color = jnp.where(occ[:, None], gray, color)
    color = jnp.where(permit[:, None], yellow, color)
    color = jnp.where(vis[:, None], vis_val[:, None] * green, color)
    ncolor = color.reshape(b, n, 3) / 255.0
    return jnp.concatenate([dec, norm, ncolor], axis=-1)


def index_points(points, idx):
    """points: [B, N, C], idx: [B, ...] -> [B, ..., C]."""
    return jax.vmap(lambda p, i: p[i])(points, idx)


def farthest_point_sample(xyz, npoint):
    # TODO(synk): inherently serial (npoint iterations); left in plain JAX.
    b, n, _ = xyz.shape

    def body(i, carry):
        centroids, distance, farthest = carry
        centroids = centroids.at[:, i].set(farthest)
        centroid = jnp.take_along_axis(xyz, farthest[:, None, None], axis=1)
        dist = jnp.sum((xyz - centroid) ** 2, axis=-1)
        distance = jnp.minimum(distance, dist)
        farthest = jnp.argmax(distance, axis=-1).astype(jnp.int32)
        return centroids, distance, farthest

    init = (jnp.zeros((b, npoint), jnp.int32),
            jnp.full((b, n), 1e10, jnp.float32),
            jnp.zeros((b,), jnp.int32))  # deterministic seed point
    centroids, _, _ = lax.fori_loop(0, npoint, body, init)
    return centroids


def query_ball_point(radius, nsample, xyz, new_xyz):
    b, s, _ = new_xyz.shape
    n = xyz.shape[1]
    sqr = jnp.sum((new_xyz[:, :, None, :] - xyz[:, None, :, :]) ** 2, axis=-1)
    group_idx = jnp.broadcast_to(jnp.arange(n, dtype=jnp.int32), (b, s, n))
    group_idx = jnp.where(sqr > radius * radius, n, group_idx)
    # smallest `nsample` indices within radius, ascending (== sort[..., :ns])
    neg_top, _ = lax.top_k(-group_idx, nsample)
    group_idx = -neg_top
    group_first = group_idx[:, :, 0:1]
    group_idx = jnp.where(group_idx == n, group_first, group_idx)
    return group_idx.astype(jnp.int32)


def set_abstraction(coords, feats, npoint, radius, nsample, layers):
    b = coords.shape[0]
    fps_idx = farthest_point_sample(coords, npoint)
    new_xyz = index_points(coords, fps_idx)                       # [B, np, 3]
    idx = query_ball_point(radius, nsample, coords, new_xyz)       # [B, np, ns]
    grouped_xyz = index_points(coords, idx) - new_xyz[:, :, None, :]
    grouped_feats = index_points(feats, idx)
    new_points = jnp.concatenate([grouped_xyz, grouped_feats], axis=-1)
    r = b * npoint
    out = sa_pointwise_mlp_max(
        new_points.reshape(r, nsample, new_points.shape[-1]), layers)
    return new_xyz, out.reshape(b, npoint, -1)


def multihead_attention(query, key_value, attn_params, num_heads):
    """query: [B, E]; key_value: [S, B, E] (seq-first, torch MHA convention)."""
    b, e = query.shape
    s = key_value.shape[0]
    hd = e // num_heads
    q = dense(query, *attn_params["wq"])
    k = dense(key_value.reshape(s * b, e), *attn_params["wk"]).reshape(s, b, e)
    v = dense(key_value.reshape(s * b, e), *attn_params["wv"]).reshape(s, b, e)
    qh = q.reshape(b, num_heads, hd)
    kh = k.reshape(s, b, num_heads, hd)
    vh = v.reshape(s, b, num_heads, hd)
    scores = jnp.einsum("bhd,sbhd->bhs", qh, kh) / jnp.sqrt(jnp.float32(hd))
    attn = jax.nn.softmax(scores, axis=-1)
    ctx = jnp.einsum("bhs,sbhd->bhd", attn, vh).reshape(b, e)
    return dense(ctx, *attn_params["wo"])


# --------------------------------------------------------------------------
# Parameters (deterministic synthetic init; shapes follow the torch module)
# --------------------------------------------------------------------------
def make_params(key, hidden, cam_types, neigh_out_dim):
    param_dim = 5 + cam_types
    action_dim = 10 + cam_types
    keys = iter(jax.random.split(key, 48))

    def lin(din, dout):
        kw, kb = next(keys), next(keys)
        w = jax.random.normal(kw, (din, dout), jnp.float32) / jnp.sqrt(
            jnp.float32(din))
        bvec = 0.01 * jax.random.normal(kb, (dout,), jnp.float32)
        return w, bvec

    params = {
        "param_encoder": lin(param_dim, hidden),
        "comm_encoder": lin(param_dim, hidden),
        "comm_attn": {
            "wq": lin(hidden, hidden),
            "wk": lin(hidden, hidden),
            "wv": lin(hidden, hidden),
            "wo": lin(hidden, hidden),
        },
    }
    sa_channels = [(9 + 3, [32, 32, 64]),
                   (64 + 3, [64, 64, 128]),
                   (128 + 3, [128, 128, 256]),
                   (256 + 3, [256, 256, 512])]
    backbone = []
    for cin, mlp in sa_channels:
        layers, c = [], cin
        for cout in mlp:
            layers.append(lin(c, cout))
            c = cout
        backbone.append(tuple(layers))
    params["backbone"] = backbone
    params["neigh_merge"] = [lin(64 + 256 + 512, hidden),
                             lin(hidden, neigh_out_dim)]
    params["action_encoder"] = lin(action_dim, hidden)
    params["out"] = [lin(3 * hidden + neigh_out_dim, hidden), lin(hidden, 1)]
    return params


# --------------------------------------------------------------------------
# Full forward
# --------------------------------------------------------------------------
def pointnet2_approx_forward(params, self_and_neigh_params, self_mask, neigh,
                             actions, voxel_length, min_radius=0.1):
    b, a, param_dim = self_and_neigh_params.shape

    # Boolean-mask indexing (exactly one True per row) as stable gathers.
    order = jnp.argsort(self_mask.astype(jnp.int32), axis=1, stable=True)
    neigh_idx = order[:, : a - 1]
    self_idx = order[:, a - 1]
    self_params = index_points(self_and_neigh_params, self_idx)      # [B, P]
    neigh_params = index_points(self_and_neigh_params, neigh_idx)    # [B, A-1, P]

    self_embedding = dense(self_params, *params["param_encoder"], act="relu")
    neigh_emb = dense(neigh_params.reshape(b * (a - 1), param_dim),
                      *params["comm_encoder"]).reshape(b, a - 1, -1)
    neigh_seq = jnp.transpose(neigh_emb, (1, 0, 2))                   # [S, B, H]
    attn_out = multihead_attention(self_embedding, neigh_seq,
                                   params["comm_attn"], NUM_HEADS)
    comm_feats = attn_out + self_embedding

    input_data = ply2data(neigh, voxel_length)
    coords = input_data[:, :, :3]
    feats = input_data
    data_list = [feats]
    sa_cfg = [(1024, min_radius, 32), (256, 2 * min_radius, 32),
              (64, 4 * min_radius, 32), (16, 8 * min_radius, 32)]
    for (npoint, radius, ns), layers in zip(sa_cfg, params["backbone"]):
        coords, feats = set_abstraction(coords, feats, npoint, radius, ns,
                                        layers)
        data_list.append(feats)
    pool = [jnp.max(d, axis=1) for d in data_list[1:]]
    multi_res = jnp.concatenate([pool[0], pool[2], pool[3]], axis=1)  # 64+256+512

    (w1, b1), (w2, b2) = params["neigh_merge"]
    h = dense(multi_res, w1, b1, act="relu")
    neigh_feats = dense(h, w2, b2, act="relu")
    action_feats = dense(actions, *params["action_encoder"], act="relu")
    merged = jnp.concatenate(
        [self_embedding, comm_feats, neigh_feats, action_feats], axis=1)
    (w1, b1), (w2, b2) = params["out"]
    h = dense(merged, w1, b1, act="relu")
    prob = dense(h, w2, b2, act="sigmoid")
    return prob


# --------------------------------------------------------------------------
if __name__ == "__main__":
    B, AGENTS = 2, 5
    HIDDEN, CAM_TYPES, NEIGH_OUT = 32, 3, 64
    PARAM_DIM, ACTION_DIM = 5 + CAM_TYPES, 10 + CAM_TYPES
    L = 5
    G = 2 * L + 1                      # 11 -> 1331 points (>= 1024 for SA1)
    VOXEL_LENGTH = 0.05

    key = jax.random.PRNGKey(0)
    kp, k1, k2, k3, k4, k5 = jax.random.split(key, 6)
    params = make_params(kp, HIDDEN, CAM_TYPES, NEIGH_OUT)

    self_and_neigh = jax.random.normal(k1, (B, AGENTS, PARAM_DIM), jnp.float32)
    self_pos = jnp.array([1, 3], jnp.int32)
    self_mask = jnp.arange(AGENTS)[None, :] == self_pos[:, None]      # bool

    occ_permit = (jax.random.uniform(k2, (B, 3, G, G, G)) > 0.7).astype(
        jnp.float32)
    vis = jax.random.uniform(k3, (B, G, G, G))
    neigh_vox = occ_permit.at[:, 2].set(jnp.where(vis > 0.6, vis, -1.0))

    actions = jax.random.normal(k4, (B, ACTION_DIM), jnp.float32)

    # --- Pallas SA-MLP kernel vs pure-f32 JAX reference (bf16 MXU feed with
    # f32 accumulation -> ~1e-2 relative drift expected) -------------------
    g = jax.random.normal(k5, (64, 32, 12), jnp.float32)
    got = jax.block_until_ready(sa_pointwise_mlp_max(g, params["backbone"][0]))
    ref = sa_pointwise_mlp_max_ref(g, params["backbone"][0])
    rel = float(jnp.max(jnp.abs(got - ref)) / (jnp.max(jnp.abs(ref)) + 1e-6))
    assert rel < 0.1, f"SA-MLP kernel drift too large: {rel}"

    # --- full forward ------------------------------------------------------
    fwd = jax.jit(functools.partial(pointnet2_approx_forward,
                                    voxel_length=VOXEL_LENGTH))
    out = fwd(params, self_and_neigh, self_mask, neigh_vox, actions)
    out = jax.block_until_ready(out)
    assert out.shape == (B, 1)
    assert bool(jnp.all(jnp.isfinite(out)))
    print("KERNEL_OK")
</pallas_src>

<mosaic_0001>
module attributes {stable_mosaic.version = 11 : i64} {
  func.func @_sa_mlp_max_kernel(%arg0: i32, %arg1: memref<2048x12xbf16, #tpu.memory_space<vmem>>, %arg2: memref<12x32xbf16, #tpu.memory_space<vmem>>, %arg3: memref<1x32xbf16, #tpu.memory_space<vmem>>, %arg4: memref<32x32xbf16, #tpu.memory_space<vmem>>, %arg5: memref<1x32xbf16, #tpu.memory_space<vmem>>, %arg6: memref<32x128xbf16, #tpu.memory_space<vmem>>, %arg7: memref<1x128xbf16, #tpu.memory_space<vmem>>, %arg8: memref<64x128xf32, #tpu.memory_space<vmem>>) attributes {dimension_semantics = [#tpu.dimension_semantics<parallel>], iteration_bounds = array<i64: 1>, scalar_prefetch = 0 : i64, scratch_operands = 0 : i64, tpu.core_type = #tpu.core_type<tc>, window_params = [{transform_indices = @transform_0, window_bounds = array<i64: 2048, 12>}, {pipeline_mode = #tpu.pipeline_mode<synchronous>, transform_indices = @transform_1, window_bounds = array<i64: 12, 32>}, {pipeline_mode = #tpu.pipeline_mode<synchronous>, transform_indices = @transform_2, window_bounds = array<i64: 1, 32>}, {pipeline_mode = #tpu.pipeline_mode<synchronous>, transform_indices = @transform_3, window_bounds = array<i64: 32, 32>}, {pipeline_mode = #tpu.pipeline_mode<synchronous>, transform_indices = @transform_4, window_bounds = array<i64: 1, 32>}, {pipeline_mode = #tpu.pipeline_mode<synchronous>, transform_indices = @transform_5, window_bounds = array<i64: 32, 128>}, {pipeline_mode = #tpu.pipeline_mode<synchronous>, transform_indices = @transform_6, window_bounds = array<i64: 1, 128>}, {transform_indices = @transform_7, window_bounds = array<i64: 64, 128>}]} {
    %c0 = arith.constant 0 : index
    %c0_0 = arith.constant 0 : index
    %0 = vector.load %arg1[%c0, %c0_0] : memref<2048x12xbf16, #tpu.memory_space<vmem>>, vector<2048x12xbf16>
    %c0_1 = arith.constant 0 : index
    %c0_2 = arith.constant 0 : index
    %1 = vector.load %arg2[%c0_1, %c0_2] : memref<12x32xbf16, #tpu.memory_space<vmem>>, vector<12x32xbf16>
    %cst = arith.constant dense<0.000000e+00> : vector<2048x32xf32>
    %2 = tpu.matmul %0, %1, %cst {dimension_numbers = #tpu.dot_dimension_numbers<[1], [0], [0], [1], [0, 0, 1, 1], [], []>} : vector<2048x12xbf16>, vector<12x32xbf16>, vector<2048x32xf32> -> vector<2048x32xf32>
    %3 = arith.truncf %2 : vector<2048x32xf32> to vector<2048x32xbf16>
    %c0_3 = arith.constant 0 : index
    %c0_4 = arith.constant 0 : index
    %4 = vector.load %arg3[%c0_3, %c0_4] : memref<1x32xbf16, #tpu.memory_space<vmem>>, vector<1x32xbf16>
    %5 = vector.broadcast %4 : vector<1x32xbf16> to vector<2048x32xbf16>
    %6 = arith.addf %3, %5 : vector<2048x32xbf16>
    %cst_5 = arith.constant 0.000000e+00 : bf16
    %7 = vector.broadcast %cst_5 : bf16 to vector<2048x32xbf16>
    %8 = arith.maximumf %6, %7 : vector<2048x32xbf16>
    %c0_6 = arith.constant 0 : index
    %c0_7 = arith.constant 0 : index
    %9 = vector.load %arg4[%c0_6, %c0_7] : memref<32x32xbf16, #tpu.memory_space<vmem>>, vector<32x32xbf16>
    %cst_8 = arith.constant dense<0.000000e+00> : vector<2048x32xf32>
    %10 = tpu.matmul %8, %9, %cst_8 {dimension_numbers = #tpu.dot_dimension_numbers<[1], [0], [0], [1], [0, 0, 1, 1], [], []>} : vector<2048x32xbf16>, vector<32x32xbf16>, vector<2048x32xf32> -> vector<2048x32xf32>
    %11 = arith.truncf %10 : vector<2048x32xf32> to vector<2048x32xbf16>
    %c0_9 = arith.constant 0 : index
    %c0_10 = arith.constant 0 : index
    %12 = vector.load %arg5[%c0_9, %c0_10] : memref<1x32xbf16, #tpu.memory_space<vmem>>, vector<1x32xbf16>
    %13 = vector.broadcast %12 : vector<1x32xbf16> to vector<2048x32xbf16>
    %14 = arith.addf %11, %13 : vector<2048x32xbf16>
    %cst_11 = arith.constant 0.000000e+00 : bf16
    %15 = vector.broadcast %cst_11 : bf16 to vector<2048x32xbf16>
    %16 = arith.maximumf %14, %15 : vector<2048x32xbf16>
    %c0_12 = arith.constant 0 : index
    %c0_13 = arith.constant 0 : index
    %17 = vector.load %arg6[%c0_12, %c0_13] : memref<32x128xbf16, #tpu.memory_space<vmem>>, vector<32x128xbf16>
    %cst_14 = arith.constant dense<0.000000e+00> : vector<2048x128xf32>
    %18 = tpu.matmul %16, %17, %cst_14 {dimension_numbers = #tpu.dot_dimension_numbers<[1], [0], [0], [1], [0, 0, 1, 1], [], []>} : vector<2048x32xbf16>, vector<32x128xbf16>, vector<2048x128xf32> -> vector<2048x128xf32>
    %19 = arith.truncf %18 : vector<2048x128xf32> to vector<2048x128xbf16>
    %c0_15 = arith.constant 0 : index
    %c0_16 = arith.constant 0 : index
    %20 = vector.load %arg7[%c0_15, %c0_16] : memref<1x128xbf16, #tpu.memory_space<vmem>>, vector<1x128xbf16>
    %21 = vector.broadcast %20 : vector<1x128xbf16> to vector<2048x128xbf16>
    %22 = arith.addf %19, %21 : vector<2048x128xbf16>
    %cst_17 = arith.constant 0.000000e+00 : bf16
    %23 = vector.broadcast %cst_17 : bf16 to vector<2048x128xbf16>
    %24 = arith.maximumf %22, %23 : vector<2048x128xbf16>
    %25 = vector.shape_cast %24 : vector<2048x128xbf16> to vector<64x32x128xbf16>
    %cst_18 = arith.constant dense<0xFF80> : vector<64x128xbf16>
    %26 = vector.multi_reduction <maximumf>, %25, %cst_18 [1] : vector<64x32x128xbf16> to vector<64x128xbf16>
    %27 = arith.extf %26 : vector<64x128xbf16> to vector<64x128xf32>
    %c0_19 = arith.constant 0 : index
    %c0_20 = arith.constant 0 : index
    %28 = vector.load %arg8[%c0_19, %c0_20] : memref<64x128xf32, #tpu.memory_space<vmem>>, vector<64x128xf32>
    tpu.vector_store %arg8[%c0_19, %c0_20], %27 {strides = array<i32>} : memref<64x128xf32, #tpu.memory_space<vmem>>, vector<64x128xf32>,
    return
  }
  func.func @transform_0(%arg0: i32) -> (i32, i32) {
    %c0_i32 = arith.constant 0 : i32
    %c0_i32_0 = arith.constant 0 : i32
    return %arg0, %c0_i32 : i32, i32
  }
  func.func @transform_1(%arg0: i32) -> (i32, i32) {
    %c0_i32 = arith.constant 0 : i32
    %c0_i32_0 = arith.constant 0 : i32
    %c0_i32_1 = arith.constant 0 : i32
    return %c0_i32, %c0_i32_0 : i32, i32
  }
  func.func @transform_2(%arg0: i32) -> (i32, i32) {
    %c0_i32 = arith.constant 0 : i32
    %c0_i32_0 = arith.constant 0 : i32
    %c0_i32_1 = arith.constant 0 : i32
    return %c0_i32, %c0_i32_0 : i32, i32
  }
  func.func @transform_3(%arg0: i32) -> (i32, i32) {
    %c0_i32 = arith.constant 0 : i32
    %c0_i32_0 = arith.constant 0 : i32
    %c0_i32_1 = arith.constant 0 : i32
    return %c0_i32, %c0_i32_0 : i32, i32
  }
  func.func @transform_4(%arg0: i32) -> (i32, i32) {
    %c0_i32 = arith.constant 0 : i32
    %c0_i32_0 = arith.constant 0 : i32
    %c0_i32_1 = arith.constant 0 : i32
    return %c0_i32, %c0_i32_0 : i32, i32
  }
  func.func @transform_5(%arg0: i32) -> (i32, i32) {
    %c0_i32 = arith.constant 0 : i32
    %c0_i32_0 = arith.constant 0 : i32
    %c0_i32_1 = arith.constant 0 : i32
    return %c0_i32, %c0_i32_0 : i32, i32
  }
  func.func @transform_6(%arg0: i32) -> (i32, i32) {
    %c0_i32 = arith.constant 0 : i32
    %c0_i32_0 = arith.constant 0 : i32
    %c0_i32_1 = arith.constant 0 : i32
    return %c0_i32, %c0_i32_0 : i32, i32
  }
  func.func @transform_7(%arg0: i32) -> (i32, i32) {
    %c0_i32 = arith.constant 0 : i32
    %c0_i32_0 = arith.constant 0 : i32
    return %arg0, %c0_i32 : i32, i32
  }
}

</mosaic_0001>

<bundles_post_ra>
// kernel: tpu_custom_call.1
= control target key start
LH: loop header
LB: loop body
LE: loop exit
PB: predicated region body
PF: predicated region fallthrough
CT: control target
= control target key end

     0   :  { %vm1316_vm0 = vcmask 1045504   ;;  %vm931_vm1 = vcmask 97280   ;;  %s12053_s0 = inlined_call_operand.vmem [shape: bf16[2048,12], index: 0, kind: input, shape index: {}]   ;;  %s12054_s1 = inlined_call_operand.vmem [shape: bf16[12,32], index: 1, kind: input, shape index: {}]   ;;  %s12055_s2 = inlined_call_operand.vmem [shape: bf16[1,32], index: 2, kind: input, shape index: {}]   ;;  %s12056_s3 = inlined_call_operand.vmem [shape: bf16[32,32], index: 3, kind: input, shape index: {}]   ;;  %s12057_s4 = inlined_call_operand.vmem [shape: bf16[1,32], index: 4, kind: input, shape index: {}]   ;;  %s12058_s5 = inlined_call_operand.vmem [shape: bf16[32,128], index: 5, kind: input, shape index: {}]   ;;  %s12059_s6 = inlined_call_operand.vmem [shape: bf16[1,128], index: 6, kind: input, shape index: {}]   ;;  %s12060_s7 = inlined_call_operand.hbm [shape: f32[64,128], index: 7, kind: output, shape index: {}]  }
   0x1   :  { %v9087_v0 = vld [vmem:[%s12054_s1] sm:$0x3f]   ;;  %v9089_v3 = vld [vmem:[%s12053_s0 + $0x208] sm:$0xff]   ;;  %v9091_v5 = vld [vmem:[%s12053_s0 + $0x210] sm:$0xff]  }
   0x2   :  { %v9088_v1 = vld [vmem:[%s12053_s0 + $0x200] sm:$0xff]   ;;  %9082 = vmatprep.subr.msk.bf16.mxu1 %vm1316_vm0, %v9087_v0  ;;  %v1318_v2 = vsel %vm1316_vm0, %v9087_v0, 0  ;;  %9081 = vmatprep.subr.msk.bf16.mxu0 %vm1316_vm0, %v9087_v0  ;;  %v9090_v4 = vld [vmem:[%s12056_s3 + $0x8] sm:$0xff]   ;;  %v9092_v6 = vld [vmem:[%s12053_s0 + $0x218] sm:$0xff]  }
   0x3   :  { %9080 = vmatpush3.bf16.msra.mxu1 %v1318_v2  ;;  %8431 = vmatprep.mubr.msk.bf16.mxu1 %vm931_vm1, %v9088_v1  ;;  %v9093_v7 = vld [vmem:[%s12053_s0 + $0x220] sm:$0xff]   ;;  %v9102_v9 = vld [vmem:[%s12053_s0 + $0x8] sm:$0xff]   ;;  %v9095_v11 = vld [vmem:[%s12053_s0 + $0x230] sm:$0xff]  }
   0x4   :  { %8302 = vmatpush3.bf16.msra.mxu0 %v1318_v2  ;;  %8559 = vmatprep.subr.bf16.mxu1 %v9090_v4  ;;  %v9101_v8 = vld [vmem:[%s12053_s0] sm:$0xff]   ;;  %v9094_v10 = vld [vmem:[%s12053_s0 + $0x228] sm:$0xff]   ;;  %v9105_v12 = vld [vmem:[%s12053_s0 + $0x10] sm:$0xff]  }
   0x5   :  { %8303 = vmatprep.mubr.msk.bf16.mxu0 %vm931_vm1, %v9101_v8  ;;  %v9106_v13 = vld [vmem:[%s12053_s0 + $0x18] sm:$0xff]   ;;  %v9109_v14 = vld [vmem:[%s12053_s0 + $0x20] sm:$0xff]   ;;  %v9110_v17 = vld [vmem:[%s12053_s0 + $0x28] sm:$0xff]  }
   0x6   :  { %8432 = vmatmul.mubr.msk.bf16.vlgmr.msra.gmra.mxu1 %vm931_vm1, %v9089_v3  ;;  %v9096_v15 = vld [vmem:[%s12053_s0 + $0x238] sm:$0xff]   ;;  %v9097_v16 = vld [vmem:[%s12053_s0 + $0x240] sm:$0xff]   ;;  %v9113_v18 = vld [vmem:[%s12053_s0 + $0x30] sm:$0xff]  }
   0x7   :  { %8560 = vmatpush3.bf16.msra.mxu1 %v9090_v4  ;;  %8435 = vmatprep.mubr.msk.bf16.mxu1 %vm931_vm1, %v9091_v5  ;;  %v9098_v19 = vld [vmem:[%s12053_s0 + $0x248] sm:$0xff]   ;;  %v9099_v20 = vld [vmem:[%s12053_s0 + $0x250] sm:$0xff]   ;;  %v9114_v21 = vld [vmem:[%s12053_s0 + $0x38] sm:$0xff]  }
   0x8   :  { %8304 = vmatmul.mubr.msk.bf16.vlgmr.msra.gmra.mxu0 %vm931_vm1, %v9102_v9  ;;  %v9117_v22 = vld [vmem:[%s12053_s0 + $0x40] sm:$0xff]   ;;  %v9100_v23 = vld [vmem:[%s12053_s0 + $0x258] sm:$0xff]   ;;  %v9118_v25 = vld [vmem:[%s12053_s0 + $0x48] sm:$0xff]  }
   0x9   :  { %8307 = vmatprep.mubr.msk.bf16.mxu0 %vm931_vm1, %v9105_v12  ;;  %v9103_v24 = vld [vmem:[%s12053_s0 + $0x260] sm:$0xff]   ;;  %v9121_v26 = vld [vmem:[%s12053_s0 + $0x50] sm:$0xff]   ;;  %v9104_v27 = vld [vmem:[%s12053_s0 + $0x268] sm:$0xff]  }
   0xa   :  { %v9107_v28 = vld [vmem:[%s12053_s0 + $0x270] sm:$0xff]   ;;  %v9122_v29 = vld [vmem:[%s12053_s0 + $0x58] sm:$0xff]   ;;  %v9125_v30 = vld [vmem:[%s12053_s0 + $0x60] sm:$0xff]  }
   0xb   :  { %v9108_v31 = vld [vmem:[%s12053_s0 + $0x278] sm:$0xff]   ;;  %v9111_v32 = vld [vmem:[%s12053_s0 + $0x280] sm:$0xff]   ;;  %v9126_v34 = vld [vmem:[%s12053_s0 + $0x68] sm:$0xff]  }
   0xc   :  { %v9145_v33 = vld [vmem:[%s12056_s3] sm:$0xff]   ;;  %v9129_v35 = vld [vmem:[%s12053_s0 + $0x70] sm:$0xff]   ;;  %v9112_v36 = vld [vmem:[%s12053_s0 + $0x288] sm:$0xff]  }
   0xd   :  { %8561 = vmatprep.subr.bf16.mxu1 %v9145_v33  ;;  %v9115_v37 = vld [vmem:[%s12053_s0 + $0x290] sm:$0xff]   ;;  %v9130_v38 = vld [vmem:[%s12053_s0 + $0x78] sm:$0xff]   ;;  %v9133_v39 = vld [vmem:[%s12053_s0 + $0x80] sm:$0xff]  }
   0xe   :  { %8436 = vmatmul.mubr.msk.bf16.gmra.mxu1 %vm931_vm1, %v9092_v6  ;;  %v9116_v40 = vld [vmem:[%s12053_s0 + $0x298] sm:$0xff]   ;;  %v9119_v41 = vld [vmem:[%s12053_s0 + $0x2a0] sm:$0xff]   ;;  %v9134_v42 = vld [vmem:[%s12053_s0 + $0x88] sm:$0xff]  }
   0xf   :  { %8439 = vmatprep.mubr.msk.bf16.mxu1 %vm931_vm1, %v9093_v7  ;;  %8562 = vmatpush3.bf16.msra.mxu1 %v9145_v33  ;;  %v9137_v43 = vld [vmem:[%s12053_s0 + $0x90] sm:$0xff]   ;;  %v9120_v44 = vld [vmem:[%s12053_s0 + $0x2a8] sm:$0xff]   ;;  %v9138_v46 = vld [vmem:[%s12053_s0 + $0x98] sm:$0xff]  }
  0x10   :  { %8308 = vmatmul.mubr.msk.bf16.gmra.mxu0 %vm931_vm1, %v9106_v13  ;;  %v9123_v45 = vld [vmem:[%s12053_s0 + $0x2b0] sm:$0xff]   ;;  %v9141_v47 = vld [vmem:[%s12053_s0 + $0xa0] sm:$0xff]   ;;  %v9124_v48 = vld [vmem:[%s12053_s0 + $0x2b8] sm:$0xff]  }
  0x11   :  { %8311 = vmatprep.mubr.msk.bf16.mxu0 %vm931_vm1, %v9109_v14  ;;  %v9127_v49 = vld [vmem:[%s12053_s0 + $0x2c0] sm:$0xff]   ;;  %v9142_v50 = vld [vmem:[%s12053_s0 + $0xa8] sm:$0xff]   ;;  %v9146_v51 = vld [vmem:[%s12053_s0 + $0xb0] sm:$0xff]  }
  0x12   :  { %v9128_v52 = vld [vmem:[%s12053_s0 + $0x2c8] sm:$0xff]   ;;  %v9131_v54 = vld [vmem:[%s12053_s0 + $0x2d0] sm:$0xff]   ;;  %v9147_v55 = vld [vmem:[%s12053_s0 + $0xb8] sm:$0xff]  }
  0x13   :  { %v9184_v53 = vld [vmem:[%s12058_s5 + $0x8] sm:$0xff]   ;;  %v9150_v56 = vld [vmem:[%s12053_s0 + $0xc0] sm:$0xff]   ;;  %v9132_v57 = vld [vmem:[%s12053_s0 + $0x2d8] sm:$0xff]  }
  0x14   :  { %8819 = vmatprep.subr.bf16.mxu0 %v9184_v53  ;;  %v9135_v58 = vld [vmem:[%s12053_s0 + $0x2e0] sm:$0xff]   ;;  %v9151_v59 = vld [vmem:[%s12053_s0 + $0xc8] sm:$0xff]   ;;  %v9154_v60 = vld [vmem:[%s12053_s0 + $0xd0] sm:$0xff]  }
  0x15   :  { %8820 = vmatpush3.bf16.msra.mxu0 %v9184_v53  ;;  %v9136_v61 = vld [vmem:[%s12053_s0 + $0x2e8] sm:$0xff]   ;;  %v9139_v62 = vld [vmem:[%s12053_s0 + $0x2f0] sm:$0xff]   ;;  %v9155_v63 = vld [vmem:[%s12053_s0 + $0xd8] sm:$0xff]  }
  0x16   :  { %8440 = vmatmul.mubr.msk.bf16.gmra.mxu1 %vm931_vm1, %v9094_v10  ;;  %v9158_v0 = vld [vmem:[%s12053_s0 + $0xe0] sm:$0xff]   ;;  %v9140_v1 = vld [vmem:[%s12053_s0 + $0x2f8] sm:$0xff]   ;;  %v9159_v3 = vld [vmem:[%s12053_s0 + $0xe8] sm:$0xff]  }
  0x17   :  { %8443 = vmatprep.mubr.msk.bf16.mxu1 %vm931_vm1, %v9095_v11  ;;  %v9143_v2 = vld [vmem:[%s12053_s0 + $0x300] sm:$0xff]   ;;  %v9162_v4 = vld [vmem:[%s12053_s0 + $0xf0] sm:$0xff]   ;;  %v9144_v5 = vld [vmem:[%s12053_s0 + $0x308] sm:$0xff]  }
  0x18   :  { %8312 = vmatmul.mubr.msk.bf16.gmra.mxu0 %vm931_vm1, %v9110_v17 }
  0x19   :  { %8315 = vmatprep.mubr.msk.bf16.mxu0 %vm931_vm1, %v9113_v18 }
  0x1e   :  { %8444 = vmatmul.mubr.msk.bf16.gmra.mxu1 %vm931_vm1, %v9096_v15 }
  0x1f   :  { %8447 = vmatprep.mubr.msk.bf16.mxu1 %vm931_vm1, %v9097_v16 }
  0x20   :  { %8316 = vmatmul.mubr.msk.bf16.gmra.mxu0 %vm931_vm1, %v9114_v21 }
  0x21   :  { %8319 = vmatprep.mubr.msk.bf16.mxu0 %vm931_vm1, %v9117_v22 }
  0x26   :  { %8448 = vmatmul.mubr.msk.bf16.gmra.mxu1 %vm931_vm1, %v9098_v19 }
  0x27   :  { %8451 = vmatprep.mubr.msk.bf16.mxu1 %vm931_vm1, %v9099_v20 }
  0x28   :  { %8320 = vmatmul.mubr.msk.bf16.gmra.mxu0 %vm931_vm1, %v9118_v25 }
  0x29   :  { %8323 = vmatprep.mubr.msk.bf16.mxu0 %vm931_vm1, %v9121_v26 }
  0x2e   :  { %8452 = vmatmul.mubr.msk.bf16.gmra.mxu1 %vm931_vm1, %v9100_v23 }
  0x2f   :  { %8455 = vmatprep.mubr.msk.bf16.mxu1 %vm931_vm1, %v9103_v24 }
  0x30   :  { %8324 = vmatmul.mubr.msk.bf16.gmra.mxu0 %vm931_vm1, %v9122_v29 }
  0x31   :  { %8327 = vmatprep.mubr.msk.bf16.mxu0 %vm931_vm1, %v9125_v30 }
  0x36   :  { %8456 = vmatmul.mubr.msk.bf16.gmra.mxu1 %vm931_vm1, %v9104_v27 }
  0x37   :  { %8459 = vmatprep.mubr.msk.bf16.mxu1 %vm931_vm1, %v9107_v28 }
  0x38   :  { %8328 = vmatmul.mubr.msk.bf16.gmra.mxu0 %vm931_vm1, %v9126_v34 }
  0x39   :  { %8331 = vmatprep.mubr.msk.bf16.mxu0 %vm931_vm1, %v9129_v35 }
  0x3e   :  { %8460 = vmatmul.mubr.msk.bf16.gmra.mxu1 %vm931_vm1, %v9108_v31 }
  0x3f   :  { %8463 = vmatprep.mubr.msk.bf16.mxu1 %vm931_vm1, %v9111_v32 }
  0x40   :  { %8332 = vmatmul.mubr.msk.bf16.gmra.mxu0 %vm931_vm1, %v9130_v38 }
  0x41   :  { %8335 = vmatprep.mubr.msk.bf16.mxu0 %vm931_vm1, %v9133_v39 }
  0x46   :  { %8464 = vmatmul.mubr.msk.bf16.gmra.mxu1 %vm931_vm1, %v9112_v36 }
  0x47   :  { %8467 = vmatprep.mubr.msk.bf16.mxu1 %vm931_vm1, %v9115_v37 }
  0x48   :  { %8336 = vmatmul.mubr.msk.bf16.gmra.mxu0 %vm931_vm1, %v9134_v42 }
  0x49   :  { %8339 = vmatprep.mubr.msk.bf16.mxu0 %vm931_vm1, %v9137_v43 }
  0x4e   :  { %8468 = vmatmul.mubr.msk.bf16.gmra.mxu1 %vm931_vm1, %v9116_v40 }
  0x4f   :  { %8471 = vmatprep.mubr.msk.bf16.mxu1 %vm931_vm1, %v9119_v41 }
  0x50   :  { %8340 = vmatmul.mubr.msk.bf16.gmra.mxu0 %vm931_vm1, %v9138_v46 }
  0x51   :  { %8343 = vmatprep.mubr.msk.bf16.mxu0 %vm931_vm1, %v9141_v47 }
  0x56   :  { %8472 = vmatmul.mubr.msk.bf16.gmra.mxu1 %vm931_vm1, %v9120_v44 }
  0x57   :  { %8475 = vmatprep.mubr.msk.bf16.mxu1 %vm931_vm1, %v9123_v45 }
  0x58   :  { %8344 = vmatmul.mubr.msk.bf16.gmra.mxu0 %vm931_vm1, %v9142_v50 }
  0x59   :  { %8347 = vmatprep.mubr.msk.bf16.mxu0 %vm931_vm1, %v9146_v51 }
  0x5e   :  { %8476 = vmatmul.mubr.msk.bf16.gmra.mxu1 %vm931_vm1, %v9124_v48 }
  0x5f   :  { %8479 = vmatprep.mubr.msk.bf16.mxu1 %vm931_vm1, %v9127_v49 }
  0x60   :  { %8348 = vmatmul.mubr.msk.bf16.gmra.mxu0 %vm931_vm1, %v9147_v55 }
  0x61   :  { %8351 = vmatprep.mubr.msk.bf16.mxu0 %vm931_vm1, %v9150_v56 }
  0x66   :  { %8480 = vmatmul.mubr.msk.bf16.gmra.mxu1 %vm931_vm1, %v9128_v52 }
  0x67   :  { %8483 = vmatprep.mubr.msk.bf16.mxu1 %vm931_vm1, %v9131_v54 }
  0x68   :  { %8352 = vmatmul.mubr.msk.bf16.gmra.mxu0 %vm931_vm1, %v9151_v59 }
  0x69   :  { %8355 = vmatprep.mubr.msk.bf16.mxu0 %vm931_vm1, %v9154_v60 }
  0x6e   :  { %8484 = vmatmul.mubr.msk.bf16.gmra.mxu1 %vm931_vm1, %v9132_v57 }
  0x6f   :  { %8487 = vmatprep.mubr.msk.bf16.mxu1 %vm931_vm1, %v9135_v58 }
  0x70   :  { %8356 = vmatmul.mubr.msk.bf16.gmra.mxu0 %vm931_vm1, %v9155_v63 }
  0x71   :  { %8359 = vmatprep.mubr.msk.bf16.mxu0 %vm931_vm1, %v9158_v0 }
  0x76   :  { %8488 = vmatmul.mubr.msk.bf16.gmra.mxu1 %vm931_vm1, %v9136_v61 }
  0x77   :  { %8491 = vmatprep.mubr.msk.bf16.mxu1 %vm931_vm1, %v9139_v62 }
  0x78   :  { %8360 = vmatmul.mubr.msk.bf16.gmra.mxu0 %vm931_vm1, %v9159_v3 }
  0x7e   :  { %8492 = vmatmul.mubr.msk.bf16.gmra.mxu1 %vm931_vm1, %v9140_v1 }
  0x7f   :  { %8495 = vmatprep.mubr.msk.bf16.mxu1 %vm931_vm1, %v9143_v2 }
  0x80   :  { %12 = vsyncpa [#allocation3], 0  ;;  %v9148_v6 = vld [vmem:[%s12053_s0 + $0x310] sm:$0xff]   ;;  %8363 = vmatprep.mubr.msk.bf16.mxu0 %vm931_vm1, %v9162_v4  ;;  %v9163_v7 = vld [vmem:[%s12053_s0 + $0xf8] sm:$0xff]   ;;  %vm2785_vm2 = vcmask 261120   ;;  %vm7300_vm3 = vcmask 1041409  }
  0x81   :  { %v9166_v8 = vld [vmem:[%s12053_s0 + $0x100] sm:$0xff]   ;;  %v9149_v9 = vld [vmem:[%s12053_s0 + $0x318] sm:$0xff]   ;;  %8364 = vmatmul.mubr.msk.bf16.gmra.mxu0 %vm931_vm1, %v9163_v7  ;;  %v9167_v11 = vld [vmem:[%s12053_s0 + $0x108] sm:$0xff]   ;;  %vm7302_vm4 = vcmask 1042434   ;;  %vm7304_vm5 = vcmask 1043459   ;;  %vm7306_vm6 = vcmask 1044484  }
  0x82   :  { %v9152_v10 = vld [vmem:[%s12053_s0 + $0x320] sm:$0xff]   ;;  %8367 = vmatprep.mubr.msk.bf16.mxu0 %vm931_vm1, %v9166_v8  ;;  %v9170_v12 = vld [vmem:[%s12053_s0 + $0x110] sm:$0xff]   ;;  %v9153_v13 = vld [vmem:[%s12053_s0 + $0x328] sm:$0xff]   ;;  %vm7308_vm7 = vcmask 1045509   ;;  %vm7310_vm8 = vcmask 1046534   ;;  %vm7312_vm9 = vcmask 1047559  }
  0x83   :  { %v9156_v14 = vld [vmem:[%s12053_s0 + $0x330] sm:$0xff]   ;;  %v9171_v15 = vld [vmem:[%s12053_s0 + $0x118] sm:$0xff]   ;;  %v9174_v16 = vld [vmem:[%s12053_s0 + $0x120] sm:$0xff]  }
  0x84   :  { %v9157_v17 = vld [vmem:[%s12053_s0 + $0x338] sm:$0xff]   ;;  %v9160_v18 = vld [vmem:[%s12053_s0 + $0x340] sm:$0xff]   ;;  %v9175_v19 = vld [vmem:[%s12053_s0 + $0x128] sm:$0xff]  }
  0x85   :  { %v9178_v20 = vld [vmem:[%s12053_s0 + $0x130] sm:$0xff]   ;;  %v9161_v21 = vld [vmem:[%s12053_s0 + $0x348] sm:$0xff]   ;;  %v9179_v23 = vld [vmem:[%s12053_s0 + $0x138] sm:$0xff]  }
  0x86   :  { %8496 = vmatmul.mubr.msk.bf16.gmra.mxu1 %vm931_vm1, %v9144_v5  ;;  %v9164_v22 = vld [vmem:[%s12053_s0 + $0x350] sm:$0xff]   ;;  %v9182_v24 = vld [vmem:[%s12053_s0 + $0x140] sm:$0xff]   ;;  %v9165_v25 = vld [vmem:[%s12053_s0 + $0x358] sm:$0xff]  }
  0x87   :  { %8499 = vmatprep.mubr.msk.bf16.mxu1 %vm931_vm1, %v9148_v6  ;;  %v9168_v26 = vld [vmem:[%s12053_s0 + $0x360] sm:$0xff]   ;;  %v9183_v27 = vld [vmem:[%s12053_s0 + $0x148] sm:$0xff]   ;;  %v9187_v28 = vld [vmem:[%s12053_s0 + $0x150] sm:$0xff]  }
  0x88   :  { %v9169_v29 = vld [vmem:[%s12053_s0 + $0x368] sm:$0xff]   ;;  %v9172_v30 = vld [vmem:[%s12053_s0 + $0x370] sm:$0xff]   ;;  %v9188_v31 = vld [vmem:[%s12053_s0 + $0x158] sm:$0xff]  }
  0x89   :  { %8368 = vmatmul.mubr.msk.bf16.gmra.mxu0 %vm931_vm1, %v9167_v11  ;;  %v9191_v32 = vld [vmem:[%s12053_s0 + $0x160] sm:$0xff]   ;;  %v9173_v33 = vld [vmem:[%s12053_s0 + $0x378] sm:$0xff]   ;;  %v9192_v35 = vld [vmem:[%s12053_s0 + $0x168] sm:$0xff]  }
  0x8a   :  { %8371 = vmatprep.mubr.msk.bf16.mxu0 %vm931_vm1, %v9170_v12  ;;  %v9176_v34 = vld [vmem:[%s12053_s0 + $0x380] sm:$0xff]   ;;  %v9195_v36 = vld [vmem:[%s12053_s0 + $0x170] sm:$0xff]   ;;  %v9177_v37 = vld [vmem:[%s12053_s0 + $0x388] sm:$0xff]  }
  0x8b   :  { %v9180_v38 = vld [vmem:[%s12053_s0 + $0x390] sm:$0xff]   ;;  %v9196_v40 = vld [vmem:[%s12053_s0 + $0x178] sm:$0xff]   ;;  %v9199_v41 = vld [vmem:[%s12053_s0 + $0x180] sm:$0xff]  }
  0x8c   :  { %v9181_v44 = vld [vmem:[%s12053_s0 + $0x398] sm:$0xff]   ;;  %v9185_v46 = vld [vmem:[%s12053_s0 + $0x3a0] sm:$0xff]   ;;  %v9200_v50 = vld [vmem:[%s12053_s0 + $0x188] sm:$0xff]  }
  0x8d   :  { %v9203_v51 = vld [vmem:[%s12053_s0 + $0x190] sm:$0xff]   ;;  %v9186_v54 = vld [vmem:[%s12053_s0 + $0x3a8] sm:$0xff]   ;;  %v9204_v63 = vld [vmem:[%s12053_s0 + $0x198] sm:$0xff]  }
  0x8e   :  { %8500 = vmatmul.mubr.msk.bf16.gmra.mxu1 %vm931_vm1, %v9149_v9  ;;  %v9189_v57 = vld [vmem:[%s12053_s0 + $0x3b0] sm:$0xff]   ;;  %v9207_v0 = vld [vmem:[%s12053_s0 + $0x1a0] sm:$0xff]   ;;  %v9190_v5 = vld [vmem:[%s12053_s0 + $0x3b8] sm:$0xff]  }
  0x8f   :  { %8503 = vmatprep.mubr.msk.bf16.mxu1 %vm931_vm1, %v9152_v10  ;;  %v9219_v3 = vld [vmem:[%s12058_s5] sm:$0xff]  }
  0x90   :  { %v9193_v8 = vld [vmem:[%s12053_s0 + $0x3c0] sm:$0xff]   ;;  %8821 = vmatprep.subr.bf16.mxu0 %v9219_v3 }
  0x91   :  { %8372 = vmatmul.mubr.msk.bf16.gmra.mxu0 %vm931_vm1, %v9171_v15  ;;  %v9209_v15 = vld [vmem:[%s12053_s0 + $0x1b0] sm:$0xff]  }
  0x92   :  { %8375 = vmatprep.mubr.msk.bf16.mxu0 %vm931_vm1, %v9174_v16  ;;  %8822 = vmatpush3.bf16.msra.mxu0 %v9219_v3 }
  0x96   :  { %8504 = vmatmul.mubr.msk.bf16.gmra.mxu1 %vm931_vm1, %v9153_v13 }
  0x97   :  { %8507 = vmatprep.mubr.msk.bf16.mxu1 %vm931_vm1, %v9156_v14  ;;  %v9208_v14 = vld [vmem:[%s12053_s0 + $0x1a8] sm:$0xff]  }
  0x99   :  { %8376 = vmatmul.mubr.msk.bf16.gmra.mxu0 %vm931_vm1, %v9175_v19  ;;  %v9194_v19 = vld [vmem:[%s12053_s0 + $0x3c8] sm:$0xff]  }
  0x9a   :  { %8379 = vmatprep.mubr.msk.bf16.mxu0 %vm931_vm1, %v9178_v20 }
  0x9e   :  { %8508 = vmatmul.mubr.msk.bf16.gmra.mxu1 %vm931_vm1, %v9157_v17 }
  0x9f   :  { %8511 = vmatprep.mubr.msk.bf16.mxu1 %vm931_vm1, %v9160_v18 }
  0xa1   :  { %8380 = vmatmul.mubr.msk.bf16.gmra.mxu0 %vm931_vm1, %v9179_v23 }
  0xa2   :  { %8383 = vmatprep.mubr.msk.bf16.mxu0 %vm931_vm1, %v9182_v24 }
  0xa6   :  { %8512 = vmatmul.mubr.msk.bf16.gmra.mxu1 %vm931_vm1, %v9161_v21 }
  0xa7   :  { %8515 = vmatprep.mubr.msk.bf16.mxu1 %vm931_vm1, %v9164_v22  ;;  %v9197_v22 = vld [vmem:[%s12053_s0 + $0x3d0] sm:$0xff]  }
  0xa9   :  { %8384 = vmatmul.mubr.msk.bf16.gmra.mxu0 %vm931_vm1, %v9183_v27 }
  0xaa   :  { %8387 = vmatprep.mubr.msk.bf16.mxu0 %vm931_vm1, %v9187_v28  ;;  %v9210_v28 = vld [vmem:[%s12053_s0 + $0x1b8] sm:$0xff]  }
  0xae   :  { %8516 = vmatmul.mubr.msk.bf16.gmra.mxu1 %vm931_vm1, %v9165_v25 }
  0xaf   :  { %8519 = vmatprep.mubr.msk.bf16.mxu1 %vm931_vm1, %v9168_v26 }
  0xb1   :  { %8388 = vmatmul.mubr.msk.bf16.gmra.mxu0 %vm931_vm1, %v9188_v31 }
  0xb2   :  { %8391 = vmatprep.mubr.msk.bf16.mxu0 %vm931_vm1, %v9191_v32  ;;  %v2509_v32 = vlaneseq }
  0xb6   :  { %8520 = vmatmul.mubr.msk.bf16.gmra.mxu1 %vm931_vm1, %v9169_v29  ;;  %v9211_v29 = vld [vmem:[%s12053_s0 + $0x1c0] sm:$0xff]  }
  0xb7   :  { %8523 = vmatprep.mubr.msk.bf16.mxu1 %vm931_vm1, %v9172_v30 }
  0xb9   :  { %8392 = vmatmul.mubr.msk.bf16.gmra.mxu0 %vm931_vm1, %v9192_v35 }
  0xba   :  { %8395 = vmatprep.mubr.msk.bf16.mxu0 %vm931_vm1, %v9195_v36 }
  0xbe   :  { %8524 = vmatmul.mubr.msk.bf16.gmra.mxu1 %vm931_vm1, %v9173_v33 }
  0xbf   :  { %8527 = vmatprep.mubr.msk.bf16.mxu1 %vm931_vm1, %v9176_v34  ;;  %v9198_v34 = vld [vmem:[%s12053_s0 + $0x3d8] sm:$0xff]  }
  0xc1   :  { %8396 = vmatmul.mubr.msk.bf16.gmra.mxu0 %vm931_vm1, %v9196_v40 }
  0xc2   :  { %8399 = vmatprep.mubr.msk.bf16.mxu0 %vm931_vm1, %v9199_v41  ;;  %v2510_v41 = vshrl.u32 %v2509_v32, 7 }
  0xc6   :  { %v9688_v39 = vpop.f32.mrf.mxu1  ;;  %8528 = vmatmul.mubr.msk.bf16.gmra.mxu1 %vm931_vm1, %v9177_v37  ;;  %v9201_v37 = vld [vmem:[%s12053_s0 + $0x3e0] sm:$0xff]  }
  0xc7   :  { %8531 = vmatprep.mubr.msk.bf16.mxu1 %vm931_vm1, %v9180_v38 }
  0xc8   :  { %v9698_v42 = vpop.f32.mrf.mxu1  ;;  %v9733_v55 = vpop.f32.mrf.mxu0 }
  0xc9   :  { %8400 = vmatmul.mubr.msk.bf16.gmra.mxu0 %vm931_vm1, %v9200_v50 }
  0xca   :  { %v9700_v43 = vpop.f32.mrf.mxu1  ;;  %8403 = vmatprep.mubr.msk.bf16.mxu0 %vm931_vm1, %v9203_v51  ;;  %v9744_v59 = vpop.f32.mrf.mxu0 }
  0xcc   :  { %v9712_v47 = vpop.f32.mrf.mxu1  ;;  %v9751_v62 = vpop.f32.mrf.mxu0 }
  0xcd   :  { %v2378_v21 = vpack.c.bf16 %v9751_v62, %v9733_v55  ;;  %v9217_v62 = vld [vmem:[%s12053_s0 + $0x1f0] sm:$0xff]  }
  0xce   :  { %v9716_v49 = vpop.f32.mrf.mxu1  ;;  %8532 = vmatmul.mubr.msk.bf16.gmra.mxu1 %vm931_vm1, %v9181_v44  ;;  %v9762_v2 = vpop.f32.mrf.mxu0 }
  0xcf   :  { %8535 = vmatprep.mubr.msk.bf16.mxu1 %vm931_vm1, %v9185_v46  ;;  %v2505_v46 = vld [vmem:[%s12055_s2] sm:$0x1] }
  0xd0   :  { %v9726_v52 = vpop.f32.mrf.mxu1  ;;  %v9772_v6 = vpop.f32.mrf.mxu0  ;;  %v2507_v3 = vpack.i.b16 %v2505_v46, %v2505_v46 }
  0xd1   :  { %8404 = vmatmul.mubr.msk.bf16.gmra.mxu0 %vm931_vm1, %v9204_v63 }
  0xd2   :  { %v9728_v53 = vpop.f32.mrf.mxu1  ;;  %8407 = vmatprep.mubr.msk.bf16.mxu0 %vm931_vm1, %v9207_v0  ;;  %v9783_v10 = vpop.f32.mrf.mxu0 }
  0xd4   :  { %v9742_v58 = vpop.f32.mrf.mxu1  ;;  %v9790_v13 = vpop.f32.mrf.mxu0 }
  0xd5   :  { %v2380_v60 = vpack.c.bf16 %v9790_v13, %v9772_v6 }
  0xd6   :  { %v9748_v61 = vpop.f32.mrf.mxu1  ;;  %8536 = vmatmul.mubr.msk.bf16.gmra.mxu1 %vm931_vm1, %v9186_v54  ;;  %v9801_v17 = vpop.f32.mrf.mxu0  ;;  %v9212_v54 = vld [vmem:[%s12053_s0 + $0x1c8] sm:$0xff]  }
  0xd7   :  { %8539 = vmatprep.mubr.msk.bf16.mxu1 %vm931_vm1, %v9189_v57  ;;  %v9213_v57 = vld [vmem:[%s12053_s0 + $0x1d0] sm:$0xff]   ;;  %v2379_v44 = vpack.c.bf16 %v9801_v17, %v9783_v10  ;;  %v9216_v10 = vld [vmem:[%s12053_s0 + $0x1e8] sm:$0xff]  }
  0xd8   :  { %v9760_v1 = vpop.f32.mrf.mxu1  ;;  %v9808_v20 = vpop.f32.mrf.mxu0 }
  0xd9   :  { %8408 = vmatmul.mubr.msk.bf16.gmra.mxu0 %vm931_vm1, %v9208_v14  ;;  %v9202_v14 = vld [vmem:[%s12053_s0 + $0x3e8] sm:$0xff]  }
  0xda   :  { %v9767_v4 = vpop.f32.mrf.mxu1  ;;  %8411 = vmatprep.mubr.msk.bf16.mxu0 %vm931_vm1, %v9209_v15  ;;  %v9819_v24 = vpop.f32.mrf.mxu0 }
  0xdc   :  { %v9781_v9 = vpop.f32.mrf.mxu1  ;;  %v9826_v27 = vpop.f32.mrf.mxu0 }
  0xde   :  { %v9787_v12 = vpop.f32.mrf.mxu1  ;;  %8540 = vmatmul.mubr.msk.bf16.gmra.mxu1 %vm931_vm1, %v9190_v5  ;;  %v9837_v31 = vpop.f32.mrf.mxu0  ;;  %v9878_v5 = vsub.s32 0, %v2510_v41 }
  0xdf   :  { %8543 = vmatprep.mubr.msk.bf16.mxu1 %vm931_vm1, %v9193_v8  ;;  %v2381_v56 = vpack.c.bf16 %v9837_v31, %v9819_v24  ;;  %v9218_v24 = vld [vmem:[%s12053_s0 + $0x1f8] sm:$0xff]  }
  0xe0   :  { %v9799_v16 = vpop.f32.mrf.mxu1  ;;  %v9844_v35 = vpop.f32.mrf.mxu0 }
  0xe1   :  { %8412 = vmatmul.mubr.msk.bf16.gmra.mxu0 %vm931_vm1, %v9210_v28  ;;  %v9205_v28 = vld [vmem:[%s12053_s0 + $0x3f0] sm:$0xff]  }
  0xe2   :  { %v9803_v18 = vpop.f32.mrf.mxu1  ;;  %8415 = vmatprep.mubr.msk.bf16.mxu0 %vm931_vm1, %v9211_v29  ;;  %v9855_v40 = vpop.f32.mrf.mxu0 }
  0xe4   :  { %v9817_v23 = vpop.f32.mrf.mxu1  ;;  %v9865_v51 = vpop.f32.mrf.mxu0 }
  0xe6   :  { %v9823_v26 = vpop.f32.mrf.mxu1  ;;  %8544 = vmatmul.mubr.msk.bf16.gmra.mxu1 %vm931_vm1, %v9194_v19  ;;  %v9876_v0 = vpop.f32.mrf.mxu0 }
  0xe7   :  { %8547 = vmatprep.mubr.msk.bf16.mxu1 %vm931_vm1, %v9197_v22  ;;  %v2377_v22 = vpack.c.bf16 %v9762_v2, %v9744_v59  ;;  %v9214_v2 = vld [vmem:[%s12053_s0 + $0x1d8] sm:$0xff]  }
  0xe8   :  { %v9835_v30 = vpop.f32.mrf.mxu1  ;;  %v9885_v15 = vpop.f32.mrf.mxu0 }
  0xe9   :  { %8416 = vmatmul.mubr.msk.bf16.gmra.mxu0 %vm931_vm1, %v9212_v54  ;;  %v9215_v54 = vld [vmem:[%s12053_s0 + $0x1e0] sm:$0xff]  }
  0xea   :  { %v9839_v33 = vpop.f32.mrf.mxu1  ;;  %8419 = vmatprep.mubr.msk.bf16.mxu0 %vm931_vm1, %v9213_v57  ;;  %v9898_v32 = vpop.f32.mrf.mxu0 }
  0xec   :  { %v9853_v38 = vpop.f32.mrf.mxu1  ;;  %v9908_v59 = vpop.f32.mrf.mxu0 }
  0xee   :  { %v9862_v50 = vpop.f32.mrf.mxu1  ;;  %8548 = vmatmul.mubr.msk.bf16.gmra.mxu1 %vm931_vm1, %v9198_v34  ;;  %v9901_v34 = vrot.slane %v2507_v3, %v9878_v5  ;;  %v9920_v3 = vpop.f32.mrf.mxu0 }
  0xef   :  { %8551 = vmatprep.mubr.msk.bf16.mxu1 %vm931_vm1, %v9201_v37 }
  0xf0   :  { %v9874_v63 = vpop.f32.mrf.mxu1  ;;  %v2513_v46 = vadd.bf16 %v9901_v34, %v2377_v22  ;;  %v9927_v37 = vpop.f32.mrf.mxu0  ;;  %v12153_v22 = vmov 0   ;;  %v2515_v55 = vadd.bf16 %v9901_v34, %v2379_v44  ;;  %v2514_v17 = vadd.bf16 %v9901_v34, %v2378_v21 }
  0xf1   :  { %8420 = vmatmul.mubr.msk.bf16.gmra.mxu0 %vm931_vm1, %v9214_v2  ;;  %v2517_v6 = vadd.bf16 %v9901_v34, %v2381_v56  ;;  %v2516_v13 = vadd.bf16 %v9901_v34, %v2380_v60  ;;  %v2383_v56 = vpack.c.bf16 %v9876_v0, %v9855_v40 }
  0xf2   :  { %v9880_v8 = vpop.f32.mrf.mxu1  ;;  %8423 = vmatprep.mubr.msk.bf16.mxu0 %vm931_vm1, %v9215_v54  ;;  %v9940_v7 = vpop.f32.mrf.mxu0  ;;  %v2642_v21 = vmax.bf16 %v12153_v22, %v2514_v17 }
  0xf3   :  { %v2644_v60 = vmax.bf16 %v12153_v22, %v2516_v13  ;;  %v2519_v40 = vadd.bf16 %v9901_v34, %v2383_v56 }
  0xf4   :  { %v9896_v29 = vpop.f32.mrf.mxu1  ;;  %v9947_v36 = vpop.f32.mrf.mxu0 }
  0xf6   :  { %v9905_v41 = vpop.f32.mrf.mxu1  ;;  %8552 = vmatmul.mubr.msk.bf16.gmra.mxu1 %vm931_vm1, %v9202_v14  ;;  %v9206_v14 = vld [vmem:[%s12053_s0 + $0x3f8] sm:$0xff]   ;;  %v9960_v2 = vpop.f32.mrf.mxu0 }
  0xf7   :  { %8555 = vmatprep.mubr.msk.bf16.mxu1 %vm931_vm1, %v9205_v28  ;;  %v2641_v28 = vmax.bf16 %v12153_v22, %v2513_v46 }
  0xf8   :  { %v9918_v57 = vpop.f32.mrf.mxu1  ;;  %v9964_v11 = vpop.f32.mrf.mxu0 }
  0xf9   :  { %8424 = vmatmul.mubr.msk.bf16.gmra.mxu0 %vm931_vm1, %v9216_v10 }
  0xfa   :  { %v9922_v19 = vpop.f32.mrf.mxu1  ;;  %8427 = vmatprep.mubr.msk.bf16.mxu0 %vm931_vm1, %v9217_v62  ;;  %v9978_v48 = vpop.f32.mrf.mxu0 }
  0xfc   :  { %v9938_v25 = vpop.f32.mrf.mxu1  ;;  %v9985_v44 = vpop.f32.mrf.mxu0 }
  0xfe   :  { %v9944_v46 = vpop.f32.mrf.mxu1  ;;  %8556 = vmatmul.mubr.msk.bf16.gmra.mxu1 %vm931_vm1, %v9206_v14  ;;  %v9995_v62 = vpop.f32.mrf.mxu0 }
  0xff   :  { %12161 = vst [vmem:[#allocation5_spill] sm:$0xff] %v9944_v46  ;;  %8563 = vmatprep.mubr.msk.bf16.mxu1 %vm2785_vm2, %v2641_v28  ;;  %v2643_v28 = vmax.bf16 %v12153_v22, %v2515_v55 }
 0x100   :  { %v9958_v54 = vpop.f32.mrf.mxu1  ;;  %v9999_v10 = vpop.f32.mrf.mxu0 }
 0x101   :  { %12162 = vst [vmem:[#allocation6_spill] sm:$0xff] %v9958_v54  ;;  %8428 = vmatmul.mubr.msk.bf16.gmra.mxu0 %vm931_vm1, %v9218_v24  ;;  %v2647_v24 = vmax.bf16 %v12153_v22, %v2519_v40 }
 0x102   :  { %v9962_v14 = vpop.f32.mrf.mxu1  ;;  %v10012_v54 = vpop.f32.mrf.mxu0 }
 0x103   :  { %12163 = vst [vmem:[#allocation7_spill] sm:$0xff] %v9962_v14 }
 0x104   :  { %v9976_v45 = vpop.f32.mrf.mxu1 }
 0x105   :  { %12164 = vst [vmem:[#allocation8_spill] sm:$0xff] %v9976_v45 }
 0x106   :  { %v9982_v55 = vpop.f32.mrf.mxu1  ;;  %8564 = vmatmul.mubr.msk.bf16.vlgmr.msra.gmra.mxu1 %vm2785_vm2, %v2642_v21  ;;  %v2645_v21 = vmax.bf16 %v12153_v22, %v2517_v6  ;;  %v10019_v6 = vpop.f32.mrf.mxu0 }
 0x107   :  { %12165 = vst [vmem:[#allocation9_spill] sm:$0xff] %v9982_v55  ;;  %8567 = vmatprep.mubr.msk.bf16.mxu1 %vm2785_vm2, %v2643_v28  ;;  %v2382_v28 = vpack.c.bf16 %v9826_v27, %v9808_v20 }
 0x108   :  { %v9993_v31 = vpop.f32.mrf.mxu1  ;;  %v10026_v27 = vpop.f32.mrf.mxu0 }
 0x109   :  { %12166 = vst [vmem:[#allocation10_spill] sm:$0xff] %v9993_v31  ;;  %v2518_v0 = vadd.bf16 %v9901_v34, %v2382_v28  ;;  %v2384_v28 = vpack.c.bf16 %v9865_v51, %v9844_v35 }
 0x10a   :  { %v9997_v17 = vpop.f32.mrf.mxu1  ;;  %v10030_v46 = vpop.f32.mrf.mxu0 }
 0x10b   :  { %12167 = vst [vmem:[#allocation11_spill] sm:$0xff] %v9997_v17  ;;  %v2646_v56 = vmax.bf16 %v12153_v22, %v2518_v0 }
 0x10c   :  { %v10010_v14 = vpop.f32.mrf.mxu1  ;;  %v10042_v17 = vpop.f32.mrf.mxu0 }
 0x10d   :  { %12168 = vst [vmem:[#allocation12_spill] sm:$0xff] %v10010_v14 }
 0x10e   :  { %v10016_v45 = vpop.f32.mrf.mxu1  ;;  %8568 = vmatmul.mubr.msk.bf16.gmra.mxu1 %vm2785_vm2, %v2644_v60  ;;  %v10049_v40 = vpop.f32.mrf.mxu0 }
 0x10f   :  { %12169 = vst [vmem:[#allocation13_spill] sm:$0xff] %v10016_v45  ;;  %8571 = vmatprep.mubr.msk.bf16.mxu1 %vm2785_vm2, %v2645_v21  ;;  %v2385_v21 = vpack.c.bf16 %v9920_v3, %v9898_v32  ;;  %v2520_v3 = vadd.bf16 %v9901_v34, %v2384_v28  ;;  %v2386_v28 = vpack.c.bf16 %v9908_v59, %v9885_v15 }
 0x110   :  { %v10024_v20 = vpop.f32.mrf.mxu1  ;;  %v10056_v51 = vpop.f32.mrf.mxu0 }
 0x111   :  { %12170 = vst [vmem:[#allocation14_spill] sm:$0xff] %v10024_v20  ;;  %v2521_v32 = vadd.bf16 %v9901_v34, %v2385_v21  ;;  %v2648_v21 = vmax.bf16 %v12153_v22, %v2520_v3 }
 0x112   :  { %v10028_v13 = vpop.f32.mrf.mxu1  ;;  %v10060_v60 = vpop.f32.mrf.mxu0 }
 0x113   :  { %12171 = vst [vmem:[#allocation15_spill] sm:$0xff] %v10028_v13  ;;  %v2649_v31 = vmax.bf16 %v12153_v22, %v2521_v32 }
 0x114   :  { %v10040_v55 = vpop.f32.mrf.mxu1  ;;  %v10072_v13 = vpop.f32.mrf.mxu0 }
 0x115   :  { %12172 = vst [vmem:[#allocation16_spill] sm:$0xff] %v10040_v55 }
 0x116   :  { %v10046_v14 = vpop.f32.mrf.mxu1  ;;  %8572 = vmatmul.mubr.msk.bf16.gmra.mxu1 %vm2785_vm2, %v2646_v56  ;;  %v10079_v32 = vpop.f32.mrf.mxu0 }
 0x117   :  { %12173 = vst [vmem:[#allocation17_spill] sm:$0xff] %v10046_v14  ;;  %8575 = vmatprep.mubr.msk.bf16.mxu1 %vm2785_vm2, %v2647_v24  ;;  %v2387_v24 = vpack.c.bf16 %v9960_v2, %v9940_v7  ;;  %v2522_v2 = vadd.bf16 %v9901_v34, %v2386_v28  ;;  %v2388_v28 = vpack.c.bf16 %v9947_v36, %v9927_v37 }
 0x118   :  { %v10054_v35 = vpop.f32.mrf.mxu1  ;;  %v10086_v59 = vpop.f32.mrf.mxu0 }
 0x119   :  { %12174 = vst [vmem:[#allocation18_spill] sm:$0xff] %v10054_v35  ;;  %v2523_v7 = vadd.bf16 %v9901_v34, %v2387_v24  ;;  %v2650_v24 = vmax.bf16 %v12153_v22, %v2522_v2 }
 0x11a   :  { %v10058_v0 = vpop.f32.mrf.mxu1  ;;  %v10090_v56 = vpop.f32.mrf.mxu0 }
 0x11b   :  { %12175 = vst [vmem:[#allocation19_spill] sm:$0xff] %v10058_v0  ;;  %v2651_v20 = vmax.bf16 %v12153_v22, %v2523_v7 }
 0x11c   :  { %v10070_v45 = vpop.f32.mrf.mxu1  ;;  %v10102_v0 = vpop.f32.mrf.mxu0 }
 0x11d   :  { %12176 = vst [vmem:[#allocation20_spill] sm:$0xff] %v10070_v45 }
 0x11e   :  { %v10076_v55 = vpop.f32.mrf.mxu1  ;;  %8576 = vmatmul.mubr.msk.bf16.gmra.mxu1 %vm2785_vm2, %v2648_v21  ;;  %v10109_v7 = vpop.f32.mrf.mxu0 }
 0x11f   :  { %12177 = vst [vmem:[#allocation21_spill] sm:$0xff] %v10076_v55  ;;  %8579 = vmatprep.mubr.msk.bf16.mxu1 %vm2785_vm2, %v2649_v31  ;;  %v2389_v31 = vpack.c.bf16 %v9995_v62, %v9978_v48  ;;  %v2524_v62 = vadd.bf16 %v9901_v34, %v2388_v28  ;;  %v2390_v28 = vpack.c.bf16 %v9985_v44, %v9964_v11 }
 0x120   :  { %v10084_v15 = vpop.f32.mrf.mxu1  ;;  %v10116_v37 = vpop.f32.mrf.mxu0 }
 0x121   :  { %12178 = vst [vmem:[#allocation22_spill] sm:$0xff] %v10084_v15  ;;  %v2525_v48 = vadd.bf16 %v9901_v34, %v2389_v31  ;;  %v2652_v31 = vmax.bf16 %v12153_v22, %v2524_v62 }
 0x122   :  { %v10088_v3 = vpop.f32.mrf.mxu1  ;;  %v10120_v21 = vpop.f32.mrf.mxu0 }
 0x123   :  { %12179 = vst [vmem:[#allocation23_spill] sm:$0xff] %v10088_v3  ;;  %v2653_v35 = vmax.bf16 %v12153_v22, %v2525_v48 }
 0x124   :  { %v10100_v14 = vpop.f32.mrf.mxu1  ;;  %v10132_v3 = vpop.f32.mrf.mxu0 }
 0x125   :  { %12180 = vst [vmem:[#allocation24_spill] sm:$0xff] %v10100_v14 }
 0x126   :  { %v10106_v45 = vpop.f32.mrf.mxu1  ;;  %8580 = vmatmul.mubr.msk.bf16.gmra.mxu1 %vm2785_vm2, %v2650_v24  ;;  %v10139_v48 = vpop.f32.mrf.mxu0 }
 0x127   :  { %12181 = vst [vmem:[#allocation25_spill] sm:$0xff] %v10106_v45  ;;  %8583 = vmatprep.mubr.msk.bf16.mxu1 %vm2785_vm2, %v2651_v20  ;;  %v2391_v20 = vpack.c.bf16 %v10026_v27, %v10012_v54  ;;  %v2526_v27 = vadd.bf16 %v9901_v34, %v2390_v28  ;;  %v2392_v28 = vpack.c.bf16 %v10019_v6, %v9999_v10 }
 0x128   :  { %v10114_v36 = vpop.f32.mrf.mxu1  ;;  %v10146_v44 = vpop.f32.mrf.mxu0 }
 0x129   :  { %12182 = vst [vmem:[#allocation26_spill] sm:$0xff] %v10114_v36  ;;  %v2527_v54 = vadd.bf16 %v9901_v34, %v2391_v20  ;;  %v2654_v20 = vmax.bf16 %v12153_v22, %v2526_v27 }
 0x12a   :  { %v10118_v2 = vpop.f32.mrf.mxu1  ;;  %v10150_v24 = vpop.f32.mrf.mxu0 }
 0x12b   :  { %12183 = vst [vmem:[#allocation27_spill] sm:$0xff] %v10118_v2  ;;  %v2655_v15 = vmax.bf16 %v12153_v22, %v2527_v54 }
 0x12c   :  { %v10130_v55 = vpop.f32.mrf.mxu1  ;;  %v10162_v2 = vpop.f32.mrf.mxu0 }
 0x12d   :  { %12184 = vst [vmem:[#allocation28_spill] sm:$0xff] %v10130_v55 }
 0x12e   :  { %v10136_v14 = vpop.f32.mrf.mxu1  ;;  %8584 = vmatmul.mubr.msk.bf16.gmra.mxu1 %vm2785_vm2, %v2652_v31  ;;  %v10169_v54 = vpop.f32.mrf.mxu0 }
 0x12f   :  { %12185 = vst [vmem:[#allocation29_spill] sm:$0xff] %v10136_v14  ;;  %8587 = vmatprep.mubr.msk.bf16.mxu1 %vm2785_vm2, %v2653_v35  ;;  %v2393_v35 = vpack.c.bf16 %v10056_v51, %v10042_v17  ;;  %v2528_v51 = vadd.bf16 %v9901_v34, %v2392_v28  ;;  %v2394_v28 = vpack.c.bf16 %v10049_v40, %v10030_v46 }
 0x130   :  { %v10144_v11 = vpop.f32.mrf.mxu1  ;;  %v10176_v6 = vpop.f32.mrf.mxu0 }
 0x131   :  { %12186 = vst [vmem:[#allocation30_spill] sm:$0xff] %v10144_v11  ;;  %v2529_v17 = vadd.bf16 %v9901_v34, %v2393_v35  ;;  %v2656_v35 = vmax.bf16 %v12153_v22, %v2528_v51 }
 0x132   :  { %v10148_v62 = vpop.f32.mrf.mxu1  ;;  %v10180_v31 = vpop.f32.mrf.mxu0 }
 0x133   :  { %12187 = vst [vmem:[#allocation31_spill] sm:$0xff] %v10148_v62  ;;  %v2657_v36 = vmax.bf16 %v12153_v22, %v2529_v17 }
 0x134   :  { %v10160_v45 = vpop.f32.mrf.mxu1  ;;  %v10192_v62 = vpop.f32.mrf.mxu0 }
 0x135   :  { %12188 = vst [vmem:[#allocation32_spill] sm:$0xff] %v10160_v45 }
 0x136   :  { %v10166_v55 = vpop.f32.mrf.mxu1  ;;  %8588 = vmatmul.mubr.msk.bf16.gmra.mxu1 %vm2785_vm2, %v2654_v20  ;;  %v10199_v17 = vpop.f32.mrf.mxu0 }
 0x137   :  { %12189 = vst [vmem:[#allocation33_spill] sm:$0xff] %v10166_v55  ;;  %8591 = vmatprep.mubr.msk.bf16.mxu1 %vm2785_vm2, %v2655_v15  ;;  %v2395_v15 = vpack.c.bf16 %v10086_v59, %v10072_v13  ;;  %v2530_v59 = vadd.bf16 %v9901_v34, %v2394_v28  ;;  %v2396_v28 = vpack.c.bf16 %v10079_v32, %v10060_v60 }
 0x138   :  { %v10174_v10 = vpop.f32.mrf.mxu1  ;;  %v10206_v40 = vpop.f32.mrf.mxu0 }
 0x139   :  { %12190 = vst [vmem:[#allocation34_spill] sm:$0xff] %v10174_v10  ;;  %v2531_v13 = vadd.bf16 %v9901_v34, %v2395_v15  ;;  %v2658_v15 = vmax.bf16 %v12153_v22, %v2530_v59 }
 0x13a   :  { %v10178_v27 = vpop.f32.mrf.mxu1  ;;  %v10210_v20 = vpop.f32.mrf.mxu0 }
 0x13b   :  { %12191 = vst [vmem:[#allocation35_spill] sm:$0xff] %v10178_v27  ;;  %v2659_v11 = vmax.bf16 %v12153_v22, %v2531_v13 }
 0x13c   :  { %v10190_v14 = vpop.f32.mrf.mxu1  ;;  %v10222_v27 = vpop.f32.mrf.mxu0 }
 0x13d   :  { %12192 = vst [vmem:[#allocation36_spill] sm:$0xff] %v10190_v14 }
 0x13e   :  { %v10196_v45 = vpop.f32.mrf.mxu1  ;;  %8592 = vmatmul.mubr.msk.bf16.gmra.mxu1 %vm2785_vm2, %v2656_v35  ;;  %v10229_v13 = vpop.f32.mrf.mxu0 }
 0x13f   :  { %12193 = vst [vmem:[#allocation37_spill] sm:$0xff] %v10196_v45  ;;  %8595 = vmatprep.mubr.msk.bf16.mxu1 %vm2785_vm2, %v2657_v36  ;;  %v2397_v36 = vpack.c.bf16 %v10116_v37, %v10102_v0  ;;  %v2532_v37 = vadd.bf16 %v9901_v34, %v2396_v28  ;;  %v2398_v28 = vpack.c.bf16 %v10109_v7, %v10090_v56 }
 0x140   :  { %v10204_v46 = vpop.f32.mrf.mxu1  ;;  %v10236_v32 = vpop.f32.mrf.mxu0 }
 0x141   :  { %12194 = vst [vmem:[#allocation38_spill] sm:$0xff] %v10204_v46  ;;  %v2533_v0 = vadd.bf16 %v9901_v34, %v2397_v36  ;;  %v2660_v36 = vmax.bf16 %v12153_v22, %v2532_v37 }
 0x142   :  { %v10208_v51 = vpop.f32.mrf.mxu1  ;;  %v10240_v35 = vpop.f32.mrf.mxu0 }
 0x143   :  { %12195 = vst [vmem:[#allocation39_spill] sm:$0xff] %v10208_v51  ;;  %v2661_v10 = vmax.bf16 %v12153_v22, %v2533_v0 }
 0x144   :  { %v10220_v55 = vpop.f32.mrf.mxu1  ;;  %v10252_v51 = vpop.f32.mrf.mxu0 }
 0x145   :  { %12196 = vst [vmem:[#allocation40_spill] sm:$0xff] %v10220_v55 }
 0x146   :  { %v10226_v14 = vpop.f32.mrf.mxu1  ;;  %8596 = vmatmul.mubr.msk.bf16.gmra.mxu1 %vm2785_vm2, %v2658_v15  ;;  %v10259_v0 = vpop.f32.mrf.mxu0 }
 0x147   :  { %12197 = vst [vmem:[#allocation41_spill] sm:$0xff] %v10226_v14  ;;  %8599 = vmatprep.mubr.msk.bf16.mxu1 %vm2785_vm2, %v2659_v11  ;;  %v2399_v11 = vpack.c.bf16 %v10146_v44, %v10132_v3  ;;  %v2534_v44 = vadd.bf16 %v9901_v34, %v2398_v28  ;;  %v2400_v28 = vpack.c.bf16 %v10139_v48, %v10120_v21 }
 0x148   :  { %v10234_v60 = vpop.f32.mrf.mxu1  ;;  %v10266_v7 = vpop.f32.mrf.mxu0 }
 0x149   :  { %12198 = vst [vmem:[#allocation42_spill] sm:$0xff] %v10234_v60  ;;  %v2535_v3 = vadd.bf16 %v9901_v34, %v2399_v11  ;;  %v2662_v11 = vmax.bf16 %v12153_v22, %v2534_v44 }
 0x14a   :  { %v10238_v59 = vpop.f32.mrf.mxu1  ;;  %v10270_v15 = vpop.f32.mrf.mxu0 }
 0x14b   :  { %12199 = vst [vmem:[#allocation43_spill] sm:$0xff] %v10238_v59  ;;  %v2663_v46 = vmax.bf16 %v12153_v22, %v2535_v3 }
 0x14c   :  { %v10250_v45 = vpop.f32.mrf.mxu1  ;;  %v10282_v59 = vpop.f32.mrf.mxu0 }
 0x14d   :  { %12200 = vst [vmem:[#allocation44_spill] sm:$0xff] %v10250_v45 }
 0x14e   :  { %v10256_v55 = vpop.f32.mrf.mxu1  ;;  %8600 = vmatmul.mubr.msk.bf16.gmra.mxu1 %vm2785_vm2, %v2660_v36  ;;  %v10289_v3 = vpop.f32.mrf.mxu0 }
 0x14f   :  { %12201 = vst [vmem:[#allocation45_spill] sm:$0xff] %v10256_v55  ;;  %8603 = vmatprep.mubr.msk.bf16.mxu1 %vm2785_vm2, %v2661_v10  ;;  %v2401_v10 = vpack.c.bf16 %v10176_v6, %v10162_v2  ;;  %v2536_v6 = vadd.bf16 %v9901_v34, %v2400_v28  ;;  %v2402_v28 = vpack.c.bf16 %v10169_v54, %v10150_v24 }
 0x150   :  { %v10264_v56 = vpop.f32.mrf.mxu1  ;;  %v10296_v48 = vpop.f32.mrf.mxu0 }
 0x151   :  { %12202 = vst [vmem:[#allocation46_spill] sm:$0xff] %v10264_v56  ;;  %v2537_v2 = vadd.bf16 %v9901_v34, %v2401_v10  ;;  %v2664_v10 = vmax.bf16 %v12153_v22, %v2536_v6 }
 0x152   :  { %v10268_v37 = vpop.f32.mrf.mxu1  ;;  %v10300_v36 = vpop.f32.mrf.mxu0 }
 0x153   :  { %12203 = vst [vmem:[#allocation47_spill] sm:$0xff] %v10268_v37  ;;  %v2665_v60 = vmax.bf16 %v12153_v22, %v2537_v2 }
 0x154   :  { %v10280_v14 = vpop.f32.mrf.mxu1  ;;  %v10312_v37 = vpop.f32.mrf.mxu0 }
 0x155   :  { %12204 = vst [vmem:[#allocation48_spill] sm:$0xff] %v10280_v14 }
 0x156   :  { %v10286_v45 = vpop.f32.mrf.mxu1  ;;  %8604 = vmatmul.mubr.msk.bf16.gmra.mxu1 %vm2785_vm2, %v2662_v11  ;;  %v10319_v2 = vpop.f32.mrf.mxu0 }
 0x157   :  { %12205 = vst [vmem:[#allocation49_spill] sm:$0xff] %v10286_v45  ;;  %8607 = vmatprep.mubr.msk.bf16.mxu1 %vm2785_vm2, %v2663_v46  ;;  %v2403_v46 = vpack.c.bf16 %v10206_v40, %v10192_v62  ;;  %v2538_v40 = vadd.bf16 %v9901_v34, %v2402_v28  ;;  %v2404_v28 = vpack.c.bf16 %v10199_v17, %v10180_v31 }
 0x158   :  { %v10294_v21 = vpop.f32.mrf.mxu1  ;;  %v10326_v54 = vpop.f32.mrf.mxu0 }
 0x159   :  { %12206 = vst [vmem:[#allocation50_spill] sm:$0xff] %v10294_v21  ;;  %v2539_v62 = vadd.bf16 %v9901_v34, %v2403_v46  ;;  %v2666_v46 = vmax.bf16 %v12153_v22, %v2538_v40 }
 0x15a   :  { %v10298_v44 = vpop.f32.mrf.mxu1  ;;  %v10330_v11 = vpop.f32.mrf.mxu0 }
 0x15b   :  { %12207 = vst [vmem:[#allocation51_spill] sm:$0xff] %v10298_v44  ;;  %v2667_v56 = vmax.bf16 %v12153_v22, %v2539_v62 }
 0x15c   :  { %v10310_v55 = vpop.f32.mrf.mxu1  ;;  %v10342_v44 = vpop.f32.mrf.mxu0 }
 0x15d   :  { %12208 = vst [vmem:[#allocation52_spill] sm:$0xff] %v10310_v55 }
 0x15e   :  { %v10316_v14 = vpop.f32.mrf.mxu1  ;;  %8608 = vmatmul.mubr.msk.bf16.gmra.mxu1 %vm2785_vm2, %v2664_v10  ;;  %v10349_v62 = vpop.f32.mrf.mxu0 }
 0x15f   :  { %12209 = vst [vmem:[#allocation53_spill] sm:$0xff] %v10316_v14  ;;  %8611 = vmatprep.mubr.msk.bf16.mxu1 %vm2785_vm2, %v2665_v60  ;;  %v2405_v60 = vpack.c.bf16 %v10236_v32, %v10222_v27  ;;  %v2540_v32 = vadd.bf16 %v9901_v34, %v2404_v28  ;;  %v2406_v28 = vpack.c.bf16 %v10229_v13, %v10210_v20 }
 0x160   :  { %v10324_v24 = vpop.f32.mrf.mxu1  ;;  %v10356_v17 = vpop.f32.mrf.mxu0 }
 0x161   :  { %12210 = vst [vmem:[#allocation54_spill] sm:$0xff] %v10324_v24  ;;  %v2541_v27 = vadd.bf16 %v9901_v34, %v2405_v60  ;;  %v2668_v60 = vmax.bf16 %v12153_v22, %v2540_v32 }
 0x162   :  { %v10328_v6 = vpop.f32.mrf.mxu1  ;;  %v10360_v10 = vpop.f32.mrf.mxu0 }
 0x163   :  { %12211 = vst [vmem:[#allocation55_spill] sm:$0xff] %v10328_v6  ;;  %v2669_v21 = vmax.bf16 %v12153_v22, %v2541_v27 }
 0x164   :  { %v10340_v45 = vpop.f32.mrf.mxu1  ;;  %v10372_v6 = vpop.f32.mrf.mxu0 }
 0x165   :  { %12212 = vst [vmem:[#allocation56_spill] sm:$0xff] %v10340_v45 }
 0x166   :  { %v10346_v55 = vpop.f32.mrf.mxu1  ;;  %8612 = vmatmul.mubr.msk.bf16.gmra.mxu1 %vm2785_vm2, %v2666_v46  ;;  %v10379_v27 = vpop.f32.mrf.mxu0 }
 0x167   :  { %12213 = vst [vmem:[#allocation57_spill] sm:$0xff] %v10346_v55  ;;  %8615 = vmatprep.mubr.msk.bf16.mxu1 %vm2785_vm2, %v2667_v56  ;;  %v2407_v56 = vpack.c.bf16 %v10266_v7, %v10252_v51  ;;  %v2542_v7 = vadd.bf16 %v9901_v34, %v2406_v28  ;;  %v2408_v28 = vpack.c.bf16 %v10259_v0, %v10240_v35 }
 0x168   :  { %v10354_v31 = vpop.f32.mrf.mxu1  ;;  %v10386_v13 = vpop.f32.mrf.mxu0 }
 0x169   :  { %12214 = vst [vmem:[#allocation58_spill] sm:$0xff] %v10354_v31  ;;  %v2543_v51 = vadd.bf16 %v9901_v34, %v2407_v56  ;;  %v2670_v56 = vmax.bf16 %v12153_v22, %v2542_v7 }
 0x16a   :  { %v10358_v40 = vpop.f32.mrf.mxu1  ;;  %v10390_v46 = vpop.f32.mrf.mxu0 }
 0x16b   :  { %12215 = vst [vmem:[#allocation59_spill] sm:$0xff] %v10358_v40  ;;  %v2671_v24 = vmax.bf16 %v12153_v22, %v2543_v51 }
 0x16c   :  { %v10370_v14 = vpop.f32.mrf.mxu1  ;;  %v10402_v40 = vpop.f32.mrf.mxu0 }
 0x16d   :  { %12216 = vst [vmem:[#allocation60_spill] sm:$0xff] %v10370_v14 }
 0x16e   :  { %v10376_v45 = vpop.f32.mrf.mxu1  ;;  %8616 = vmatmul.mubr.msk.bf16.gmra.mxu1 %vm2785_vm2, %v2668_v60  ;;  %v10409_v51 = vpop.f32.mrf.mxu0 }
 0x16f   :  { %12217 = vst [vmem:[#allocation61_spill] sm:$0xff] %v10376_v45  ;;  %8619 = vmatprep.mubr.msk.bf16.mxu1 %vm2785_vm2, %v2669_v21  ;;  %v2409_v21 = vpack.c.bf16 %v10296_v48, %v10282_v59  ;;  %v2544_v48 = vadd.bf16 %v9901_v34, %v2408_v28  ;;  %v2410_v28 = vpack.c.bf16 %v10289_v3, %v10270_v15 }
 0x170   :  { %v10384_v20 = vpop.f32.mrf.mxu1  ;;  %v10416_v0 = vpop.f32.mrf.mxu0 }
 0x171   :  { %12218 = vst [vmem:[#allocation62_spill] sm:$0xff] %v10384_v20  ;;  %v2545_v59 = vadd.bf16 %v9901_v34, %v2409_v21  ;;  %v2672_v21 = vmax.bf16 %v12153_v22, %v2544_v48 }
 0x172   :  { %v10388_v32 = vpop.f32.mrf.mxu1  ;;  %v10420_v60 = vpop.f32.mrf.mxu0 }
 0x173   :  { %12219 = vst [vmem:[#allocation63_spill] sm:$0xff] %v10388_v32  ;;  %v2673_v31 = vmax.bf16 %v12153_v22, %v2545_v59 }
 0x174   :  { %v10400_v55 = vpop.f32.mrf.mxu1  ;;  %v10432_v32 = vpop.f32.mrf.mxu0 }
 0x175   :  { %12220 = vst [vmem:[#allocation64_spill] sm:$0xff] %v10400_v55 }
 0x176   :  { %v10406_v14 = vpop.f32.mrf.mxu1  ;;  %8620 = vmatmul.mubr.msk.bf16.gmra.mxu1 %vm2785_vm2, %v2670_v56  ;;  %v10439_v59 = vpop.f32.mrf.mxu0 }
 0x177   :  { %12221 = vst [vmem:[#allocation65_spill] sm:$0xff] %v10406_v14  ;;  %8623 = vmatprep.mubr.msk.bf16.mxu1 %vm2785_vm2, %v2671_v24  ;;  %v2411_v24 = vpack.c.bf16 %v10326_v54, %v10312_v37  ;;  %v2546_v54 = vadd.bf16 %v9901_v34, %v2410_v28  ;;  %v2412_v28 = vpack.c.bf16 %v10319_v2, %v10300_v36 }
 0x178   :  { %v10414_v35 = vpop.f32.mrf.mxu1  ;;  %v10446_v3 = vpop.f32.mrf.mxu0 }
 0x179   :  { %12222 = vst [vmem:[#allocation66_spill] sm:$0xff] %v10414_v35  ;;  %v2547_v37 = vadd.bf16 %v9901_v34, %v2411_v24  ;;  %v2674_v24 = vmax.bf16 %v12153_v22, %v2546_v54 }
 0x17a   :  { %v10418_v7 = vpop.f32.mrf.mxu1  ;;  %v10450_v56 = vpop.f32.mrf.mxu0 }
 0x17b   :  { %12223 = vst [vmem:[#allocation67_spill] sm:$0xff] %v10418_v7  ;;  %v2675_v20 = vmax.bf16 %v12153_v22, %v2547_v37 }
 0x17c   :  { %v10430_v45 = vpop.f32.mrf.mxu1  ;;  %v10462_v7 = vpop.f32.mrf.mxu0 }
 0x17d   :  { %12224 = vst [vmem:[#allocation68_spill] sm:$0xff] %v10430_v45 }
 0x17e   :  { %v10436_v55 = vpop.f32.mrf.mxu1  ;;  %8624 = vmatmul.mubr.msk.bf16.gmra.mxu1 %vm2785_vm2, %v2672_v21  ;;  %v10469_v37 = vpop.f32.mrf.mxu0 }
 0x17f   :  { %12225 = vst [vmem:[#allocation69_spill] sm:$0xff] %v10436_v55  ;;  %8627 = vmatprep.mubr.msk.bf16.mxu1 %vm2785_vm2, %v2673_v31  ;;  %v2413_v31 = vpack.c.bf16 %v10356_v17, %v10342_v44  ;;  %v2548_v17 = vadd.bf16 %v9901_v34, %v2412_v28  ;;  %v2414_v28 = vpack.c.bf16 %v10349_v62, %v10330_v11 }
 0x180   :  { %v10444_v15 = vpop.f32.mrf.mxu1  ;;  %v10476_v2 = vpop.f32.mrf.mxu0 }
 0x181   :  { %12226 = vst [vmem:[#allocation70_spill] sm:$0xff] %v10444_v15  ;;  %v2549_v44 = vadd.bf16 %v9901_v34, %v2413_v31  ;;  %v2676_v31 = vmax.bf16 %v12153_v22, %v2548_v17 }
 0x182   :  { %v10448_v48 = vpop.f32.mrf.mxu1  ;;  %v10480_v21 = vpop.f32.mrf.mxu0 }
 0x183   :  { %12227 = vst [vmem:[#allocation71_spill] sm:$0xff] %v10448_v48  ;;  %v2677_v35 = vmax.bf16 %v12153_v22, %v2549_v44 }
 0x184   :  { %v10460_v14 = vpop.f32.mrf.mxu1  ;;  %v10492_v48 = vpop.f32.mrf.mxu0 }
 0x185   :  { %12228 = vst [vmem:[#allocation72_spill] sm:$0xff] %v10460_v14 }
 0x186   :  { %v10466_v45 = vpop.f32.mrf.mxu1  ;;  %8628 = vmatmul.mubr.msk.bf16.gmra.mxu1 %vm2785_vm2, %v2674_v24  ;;  %v10499_v44 = vpop.f32.mrf.mxu0 }
 0x187   :  { %12229 = vst [vmem:[#allocation73_spill] sm:$0xff] %v10466_v45  ;;  %8631 = vmatprep.mubr.msk.bf16.mxu1 %vm2785_vm2, %v2675_v20  ;;  %v2415_v20 = vpack.c.bf16 %v10386_v13, %v10372_v6  ;;  %v2550_v13 = vadd.bf16 %v9901_v34, %v2414_v28  ;;  %v2416_v28 = vpack.c.bf16 %v10379_v27, %v10360_v10 }
 0x188   :  { %v10474_v36 = vpop.f32.mrf.mxu1  ;;  %v10506_v62 = vpop.f32.mrf.mxu0 }
 0x189   :  { %12230 = vst [vmem:[#allocation74_spill] sm:$0xff] %v10474_v36  ;;  %v2551_v6 = vadd.bf16 %v9901_v34, %v2415_v20  ;;  %v2678_v20 = vmax.bf16 %v12153_v22, %v2550_v13 }
 0x18a   :  { %v10478_v54 = vpop.f32.mrf.mxu1  ;;  %v10510_v24 = vpop.f32.mrf.mxu0 }
 0x18b   :  { %12231 = vst [vmem:[#allocation75_spill] sm:$0xff] %v10478_v54  ;;  %v2679_v15 = vmax.bf16 %v12153_v22, %v2551_v6 }
 0x18c   :  { %v10490_v55 = vpop.f32.mrf.mxu1  ;;  %v10522_v54 = vpop.f32.mrf.mxu0 }
 0x18d   :  { %12232 = vst [vmem:[#allocation76_spill] sm:$0xff] %v10490_v55 }
 0x18e   :  { %v10496_v14 = vpop.f32.mrf.mxu1  ;;  %8632 = vmatmul.mubr.msk.bf16.gmra.mxu1 %vm2785_vm2, %v2676_v31  ;;  %v10529_v6 = vpop.f32.mrf.mxu0 }
 0x18f   :  { %12233 = vst [vmem:[#allocation77_spill] sm:$0xff] %v10496_v14  ;;  %8635 = vmatprep.mubr.msk.bf16.mxu1 %vm2785_vm2, %v2677_v35  ;;  %v2417_v35 = vpack.c.bf16 %v10416_v0, %v10402_v40  ;;  %v2552_v0 = vadd.bf16 %v9901_v34, %v2416_v28  ;;  %v2418_v28 = vpack.c.bf16 %v10409_v51, %v10390_v46 }
 0x190   :  { %v10504_v11 = vpop.f32.mrf.mxu1  ;;  %v10536_v27 = vpop.f32.mrf.mxu0 }
 0x191   :  { %12234 = vst [vmem:[#allocation78_spill] sm:$0xff] %v10504_v11  ;;  %v2553_v40 = vadd.bf16 %v9901_v34, %v2417_v35  ;;  %v2680_v35 = vmax.bf16 %v12153_v22, %v2552_v0 }
 0x192   :  { %v10508_v17 = vpop.f32.mrf.mxu1  ;;  %v10540_v31 = vpop.f32.mrf.mxu0 }
 0x193   :  { %12235 = vst [vmem:[#allocation79_spill] sm:$0xff] %v10508_v17  ;;  %v2681_v36 = vmax.bf16 %v12153_v22, %v2553_v40 }
 0x194   :  { %v10520_v45 = vpop.f32.mrf.mxu1  ;;  %v10552_v17 = vpop.f32.mrf.mxu0 }
 0x195   :  { %12236 = vst [vmem:[#allocation80_spill] sm:$0xff] %v10520_v45 }
 0x196   :  { %v10526_v55 = vpop.f32.mrf.mxu1  ;;  %8636 = vmatmul.mubr.msk.bf16.gmra.mxu1 %vm2785_vm2, %v2678_v20  ;;  %v10559_v40 = vpop.f32.mrf.mxu0 }
 0x197   :  { %12237 = vst [vmem:[#allocation81_spill] sm:$0xff] %v10526_v55  ;;  %8639 = vmatprep.mubr.msk.bf16.mxu1 %vm2785_vm2, %v2679_v15  ;;  %v2419_v15 = vpack.c.bf16 %v10446_v3, %v10432_v32  ;;  %v2554_v3 = vadd.bf16 %v9901_v34, %v2418_v28  ;;  %v2420_v28 = vpack.c.bf16 %v10439_v59, %v10420_v60 }
 0x198   :  { %v10534_v10 = vpop.f32.mrf.mxu1  ;;  %v10566_v51 = vpop.f32.mrf.mxu0 }
 0x199   :  { %12238 = vst [vmem:[#allocation82_spill] sm:$0xff] %v10534_v10  ;;  %v2555_v32 = vadd.bf16 %v9901_v34, %v2419_v15  ;;  %v2682_v15 = vmax.bf16 %v12153_v22, %v2554_v3 }
 0x19a   :  { %v10538_v13 = vpop.f32.mrf.mxu1  ;;  %v10570_v20 = vpop.f32.mrf.mxu0 }
 0x19b   :  { %12239 = vst [vmem:[#allocation83_spill] sm:$0xff] %v10538_v13  ;;  %v2683_v11 = vmax.bf16 %v12153_v22, %v2555_v32 }
 0x19c   :  { %v10550_v14 = vpop.f32.mrf.mxu1  ;;  %v10582_v13 = vpop.f32.mrf.mxu0 }
 0x19d   :  { %12240 = vst [vmem:[#allocation84_spill] sm:$0xff] %v10550_v14 }
 0x19e   :  { %v10556_v45 = vpop.f32.mrf.mxu1  ;;  %8640 = vmatmul.mubr.msk.bf16.gmra.mxu1 %vm2785_vm2, %v2680_v35  ;;  %v10589_v32 = vpop.f32.mrf.mxu0 }
 0x19f   :  { %12241 = vst [vmem:[#allocation85_spill] sm:$0xff] %v10556_v45  ;;  %8643 = vmatprep.mubr.msk.bf16.mxu1 %vm2785_vm2, %v2681_v36  ;;  %v2421_v36 = vpack.c.bf16 %v10476_v2, %v10462_v7  ;;  %v2556_v2 = vadd.bf16 %v9901_v34, %v2420_v28  ;;  %v2422_v28 = vpack.c.bf16 %v10469_v37, %v10450_v56 }
 0x1a0   :  { %v10564_v46 = vpop.f32.mrf.mxu1  ;;  %v10596_v59 = vpop.f32.mrf.mxu0 }
 0x1a1   :  { %12242 = vst [vmem:[#allocation86_spill] sm:$0xff] %v10564_v46  ;;  %v2557_v7 = vadd.bf16 %v9901_v34, %v2421_v36  ;;  %v2684_v36 = vmax.bf16 %v12153_v22, %v2556_v2 }
 0x1a2   :  { %v10568_v0 = vpop.f32.mrf.mxu1  ;;  %v10600_v35 = vpop.f32.mrf.mxu0 }
 0x1a3   :  { %12243 = vst [vmem:[#allocation87_spill] sm:$0xff] %v10568_v0  ;;  %v2685_v10 = vmax.bf16 %v12153_v22, %v2557_v7 }
 0x1a4   :  { %v10580_v55 = vpop.f32.mrf.mxu1  ;;  %v10612_v0 = vpop.f32.mrf.mxu0 }
 0x1a5   :  { %12244 = vst [vmem:[#allocation88_spill] sm:$0xff] %v10580_v55 }
 0x1a6   :  { %v10586_v14 = vpop.f32.mrf.mxu1  ;;  %8644 = vmatmul.mubr.msk.bf16.gmra.mxu1 %vm2785_vm2, %v2682_v15  ;;  %v10619_v7 = vpop.f32.mrf.mxu0 }
 0x1a7   :  { %12245 = vst [vmem:[#allocation89_spill] sm:$0xff] %v10586_v14  ;;  %8647 = vmatprep.mubr.msk.bf16.mxu1 %vm2785_vm2, %v2683_v11  ;;  %v2423_v11 = vpack.c.bf16 %v10506_v62, %v10492_v48  ;;  %v2558_v62 = vadd.bf16 %v9901_v34, %v2422_v28  ;;  %v2424_v28 = vpack.c.bf16 %v10499_v44, %v10480_v21 }
 0x1a8   :  { %v10594_v60 = vpop.f32.mrf.mxu1  ;;  %v10626_v37 = vpop.f32.mrf.mxu0 }
 0x1a9   :  { %12246 = vst [vmem:[#allocation90_spill] sm:$0xff] %v10594_v60  ;;  %v2559_v48 = vadd.bf16 %v9901_v34, %v2423_v11  ;;  %v2686_v11 = vmax.bf16 %v12153_v22, %v2558_v62 }
 0x1aa   :  { %v10598_v3 = vpop.f32.mrf.mxu1  ;;  %v10630_v15 = vpop.f32.mrf.mxu0 }
 0x1ab   :  { %12247 = vst [vmem:[#allocation91_spill] sm:$0xff] %v10598_v3  ;;  %v2687_v46 = vmax.bf16 %v12153_v22, %v2559_v48 }
 0x1ac   :  { %v10610_v45 = vpop.f32.mrf.mxu1  ;;  %v10642_v3 = vpop.f32.mrf.mxu0 }
 0x1ad   :  { %12248 = vst [vmem:[#allocation92_spill] sm:$0xff] %v10610_v45 }
 0x1ae   :  { %v10616_v55 = vpop.f32.mrf.mxu1  ;;  %8648 = vmatmul.mubr.msk.bf16.gmra.mxu1 %vm2785_vm2, %v2684_v36  ;;  %v10649_v48 = vpop.f32.mrf.mxu0 }
 0x1af   :  { %12249 = vst [vmem:[#allocation93_spill] sm:$0xff] %v10616_v55  ;;  %8651 = vmatprep.mubr.msk.bf16.mxu1 %vm2785_vm2, %v2685_v10  ;;  %v2425_v10 = vpack.c.bf16 %v10536_v27, %v10522_v54  ;;  %v2560_v27 = vadd.bf16 %v9901_v34, %v2424_v28 }
 0x1b0   :  { %v10624_v56 = vpop.f32.mrf.mxu1  ;;  %v10656_v44 = vpop.f32.mrf.mxu0 }
 0x1b1   :  { %12250 = vst [vmem:[#allocation94_spill] sm:$0xff] %v10624_v56  ;;  %v2561_v54 = vadd.bf16 %v9901_v34, %v2425_v10  ;;  %v2426_v10 = vpack.c.bf16 %v10529_v6, %v10510_v24 }
 0x1b2   :  { %v10628_v2 = vpop.f32.mrf.mxu1  ;;  %v10670_v55 = vpop.f32.mrf.mxu0 }
 0x1b3   :  { %12251 = vst [vmem:[#allocation95_spill] sm:$0xff] %v10628_v2  ;;  %v2689_v36 = vmax.bf16 %v12153_v22, %v2561_v54 }
 0x1b4   :  { %v10640_v14 = vpop.f32.mrf.mxu1  ;;  %v10682_v24 = vpop.f32.mrf.mxu0 }
 0x1b6   :  { %v10646_v45 = vpop.f32.mrf.mxu1  ;;  %8652 = vmatmul.mubr.msk.bf16.gmra.mxu1 %vm2785_vm2, %v2686_v11  ;;  %v2427_v11 = vpack.c.bf16 %v10566_v51, %v10552_v17  ;;  %v2562_v51 = vadd.bf16 %v9901_v34, %v2426_v10  ;;  %v2428_v10 = vpack.c.bf16 %v10559_v40, %v10540_v31 }
 0x1b7   :  { %12252 = vst [vmem:[#allocation96_spill] sm:$0xff] %v10646_v45  ;;  %8655 = vmatprep.mubr.msk.bf16.mxu1 %vm2785_vm2, %v2687_v46  ;;  %v2688_v46 = vmax.bf16 %v12153_v22, %v2560_v27  ;;  %v10699_v45 = vpop.f32.mrf.mxu0 }
 0x1b8   :  { %v10654_v21 = vpop.f32.mrf.mxu1  ;;  %v2563_v17 = vadd.bf16 %v9901_v34, %v2427_v11  ;;  %v2690_v11 = vmax.bf16 %v12153_v22, %v2562_v51  ;;  %v2564_v51 = vadd.bf16 %v9901_v34, %v2428_v10 }
 0x1b9   :  { %12253 = vst [vmem:[#allocation97_spill] sm:$0xff] %v10654_v21 }
 0x1ba   :  { %v10658_v62 = vpop.f32.mrf.mxu1  ;;  %v2691_v27 = vmax.bf16 %v12153_v22, %v2563_v17  ;;  %v2431_v17 = vpack.c.bf16 %v10626_v37, %v10612_v0 }
 0x1bb   :  { %12254 = vst [vmem:[#allocation98_spill] sm:$0xff] %v10658_v62 }
 0x1bc   :  { %v10668_v28 = vpop.f32.mrf.mxu1  ;;  %v2567_v0 = vadd.bf16 %v9901_v34, %v2431_v17 }
 0x1be   :  { %v10674_v56 = vpop.f32.mrf.mxu1  ;;  %8656 = vmatmul.mubr.msk.bf16.gmra.mxu1 %vm2785_vm2, %v2688_v46  ;;  %v2429_v46 = vpack.c.bf16 %v10596_v59, %v10582_v13 }
 0x1bf   :  { %12255 = vst [vmem:[#allocation99_spill] sm:$0xff] %v10674_v56  ;;  %8659 = vmatprep.mubr.msk.bf16.mxu1 %vm2785_vm2, %v2689_v36  ;;  %v4355_v36 = vld [vmem:[%s12057_s4] sm:$0x1]  ;;  %v1821_v56 = vpop.f32.mrf.mxu0 }
 0x1c0   :  { %v10680_v54 = vpop.f32.mrf.mxu1  ;;  %v4357_v13 = vpack.i.b16 %v4355_v36, %v4355_v36  ;;  %v2565_v59 = vadd.bf16 %v9901_v34, %v2429_v46 }
 0x1c1   :  { %12256 = vst [vmem:[#allocation100_spill] sm:$0xff] %v10680_v54 }
 0x1c2   :  { %v10684_v6 = vpop.f32.mrf.mxu1  ;;  %v10708_v40 = vrot.slane %v4357_v13, %v9878_v5 }
 0x1c3   :  { %12257 = vst [vmem:[#allocation101_spill] sm:$0xff] %v10684_v6  ;;  %v12259_v6 = vmov 0  }
 0x1c4   :  { %v10697_v2 = vpop.f32.mrf.mxu1  ;;  %v2693_v62 = vmax.bf16 %v12259_v6, %v2565_v59  ;;  %v2692_v36 = vmax.bf16 %v12259_v6, %v2564_v51 }
 0x1c5   :  { %12258 = vst [vmem:[#allocation102_spill] sm:$0xff] %v10697_v2 }
 0x1c6   :  { %v8565_v60 = vpop.f32.mrf.mxu1  ;;  %8660 = vmatmul.mubr.msk.bf16.gmra.mxu1 %vm2785_vm2, %v2690_v11  ;;  %v10716_v11 = vpop.f32.mrf.mxu0 }
 0x1c7   :  { %8663 = vmatprep.mubr.msk.bf16.mxu1 %vm2785_vm2, %v2691_v27  ;;  %v2430_v27 = vpack.c.bf16 %v10589_v32, %v10570_v20 }
 0x1c8   :  { %v3204_v22 = vpop.f32.mrf.mxu1  ;;  %v10724_v59 = vpop.f32.mrf.mxu0 }
 0x1ca   :  { %v8566_v31 = vpop.f32.mrf.mxu1 }
 0x1cb   :  { %v4228_v21 = vpack.c.bf16 %v8566_v31, %v8565_v60  ;;  %v2566_v60 = vadd.bf16 %v9901_v34, %v2430_v27  ;;  %v2432_v31 = vpack.c.bf16 %v10619_v7, %v10600_v35  ;;  %v10736_v27 = vpop.f32.mrf.mxu0 }
 0x1cc   :  { %v3207_v46 = vpop.f32.mrf.mxu1 }
 0x1cd   :  { %v4227_v10 = vpack.c.bf16 %v3207_v46, %v3204_v22  ;;  %v4364_v54 = vadd.bf16 %v10708_v40, %v4228_v21  ;;  %v2695_v21 = vmax.bf16 %v12259_v6, %v2567_v0  ;;  %v2694_v17 = vmax.bf16 %v12259_v6, %v2566_v60  ;;  %v1837_v7 = vpop.f32.mrf.mxu0 }
 0x1ce   :  { %v8569_v2 = vpop.f32.mrf.mxu1  ;;  %8664 = vmatmul.mubr.msk.bf16.gmra.mxu1 %vm2785_vm2, %v2692_v36 }
 0x1cf   :  { %v4363_v13 = vadd.bf16 %v10708_v40, %v4227_v10  ;;  %8667 = vmatprep.mubr.msk.bf16.mxu1 %vm2785_vm2, %v2693_v62  ;;  %v4492_v22 = vmax.bf16 %v12259_v6, %v4364_v54  ;;  %v2433_v62 = vpack.c.bf16 %v10656_v44, %v10642_v3  ;;  %v2568_v44 = vadd.bf16 %v9901_v34, %v2432_v31 }
 0x1d0   :  { %v3220_v37 = vpop.f32.mrf.mxu1 }
 0x1d1   :  { %v4491_v20 = vmax.bf16 %v12259_v6, %v4363_v13  ;;  %v2569_v3 = vadd.bf16 %v9901_v34, %v2433_v62  ;;  %v10753_v62 = vpop.f32.mrf.mxu0 }
 0x1d2   :  { %v8570_v32 = vpop.f32.mrf.mxu1 }
 0x1d3   :  { %v4230_v51 = vpack.c.bf16 %v8570_v32, %v8569_v2  ;;  %8823 = vmatprep.mubr.msk.bf16.mxu0 %vm2785_vm2, %v4491_v20  ;;  %v2696_v32 = vmax.bf16 %v12259_v6, %v2568_v44 }
 0x1d4   :  { %v3223_v36 = vpop.f32.mrf.mxu1  ;;  %8824 = vmatmul.mubr.msk.bf16.vlgmr.msra.gmra.mxu0 %vm2785_vm2, %v4492_v22  ;;  %v2435_v22 = vpack.c.bf16 %v1821_v56, %v10682_v24 }
 0x1d5   :  { %v4229_v54 = vpack.c.bf16 %v3223_v36, %v3220_v37  ;;  %v4366_v46 = vadd.bf16 %v10708_v40, %v4230_v51  ;;  %v2697_v37 = vmax.bf16 %v12259_v6, %v2569_v3 }
 0x1d6   :  { %v8573_v10 = vpop.f32.mrf.mxu1  ;;  %8668 = vmatmul.mubr.msk.bf16.gmra.mxu1 %vm2785_vm2, %v2694_v17  ;;  %v2571_v56 = vadd.bf16 %v9901_v34, %v2435_v22 }
 0x1d7   :  { %v4365_v2 = vadd.bf16 %v10708_v40, %v4229_v54  ;;  %8671 = vmatprep.mubr.msk.bf16.mxu1 %vm2785_vm2, %v2695_v21  ;;  %v4494_v0 = vmax.bf16 %v12259_v6, %v4366_v46  ;;  %v2434_v21 = vpack.c.bf16 %v10649_v48, %v10630_v15  ;;  %v1850_v48 = vpop.f32.mrf.mxu0 }
 0x1d8   :  { %v3236_v35 = vpop.f32.mrf.mxu1  ;;  %v2699_v3 = vmax.bf16 %v12259_v6, %v2571_v56 }
 0x1d9   :  { %v4493_v13 = vmax.bf16 %v12259_v6, %v4365_v2  ;;  %v2570_v24 = vadd.bf16 %v9901_v34, %v2434_v21 }
 0x1da   :  { %v8574_v60 = vpop.f32.mrf.mxu1 }
 0x1db   :  { %v4232_v20 = vpack.c.bf16 %v8574_v60, %v8573_v10  ;;  %8827 = vmatprep.mubr.msk.bf16.mxu0 %vm2785_vm2, %v4493_v13  ;;  %v2698_v13 = vmax.bf16 %v12259_v6, %v2570_v24 }
 0x1dc   :  { %v3239_v51 = vpop.f32.mrf.mxu1  ;;  %8828 = vmatmul.mubr.msk.bf16.gmra.mxu0 %vm2785_vm2, %v4494_v0  ;;  %v2436_v0 = vpack.c.bf16 %v10699_v45, %v10670_v55 }
 0x1dd   :  { %v4231_v17 = vpack.c.bf16 %v3239_v51, %v3236_v35  ;;  %v4368_v31 = vadd.bf16 %v10708_v40, %v4232_v20  ;;  %v2437_v35 = vpack.c.bf16 %v1837_v7, %v10724_v59 }
 0x1de   :  { %v8577_v36 = vpop.f32.mrf.mxu1  ;;  %8672 = vmatmul.mubr.msk.bf16.gmra.mxu1 %vm2785_vm2, %v2696_v32  ;;  %v2572_v7 = vadd.bf16 %v9901_v34, %v2436_v0 }
 0x1df   :  { %v4367_v54 = vadd.bf16 %v10708_v40, %v4231_v17  ;;  %8675 = vmatprep.mubr.msk.bf16.mxu1 %vm2785_vm2, %v2697_v37  ;;  %v4496_v10 = vmax.bf16 %v12259_v6, %v4368_v31  ;;  %v8430_v37 = vpop.f32.mrf.mxu0  ;;  %v2573_v59 = vadd.bf16 %v9901_v34, %v2437_v35 }
 0x1e0   :  { %v3252_v15 = vpop.f32.mrf.mxu1  ;;  %v2700_v24 = vmax.bf16 %v12259_v6, %v2572_v7 }
 0x1e1   :  { %v4495_v46 = vmax.bf16 %v12259_v6, %v4367_v54  ;;  %v1853_v45 = vpop.f32.mrf.mxu0 }
 0x1e2   :  { %v8578_v2 = vpop.f32.mrf.mxu1  ;;  %v2439_v56 = vpack.c.bf16 %v1853_v45, %v1850_v48 }
 0x1e3   :  { %v4234_v44 = vpack.c.bf16 %v8578_v2, %v8577_v36  ;;  %8831 = vmatprep.mubr.msk.bf16.mxu0 %vm2785_vm2, %v4495_v46  ;;  %v2701_v36 = vmax.bf16 %v12259_v6, %v2573_v59 }
 0x1e4   :  { %v3255_v60 = vpop.f32.mrf.mxu1  ;;  %8832 = vmatmul.mubr.msk.bf16.gmra.mxu0 %vm2785_vm2, %v4496_v10  ;;  %v2575_v48 = vadd.bf16 %v9901_v34, %v2439_v56 }
 0x1e5   :  { %v4233_v20 = vpack.c.bf16 %v3255_v60, %v3252_v15  ;;  %v4370_v22 = vadd.bf16 %v10708_v40, %v4234_v44  ;;  %v2438_v15 = vpack.c.bf16 %v10736_v27, %v10716_v11 }
 0x1e6   :  { %v8581_v32 = vpop.f32.mrf.mxu1  ;;  %8676 = vmatmul.mubr.msk.bf16.gmra.mxu1 %vm2785_vm2, %v2698_v13  ;;  %v2703_v60 = vmax.bf16 %v12259_v6, %v2575_v48 }
 0x1e7   :  { %v4369_v21 = vadd.bf16 %v10708_v40, %v4233_v20  ;;  %8679 = vmatprep.mubr.msk.bf16.mxu1 %vm2785_vm2, %v2699_v3  ;;  %v4498_v17 = vmax.bf16 %v12259_v6, %v4370_v22  ;;  %v2574_v35 = vadd.bf16 %v9901_v34, %v2438_v15 }
 0x1e8   :  { %v3268_v51 = vpop.f32.mrf.mxu1 }
 0x1e9   :  { %v4497_v55 = vmax.bf16 %v12259_v6, %v4369_v21  ;;  %v2702_v22 = vmax.bf16 %v12259_v6, %v2574_v35  ;;  %v12262_v35 = vpack.c.bf16 %v9742_v58, %v9726_v52 }
 0x1ea   :  { %v8582_v31 = vpop.f32.mrf.mxu1 }
 0x1eb   :  { %v4236_v54 = vpack.c.bf16 %v8582_v31, %v8581_v32  ;;  %8835 = vmatprep.mubr.msk.bf16.mxu0 %vm2785_vm2, %v4497_v55  ;;  %v2440_v32 = vpack.c.bf16 %v8430_v37, %v10753_v62  ;;  %v12260_v31 = vpack.c.bf16 %v9712_v47, %v9698_v42 }
 0x1ec   :  { %v3271_v46 = vpop.f32.mrf.mxu1  ;;  %8836 = vmatmul.mubr.msk.bf16.gmra.mxu0 %vm2785_vm2, %v4498_v17 }
 0x1ed   :  { %v4235_v10 = vpack.c.bf16 %v3271_v46, %v3268_v51  ;;  %v4372_v2 = vadd.bf16 %v10708_v40, %v4236_v54  ;;  %v2576_v55 = vadd.bf16 %v9901_v34, %v2440_v32  ;;  %v2577_v62 = vadd.bf16 %v9901_v34, %v12260_v31 }
 0x1ee   :  { %v8585_v3 = vpop.f32.mrf.mxu1  ;;  %8680 = vmatmul.mubr.msk.bf16.gmra.mxu1 %vm2785_vm2, %v2700_v24 }
 0x1ef   :  { %v4371_v44 = vadd.bf16 %v10708_v40, %v4235_v10  ;;  %8683 = vmatprep.mubr.msk.bf16.mxu1 %vm2785_vm2, %v2701_v36  ;;  %v4500_v27 = vmax.bf16 %v12259_v6, %v4372_v2  ;;  %v2704_v24 = vmax.bf16 %v12259_v6, %v2576_v55  ;;  %v2705_v46 = vmax.bf16 %v12259_v6, %v2577_v62 }
 0x1f0   :  { %v3284_v13 = vpop.f32.mrf.mxu1 }
 0x1f1   :  { %v4499_v11 = vmax.bf16 %v12259_v6, %v4371_v44 }
 0x1f2   :  { %v8586_v0 = vpop.f32.mrf.mxu1 }
 0x1f3   :  { %v4238_v20 = vpack.c.bf16 %v8586_v0, %v8585_v3  ;;  %8839 = vmatprep.mubr.msk.bf16.mxu0 %vm2785_vm2, %v4499_v11  ;;  %v12261_v3 = vpack.c.bf16 %v9700_v43, %v9688_v39 }
 0x1f4   :  { %v3287_v21 = vpop.f32.mrf.mxu1  ;;  %8840 = vmatmul.mubr.msk.bf16.gmra.mxu0 %vm2785_vm2, %v4500_v27 }
 0x1f5   :  { %v4237_v59 = vpack.c.bf16 %v3287_v21, %v3284_v13  ;;  %v4374_v7 = vadd.bf16 %v10708_v40, %v4238_v20  ;;  %v2578_v44 = vadd.bf16 %v9901_v34, %v12261_v3  ;;  %v2579_v13 = vadd.bf16 %v9901_v34, %v12262_v35 }
 0x1f6   :  { %v8589_v51 = vpop.f32.mrf.mxu1  ;;  %8684 = vmatmul.mubr.msk.bf16.gmra.mxu1 %vm2785_vm2, %v2702_v22  ;;  %v12263_v21 = vpack.c.bf16 %v9728_v53, %v9716_v49 }
 0x1f7   :  { %v4373_v45 = vadd.bf16 %v10708_v40, %v4237_v59  ;;  %8687 = vmatprep.mubr.msk.bf16.mxu1 %vm2785_vm2, %v2703_v60  ;;  %v4502_v36 = vmax.bf16 %v12259_v6, %v4374_v7  ;;  %v2706_v20 = vmax.bf16 %v12259_v6, %v2578_v44  ;;  %v2707_v39 = vmax.bf16 %v12259_v6, %v2579_v13 }
 0x1f8   :  { %v3300_v17 = vpop.f32.mrf.mxu1  ;;  %v2580_v59 = vadd.bf16 %v9901_v34, %v12263_v21  ;;  %v12267_v13 = vpack.c.bf16 %v9803_v18, %v9787_v12  ;;  %v12269_v21 = vpack.c.bf16 %v9839_v33, %v9823_v26 }
 0x1f9   :  { %v4501_v37 = vmax.bf16 %v12259_v6, %v4373_v45 }
 0x1fa   :  { %v8590_v54 = vpop.f32.mrf.mxu1 }
 0x1fb   :  { %v4240_v56 = vpack.c.bf16 %v8590_v54, %v8589_v51  ;;  %8843 = vmatprep.mubr.msk.bf16.mxu0 %vm2785_vm2, %v4501_v37  ;;  %v12264_v51 = vpack.c.bf16 %v9781_v9, %v9760_v1  ;;  %v2708_v37 = vmax.bf16 %v12259_v6, %v2580_v59  ;;  %v2586_v59 = vadd.bf16 %v9901_v34, %v12269_v21 }
 0x1fc   :  { %v3303_v15 = vpop.f32.mrf.mxu1  ;;  %8844 = vmatmul.mubr.msk.bf16.gmra.mxu0 %vm2785_vm2, %v4502_v36 }
 0x1fd   :  { %v4239_v10 = vpack.c.bf16 %v3303_v15, %v3300_v17  ;;  %v4376_v42 = vadd.bf16 %v10708_v40, %v4240_v56  ;;  %v2581_v45 = vadd.bf16 %v9901_v34, %v12264_v51  ;;  %v12265_v56 = vpack.c.bf16 %v9767_v4, %v9748_v61 }
 0x1fe   :  { %v8593_v47 = vpop.f32.mrf.mxu1  ;;  %8688 = vmatmul.mubr.msk.bf16.gmra.mxu1 %vm2785_vm2, %v2704_v24  ;;  %v12270_v51 = vpack.c.bf16 %v9896_v29, %v9874_v63 }
 0x1ff   :  { %v4375_v2 = vadd.bf16 %v10708_v40, %v4239_v10  ;;  %8691 = vmatprep.mubr.msk.bf16.mxu1 %vm2785_vm2, %v2705_v46  ;;  %v4504_v27 = vmax.bf16 %v12259_v6, %v4376_v42  ;;  %v2709_v49 = vmax.bf16 %v12259_v6, %v2581_v45  ;;  %v2582_v24 = vadd.bf16 %v9901_v34, %v12265_v56 }
 0x200   :  { %v3316_v48 = vpop.f32.mrf.mxu1  ;;  %v12266_v46 = vpack.c.bf16 %v9817_v23, %v9799_v16  ;;  %v2587_v45 = vadd.bf16 %v9901_v34, %v12270_v51 }
 0x201   :  { %v4503_v11 = vmax.bf16 %v12259_v6, %v4375_v2  ;;  %v2710_v44 = vmax.bf16 %v12259_v6, %v2582_v24 }
 0x202   :  { %v8594_v0 = vpop.f32.mrf.mxu1  ;;  %v2583_v10 = vadd.bf16 %v9901_v34, %v12266_v46  ;;  %v2715_v26 = vmax.bf16 %v12259_v6, %v2587_v45 }
 0x203   :  { %v4242_v60 = vpack.c.bf16 %v8594_v0, %v8593_v47  ;;  %8847 = vmatprep.mubr.msk.bf16.mxu0 %vm2785_vm2, %v4503_v11  ;;  %v2584_v11 = vadd.bf16 %v9901_v34, %v12267_v13  ;;  %v12268_v0 = vpack.c.bf16 %v9853_v38, %v9835_v30 }
 0x204   :  { %v3319_v22 = vpop.f32.mrf.mxu1  ;;  %8848 = vmatmul.mubr.msk.bf16.gmra.mxu0 %vm2785_vm2, %v4504_v27  ;;  %v2711_v61 = vmax.bf16 %v12259_v6, %v2583_v10 }
 0x205   :  { %v4241_v43 = vpack.c.bf16 %v3319_v22, %v3316_v48  ;;  %v4378_v52 = vadd.bf16 %v10708_v40, %v4242_v60  ;;  %v2585_v60 = vadd.bf16 %v9901_v34, %v12268_v0 }
 0x206   :  { %v8597_v58 = vpop.f32.mrf.mxu1  ;;  %8692 = vmatmul.mubr.msk.bf16.gmra.mxu1 %vm2785_vm2, %v2706_v20 }
 0x207   :  { %v4377_v32 = vadd.bf16 %v10708_v40, %v4241_v43  ;;  %8695 = vmatprep.mubr.msk.bf16.mxu1 %vm2785_vm2, %v2707_v39  ;;  %v4506_v17 = vmax.bf16 %v12259_v6, %v4378_v52  ;;  %v2712_v52 = vmax.bf16 %v12259_v6, %v2584_v11  ;;  %v2713_v12 = vmax.bf16 %v12259_v6, %v2585_v60 }
 0x208   :  { %v3332_v7 = vpop.f32.mrf.mxu1 }
 0x209   :  { %v4505_v55 = vmax.bf16 %v12259_v6, %v4377_v32 }
 0x20a   :  { %v8598_v31 = vpop.f32.mrf.mxu1 }
 0x20b   :  { %v4244_v62 = vpack.c.bf16 %v8598_v31, %v8597_v58  ;;  %8851 = vmatprep.mubr.msk.bf16.mxu0 %vm2785_vm2, %v4505_v55 }
 0x20c   :  { %v3335_v36 = vpop.f32.mrf.mxu1  ;;  %8852 = vmatmul.mubr.msk.bf16.gmra.mxu0 %vm2785_vm2, %v4506_v17 }
 0x20d   :  { %v4243_v53 = vpack.c.bf16 %v3335_v36, %v3332_v7  ;;  %v4380_v1 = vadd.bf16 %v10708_v40, %v4244_v62 }
 0x20e   :  { %v8601_v9 = vpop.f32.mrf.mxu1  ;;  %8696 = vmatmul.mubr.msk.bf16.gmra.mxu1 %vm2785_vm2, %v2708_v37  ;;  %v2714_v37 = vmax.bf16 %v12259_v6, %v2586_v59 }
 0x20f   :  { %v4379_v54 = vadd.bf16 %v10708_v40, %v4243_v53  ;;  %8699 = vmatprep.mubr.msk.bf16.mxu1 %vm2785_vm2, %v2709_v49  ;;  %v4508_v47 = vmax.bf16 %v12259_v6, %v4380_v1  ;;  %v12271_v53 = vpack.c.bf16 %v9880_v8, %v9862_v50 }
 0x210   :  { %v3348_v15 = vpop.f32.mrf.mxu1 }
 0x211   :  { %v4507_v42 = vmax.bf16 %v12259_v6, %v4379_v54  ;;  %v2588_v1 = vadd.bf16 %v9901_v34, %v12271_v53  ;;  %v12272_v54 = vpack.c.bf16 %v9938_v25, %v9918_v57 }
 0x212   :  { %v8602_v2 = vpop.f32.mrf.mxu1 }
 0x213   :  { %v4246_v3 = vpack.c.bf16 %v8602_v2, %v8601_v9  ;;  %8855 = vmatprep.mubr.msk.bf16.mxu0 %vm2785_vm2, %v4507_v42  ;;  %v2589_v56 = vadd.bf16 %v9901_v34, %v12272_v54  ;;  %v2716_v42 = vmax.bf16 %v12259_v6, %v2588_v1  ;;  %v12286_v1 = vld [vmem:[#allocation16_spill] sm:$0xff] }
 0x214   :  { %v3351_v48 = vpop.f32.mrf.mxu1  ;;  %8856 = vmatmul.mubr.msk.bf16.gmra.mxu0 %vm2785_vm2, %v4508_v47 }
 0x215   :  { %v4245_v4 = vpack.c.bf16 %v3351_v48, %v3348_v15  ;;  %v4382_v16 = vadd.bf16 %v10708_v40, %v4246_v3  ;;  %v2717_v50 = vmax.bf16 %v12259_v6, %v2589_v56  ;;  %v12273_v3 = vpack.c.bf16 %v9922_v19, %v9905_v41 }
 0x216   :  { %v8605_v23 = vpop.f32.mrf.mxu1  ;;  %8700 = vmatmul.mubr.msk.bf16.gmra.mxu1 %vm2785_vm2, %v2710_v44 }
 0x217   :  { %v4381_v35 = vadd.bf16 %v10708_v40, %v4245_v4  ;;  %8703 = vmatprep.mubr.msk.bf16.mxu1 %vm2785_vm2, %v2711_v61  ;;  %v4510_v22 = vmax.bf16 %v12259_v6, %v4382_v16  ;;  %v2590_v44 = vadd.bf16 %v9901_v34, %v12273_v3  ;;  %v12274_v61 = vld [vmem:[#allocation8_spill] sm:$0xff]  ;;  %v12275_v4 = vld [vmem:[#allocation6_spill] sm:$0xff]  ;;  %v12289_v3 = vld [vmem:[#allocation15_spill] sm:$0xff] }
 0x218   :  { %v3364_v27 = vpop.f32.mrf.mxu1  ;;  %v12276_v16 = vpack.c.bf16 %v12274_v61, %v12275_v4 }
 0x219   :  { %v4509_v20 = vmax.bf16 %v12259_v6, %v4381_v35  ;;  %v2718_v0 = vmax.bf16 %v12259_v6, %v2590_v44  ;;  %v12290_v44 = vld [vmem:[#allocation13_spill] sm:$0xff] }
 0x21a   :  { %v8606_v39 = vpop.f32.mrf.mxu1 }
 0x21b   :  { %v4248_v43 = vpack.c.bf16 %v8606_v39, %v8605_v23  ;;  %8859 = vmatprep.mubr.msk.bf16.mxu0 %vm2785_vm2, %v4509_v20  ;;  %v2591_v23 = vadd.bf16 %v9901_v34, %v12276_v16  ;;  %v12292_v16 = vld [vmem:[#allocation20_spill] sm:$0xff] }
 0x21c   :  { %v3367_v58 = vpop.f32.mrf.mxu1  ;;  %8860 = vmatmul.mubr.msk.bf16.gmra.mxu0 %vm2785_vm2, %v4510_v22 }
 0x21d   :  { %v4247_v18 = vpack.c.bf16 %v3367_v58, %v3364_v27  ;;  %v4384_v30 = vadd.bf16 %v10708_v40, %v4248_v43  ;;  %v2719_v19 = vmax.bf16 %v12259_v6, %v2591_v23  ;;  %v12277_v43 = vld [vmem:[#allocation7_spill] sm:$0xff]  ;;  %v12293_v23 = vld [vmem:[#allocation18_spill] sm:$0xff] }
 0x21e   :  { %v8609_v38 = vpop.f32.mrf.mxu1  ;;  %8704 = vmatmul.mubr.msk.bf16.gmra.mxu1 %vm2785_vm2, %v2712_v52  ;;  %v12278_v52 = vld [vmem:[#allocation5_spill] sm:$0xff] }
 0x21f   :  { %v4383_v32 = vadd.bf16 %v10708_v40, %v4247_v18  ;;  %8707 = vmatprep.mubr.msk.bf16.mxu1 %vm2785_vm2, %v2713_v12  ;;  %v4512_v17 = vmax.bf16 %v12259_v6, %v4384_v30  ;;  %v12279_v58 = vpack.c.bf16 %v12277_v43, %v12278_v52  ;;  %v12280_v30 = vld [vmem:[#allocation12_spill] sm:$0xff] }
 0x220   :  { %v3380_v7 = vpop.f32.mrf.mxu1 }
 0x221   :  { %v4511_v55 = vmax.bf16 %v12259_v6, %v4383_v32  ;;  %v2592_v12 = vadd.bf16 %v9901_v34, %v12279_v58  ;;  %v12295_v58 = vld [vmem:[#allocation19_spill] sm:$0xff] }
 0x222   :  { %v8610_v31 = vpop.f32.mrf.mxu1 }
 0x223   :  { %v4250_v62 = vpack.c.bf16 %v8610_v31, %v8609_v38  ;;  %8863 = vmatprep.mubr.msk.bf16.mxu0 %vm2785_vm2, %v4511_v55  ;;  %v12281_v38 = vld [vmem:[#allocation10_spill] sm:$0xff]  ;;  %v2720_v55 = vmax.bf16 %v12259_v6, %v2592_v12  ;;  %v12296_v12 = vld [vmem:[#allocation17_spill] sm:$0xff] }
 0x224   :  { %v3383_v36 = vpop.f32.mrf.mxu1  ;;  %8864 = vmatmul.mubr.msk.bf16.gmra.mxu0 %vm2785_vm2, %v4512_v17  ;;  %v12282_v32 = vpack.c.bf16 %v12280_v30, %v12281_v38 }
 0x225   :  { %v4249_v33 = vpack.c.bf16 %v3383_v36, %v3380_v7  ;;  %v4386_v63 = vadd.bf16 %v10708_v40, %v4250_v62 }
 0x226   :  { %v8613_v29 = vpop.f32.mrf.mxu1  ;;  %8708 = vmatmul.mubr.msk.bf16.gmra.mxu1 %vm2785_vm2, %v2714_v37  ;;  %v2593_v21 = vadd.bf16 %v9901_v34, %v12282_v32  ;;  %v12298_v32 = vld [vmem:[#allocation24_spill] sm:$0xff] }
 0x227   :  { %v4385_v49 = vadd.bf16 %v10708_v40, %v4249_v33  ;;  %8711 = vmatprep.mubr.msk.bf16.mxu1 %vm2785_vm2, %v2715_v26  ;;  %v4514_v15 = vmax.bf16 %v12259_v6, %v4386_v63  ;;  %v12283_v33 = vld [vmem:[#allocation11_spill] sm:$0xff]  ;;  %v12284_v63 = vld [vmem:[#allocation9_spill] sm:$0xff] }
 0x228   :  { %v3396_v9 = vpop.f32.mrf.mxu1  ;;  %v2721_v31 = vmax.bf16 %v12259_v6, %v2593_v21  ;;  %v12299_v21 = vld [vmem:[#allocation22_spill] sm:$0xff] }
 0x229   :  { %v4513_v24 = vmax.bf16 %v12259_v6, %v4385_v49 }
 0x22a   :  { %v8614_v46 = vpop.f32.mrf.mxu1 }
 0x22b   :  { %v4252_v10 = vpack.c.bf16 %v8614_v46, %v8613_v29  ;;  %8867 = vmatprep.mubr.msk.bf16.mxu0 %vm2785_vm2, %v4513_v24  ;;  %v12285_v29 = vpack.c.bf16 %v12283_v33, %v12284_v63 }
 0x22c   :  { %v3399_v47 = vpop.f32.mrf.mxu1  ;;  %8868 = vmatmul.mubr.msk.bf16.gmra.mxu0 %vm2785_vm2, %v4514_v15 }
 0x22d   :  { %v4251_v8 = vpack.c.bf16 %v3399_v47, %v3396_v9  ;;  %v4388_v25 = vadd.bf16 %v10708_v40, %v4252_v10  ;;  %v2594_v49 = vadd.bf16 %v9901_v34, %v12285_v29  ;;  %v12287_v9 = vld [vmem:[#allocation14_spill] sm:$0xff]  ;;  %v12301_v29 = vld [vmem:[#allocation23_spill] sm:$0xff] }
 0x22e   :  { %v8617_v57 = vpop.f32.mrf.mxu1  ;;  %8712 = vmatmul.mubr.msk.bf16.gmra.mxu1 %vm2785_vm2, %v2716_v42  ;;  %v12288_v54 = vpack.c.bf16 %v12286_v1, %v12287_v9 }
 0x22f   :  { %v4387_v2 = vadd.bf16 %v10708_v40, %v4251_v8  ;;  %8715 = vmatprep.mubr.msk.bf16.mxu1 %vm2785_vm2, %v2717_v50  ;;  %v4516_v13 = vmax.bf16 %v12259_v6, %v4388_v25  ;;  %v2722_v42 = vmax.bf16 %v12259_v6, %v2594_v49  ;;  %v12302_v49 = vld [vmem:[#allocation21_spill] sm:$0xff] }
 0x230   :  { %v3412_v48 = vpop.f32.mrf.mxu1  ;;  %v2595_v56 = vadd.bf16 %v9901_v34, %v12288_v54  ;;  %v12304_v54 = vld [vmem:[#allocation28_spill] sm:$0xff] }
 0x231   :  { %v4515_v35 = vmax.bf16 %v12259_v6, %v4387_v2 }
 0x232   :  { %v8618_v11 = vpop.f32.mrf.mxu1  ;;  %v2723_v50 = vmax.bf16 %v12259_v6, %v2595_v56  ;;  %v12305_v56 = vld [vmem:[#allocation26_spill] sm:$0xff] }
 0x233   :  { %v4254_v27 = vpack.c.bf16 %v8618_v11, %v8617_v57  ;;  %8871 = vmatprep.mubr.msk.bf16.mxu0 %vm2785_vm2, %v4515_v35  ;;  %v12294_v35 = vpack.c.bf16 %v12292_v16, %v12293_v23 }
 0x234   :  { %v3415_v60 = vpop.f32.mrf.mxu1  ;;  %8872 = vmatmul.mubr.msk.bf16.gmra.mxu0 %vm2785_vm2, %v4516_v13 }
 0x235   :  { %v4253_v41 = vpack.c.bf16 %v3415_v60, %v3412_v48  ;;  %v4390_v20 = vadd.bf16 %v10708_v40, %v4254_v27  ;;  %v12291_v48 = vpack.c.bf16 %v12289_v3, %v12290_v44  ;;  %v2597_v13 = vadd.bf16 %v9901_v34, %v12294_v35  ;;  %v12310_v35 = vld [vmem:[#allocation32_spill] sm:$0xff] }
 0x236   :  { %v8621_v22 = vpop.f32.mrf.mxu1  ;;  %8716 = vmatmul.mubr.msk.bf16.gmra.mxu1 %vm2785_vm2, %v2718_v0 }
 0x237   :  { %v4389_v39 = vadd.bf16 %v10708_v40, %v4253_v41  ;;  %8719 = vmatprep.mubr.msk.bf16.mxu1 %vm2785_vm2, %v2719_v19  ;;  %v4518_v7 = vmax.bf16 %v12259_v6, %v4390_v20  ;;  %v2596_v61 = vadd.bf16 %v9901_v34, %v12291_v48  ;;  %v2725_v20 = vmax.bf16 %v12259_v6, %v2597_v13  ;;  %v12307_v48 = vld [vmem:[#allocation27_spill] sm:$0xff]  ;;  %v12311_v13 = vld [vmem:[#allocation30_spill] sm:$0xff] }
 0x238   :  { %v3428_v18 = vpop.f32.mrf.mxu1 }
 0x239   :  { %v4517_v59 = vmax.bf16 %v12259_v6, %v4389_v39  ;;  %v2724_v19 = vmax.bf16 %v12259_v6, %v2596_v61  ;;  %v12308_v61 = vld [vmem:[#allocation25_spill] sm:$0xff] }
 0x23a   :  { %v8622_v51 = vpop.f32.mrf.mxu1 }
 0x23b   :  { %v4256_v45 = vpack.c.bf16 %v8622_v51, %v8621_v22  ;;  %8875 = vmatprep.mubr.msk.bf16.mxu0 %vm2785_vm2, %v4517_v59  ;;  %v12300_v59 = vpack.c.bf16 %v12298_v32, %v12299_v21 }
 0x23c   :  { %v3431_v17 = vpop.f32.mrf.mxu1  ;;  %8876 = vmatmul.mubr.msk.bf16.gmra.mxu0 %vm2785_vm2, %v4518_v7 }
 0x23d   :  { %v4255_v62 = vpack.c.bf16 %v3431_v17, %v3428_v18  ;;  %v4392_v37 = vadd.bf16 %v10708_v40, %v4256_v45  ;;  %v12297_v18 = vpack.c.bf16 %v12295_v58, %v12296_v12  ;;  %v2599_v7 = vadd.bf16 %v9901_v34, %v12300_v59  ;;  %v12316_v59 = vld [vmem:[#allocation36_spill] sm:$0xff] }
 0x23e   :  { %v8625_v36 = vpop.f32.mrf.mxu1  ;;  %8720 = vmatmul.mubr.msk.bf16.gmra.mxu1 %vm2785_vm2, %v2720_v55 }
 0x23f   :  { %v4391_v26 = vadd.bf16 %v10708_v40, %v4255_v62  ;;  %8723 = vmatprep.mubr.msk.bf16.mxu1 %vm2785_vm2, %v2721_v31  ;;  %v4520_v15 = vmax.bf16 %v12259_v6, %v4392_v37  ;;  %v2598_v30 = vadd.bf16 %v9901_v34, %v12297_v18  ;;  %v2727_v37 = vmax.bf16 %v12259_v6, %v2599_v7  ;;  %v12313_v18 = vld [vmem:[#allocation31_spill] sm:$0xff]  ;;  %v12317_v7 = vld [vmem:[#allocation34_spill] sm:$0xff] }
 0x240   :  { %v3444_v53 = vpop.f32.mrf.mxu1 }
 0x241   :  { %v4519_v24 = vmax.bf16 %v12259_v6, %v4391_v26  ;;  %v2726_v31 = vmax.bf16 %v12259_v6, %v2598_v30  ;;  %v12314_v30 = vld [vmem:[#allocation29_spill] sm:$0xff] }
 0x242   :  { %v8626_v46 = vpop.f32.mrf.mxu1 }
 0x243   :  { %v4258_v10 = vpack.c.bf16 %v8626_v46, %v8625_v36  ;;  %8879 = vmatprep.mubr.msk.bf16.mxu0 %vm2785_vm2, %v4519_v24  ;;  %v12306_v24 = vpack.c.bf16 %v12304_v54, %v12305_v56 }
 0x244   :  { %v3447_v47 = vpop.f32.mrf.mxu1  ;;  %8880 = vmatmul.mubr.msk.bf16.gmra.mxu0 %vm2785_vm2, %v4520_v15 }
 0x245   :  { %v4257_v8 = vpack.c.bf16 %v3447_v47, %v3444_v53  ;;  %v4394_v25 = vadd.bf16 %v10708_v40, %v4258_v10  ;;  %v12303_v53 = vpack.c.bf16 %v12301_v29, %v12302_v49  ;;  %v2601_v15 = vadd.bf16 %v9901_v34, %v12306_v24  ;;  %v12322_v24 = vld [vmem:[#allocation40_spill] sm:$0xff] }
 0x246   :  { %v8629_v57 = vpop.f32.mrf.mxu1  ;;  %8724 = vmatmul.mubr.msk.bf16.gmra.mxu1 %vm2785_vm2, %v2722_v42 }
 0x247   :  { %v4393_v2 = vadd.bf16 %v10708_v40, %v4257_v8  ;;  %8727 = vmatprep.mubr.msk.bf16.mxu1 %vm2785_vm2, %v2723_v50  ;;  %v4522_v27 = vmax.bf16 %v12259_v6, %v4394_v25  ;;  %v2600_v1 = vadd.bf16 %v9901_v34, %v12303_v53  ;;  %v2729_v25 = vmax.bf16 %v12259_v6, %v2601_v15  ;;  %v12319_v53 = vld [vmem:[#allocation35_spill] sm:$0xff]  ;;  %v12323_v15 = vld [vmem:[#allocation38_spill] sm:$0xff] }
 0x248   :  { %v3460_v4 = vpop.f32.mrf.mxu1 }
 0x249   :  { %v4521_v11 = vmax.bf16 %v12259_v6, %v4393_v2  ;;  %v2728_v50 = vmax.bf16 %v12259_v6, %v2600_v1  ;;  %v12320_v1 = vld [vmem:[#allocation33_spill] sm:$0xff] }
 0x24a   :  { %v8630_v0 = vpop.f32.mrf.mxu1 }
 0x24b   :  { %v4260_v60 = vpack.c.bf16 %v8630_v0, %v8629_v57  ;;  %8883 = vmatprep.mubr.msk.bf16.mxu0 %vm2785_vm2, %v4521_v11  ;;  %v12312_v11 = vpack.c.bf16 %v12310_v35, %v12311_v13 }
 0x24c   :  { %v3463_v41 = vpop.f32.mrf.mxu1  ;;  %8884 = vmatmul.mubr.msk.bf16.gmra.mxu0 %vm2785_vm2, %v4522_v27 }
 0x24d   :  { %v4259_v22 = vpack.c.bf16 %v3463_v41, %v3460_v4  ;;  %v4396_v39 = vadd.bf16 %v10708_v40, %v4260_v60  ;;  %v12309_v4 = vpack.c.bf16 %v12307_v48, %v12308_v61  ;;  %v2603_v27 = vadd.bf16 %v9901_v34, %v12312_v11  ;;  %v12328_v11 = vld [vmem:[#allocation44_spill] sm:$0xff] }
 0x24e   :  { %v8633_v43 = vpop.f32.mrf.mxu1  ;;  %8728 = vmatmul.mubr.msk.bf16.gmra.mxu1 %vm2785_vm2, %v2724_v19 }
 0x24f   :  { %v4395_v52 = vadd.bf16 %v10708_v40, %v4259_v22  ;;  %8731 = vmatprep.mubr.msk.bf16.mxu1 %vm2785_vm2, %v2725_v20  ;;  %v4524_v45 = vmax.bf16 %v12259_v6, %v4396_v39  ;;  %v2602_v16 = vadd.bf16 %v9901_v34, %v12309_v4  ;;  %v2731_v39 = vmax.bf16 %v12259_v6, %v2603_v27  ;;  %v12325_v4 = vld [vmem:[#allocation39_spill] sm:$0xff]  ;;  %v12329_v27 = vld [vmem:[#allocation42_spill] sm:$0xff] }
 0x250   :  { %v3476_v38 = vpop.f32.mrf.mxu1 }
 0x251   :  { %v4523_v51 = vmax.bf16 %v12259_v6, %v4395_v52  ;;  %v2730_v20 = vmax.bf16 %v12259_v6, %v2602_v16  ;;  %v12326_v16 = vld [vmem:[#allocation37_spill] sm:$0xff] }
 0x252   :  { %v8634_v55 = vpop.f32.mrf.mxu1 }
 0x253   :  { %v4262_v17 = vpack.c.bf16 %v8634_v55, %v8633_v43  ;;  %8887 = vmatprep.mubr.msk.bf16.mxu0 %vm2785_vm2, %v4523_v51  ;;  %v12318_v51 = vpack.c.bf16 %v12316_v59, %v12317_v7 }
 0x254   :  { %v3479_v62 = vpop.f32.mrf.mxu1  ;;  %8888 = vmatmul.mubr.msk.bf16.gmra.mxu0 %vm2785_vm2, %v4524_v45 }
 0x255   :  { %v4261_v36 = vpack.c.bf16 %v3479_v62, %v3476_v38  ;;  %v4398_v26 = vadd.bf16 %v10708_v40, %v4262_v17  ;;  %v12315_v38 = vpack.c.bf16 %v12313_v18, %v12314_v30  ;;  %v2605_v45 = vadd.bf16 %v9901_v34, %v12318_v51  ;;  %v12334_v51 = vld [vmem:[#allocation48_spill] sm:$0xff] }
 0x256   :  { %v8637_v33 = vpop.f32.mrf.mxu1  ;;  %8732 = vmatmul.mubr.msk.bf16.gmra.mxu1 %vm2785_vm2, %v2726_v31 }
 0x257   :  { %v4397_v63 = vadd.bf16 %v10708_v40, %v4261_v36  ;;  %8735 = vmatprep.mubr.msk.bf16.mxu1 %vm2785_vm2, %v2727_v37  ;;  %v4526_v10 = vmax.bf16 %v12259_v6, %v4398_v26  ;;  %v2604_v32 = vadd.bf16 %v9901_v34, %v12315_v38  ;;  %v2733_v26 = vmax.bf16 %v12259_v6, %v2605_v45  ;;  %v12331_v38 = vld [vmem:[#allocation43_spill] sm:$0xff]  ;;  %v12335_v45 = vld [vmem:[#allocation46_spill] sm:$0xff] }
 0x258   :  { %v3492_v9 = vpop.f32.mrf.mxu1 }
 0x259   :  { %v4525_v46 = vmax.bf16 %v12259_v6, %v4397_v63  ;;  %v2732_v37 = vmax.bf16 %v12259_v6, %v2604_v32  ;;  %v12332_v32 = vld [vmem:[#allocation41_spill] sm:$0xff] }
 0x25a   :  { %v8638_v42 = vpop.f32.mrf.mxu1 }
 0x25b   :  { %v4264_v47 = vpack.c.bf16 %v8638_v42, %v8637_v33  ;;  %8891 = vmatprep.mubr.msk.bf16.mxu0 %vm2785_vm2, %v4525_v46  ;;  %v12324_v46 = vpack.c.bf16 %v12322_v24, %v12323_v15 }
 0x25c   :  { %v3495_v8 = vpop.f32.mrf.mxu1  ;;  %8892 = vmatmul.mubr.msk.bf16.gmra.mxu0 %vm2785_vm2, %v4526_v10 }
 0x25d   :  { %v4263_v57 = vpack.c.bf16 %v3495_v8, %v3492_v9  ;;  %v4400_v2 = vadd.bf16 %v10708_v40, %v4264_v47  ;;  %v12321_v9 = vpack.c.bf16 %v12319_v53, %v12320_v1  ;;  %v2607_v10 = vadd.bf16 %v9901_v34, %v12324_v46  ;;  %v12340_v46 = vld [vmem:[#allocation52_spill] sm:$0xff] }
 0x25e   :  { %v8641_v3 = vpop.f32.mrf.mxu1  ;;  %8736 = vmatmul.mubr.msk.bf16.gmra.mxu1 %vm2785_vm2, %v2728_v50 }
 0x25f   :  { %v4399_v44 = vadd.bf16 %v10708_v40, %v4263_v57  ;;  %8739 = vmatprep.mubr.msk.bf16.mxu1 %vm2785_vm2, %v2729_v25  ;;  %v4528_v60 = vmax.bf16 %v12259_v6, %v4400_v2  ;;  %v2606_v54 = vadd.bf16 %v9901_v34, %v12321_v9  ;;  %v2735_v2 = vmax.bf16 %v12259_v6, %v2607_v10  ;;  %v12337_v9 = vld [vmem:[#allocation47_spill] sm:$0xff]  ;;  %v12341_v10 = vld [vmem:[#allocation50_spill] sm:$0xff] }
 0x260   :  { %v3508_v23 = vpop.f32.mrf.mxu1 }
 0x261   :  { %v4527_v0 = vmax.bf16 %v12259_v6, %v4399_v44  ;;  %v2734_v25 = vmax.bf16 %v12259_v6, %v2606_v54  ;;  %v12338_v54 = vld [vmem:[#allocation45_spill] sm:$0xff] }
 0x262   :  { %v8642_v19 = vpop.f32.mrf.mxu1 }
 0x263   :  { %v4266_v41 = vpack.c.bf16 %v8642_v19, %v8641_v3  ;;  %8895 = vmatprep.mubr.msk.bf16.mxu0 %vm2785_vm2, %v4527_v0  ;;  %v12330_v0 = vpack.c.bf16 %v12328_v11, %v12329_v27 }
 0x264   :  { %v3511_v22 = vpop.f32.mrf.mxu1  ;;  %8896 = vmatmul.mubr.msk.bf16.gmra.mxu0 %vm2785_vm2, %v4528_v60 }
 0x265   :  { %v4265_v43 = vpack.c.bf16 %v3511_v22, %v3508_v23  ;;  %v4402_v52 = vadd.bf16 %v10708_v40, %v4266_v41  ;;  %v12327_v23 = vpack.c.bf16 %v12325_v4, %v12326_v16  ;;  %v2609_v60 = vadd.bf16 %v9901_v34, %v12330_v0  ;;  %v12346_v0 = vld [vmem:[#allocation56_spill] sm:$0xff] }
 0x266   :  { %v8645_v58 = vpop.f32.mrf.mxu1  ;;  %8740 = vmatmul.mubr.msk.bf16.gmra.mxu1 %vm2785_vm2, %v2730_v20 }
 0x267   :  { %v4401_v12 = vadd.bf16 %v10708_v40, %v4265_v43  ;;  %8743 = vmatprep.mubr.msk.bf16.mxu1 %vm2785_vm2, %v2731_v39  ;;  %v4530_v17 = vmax.bf16 %v12259_v6, %v4402_v52  ;;  %v2608_v35 = vadd.bf16 %v9901_v34, %v12327_v23  ;;  %v2737_v52 = vmax.bf16 %v12259_v6, %v2609_v60  ;;  %v12343_v23 = vld [vmem:[#allocation51_spill] sm:$0xff]  ;;  %v12347_v60 = vld [vmem:[#allocation54_spill] sm:$0xff] }
 0x268   :  { %v3524_v21 = vpop.f32.mrf.mxu1 }
 0x269   :  { %v4529_v55 = vmax.bf16 %v12259_v6, %v4401_v12  ;;  %v2736_v39 = vmax.bf16 %v12259_v6, %v2608_v35  ;;  %v12344_v35 = vld [vmem:[#allocation49_spill] sm:$0xff] }
 0x26a   :  { %v8646_v31 = vpop.f32.mrf.mxu1 }
 0x26b   :  { %v4268_v62 = vpack.c.bf16 %v8646_v31, %v8645_v58  ;;  %8899 = vmatprep.mubr.msk.bf16.mxu0 %vm2785_vm2, %v4529_v55  ;;  %v12336_v55 = vpack.c.bf16 %v12334_v51, %v12335_v45  ;;  %v12350_v51 = vld [vmem:[#allocation53_spill] sm:$0xff] }
 0x26c   :  { %v3527_v36 = vpop.f32.mrf.mxu1  ;;  %8900 = vmatmul.mubr.msk.bf16.gmra.mxu0 %vm2785_vm2, %v4530_v17 }
 0x26d   :  { %v4267_v33 = vpack.c.bf16 %v3527_v36, %v3524_v21  ;;  %v4404_v63 = vadd.bf16 %v10708_v40, %v4268_v62  ;;  %v12333_v21 = vpack.c.bf16 %v12331_v38, %v12332_v32  ;;  %v2611_v17 = vadd.bf16 %v9901_v34, %v12336_v55 }
 0x26e   :  { %v8649_v29 = vpop.f32.mrf.mxu1  ;;  %8744 = vmatmul.mubr.msk.bf16.gmra.mxu1 %vm2785_vm2, %v2732_v37 }
 0x26f   :  { %v4403_v49 = vadd.bf16 %v10708_v40, %v4267_v33  ;;  %8747 = vmatprep.mubr.msk.bf16.mxu1 %vm2785_vm2, %v2733_v26  ;;  %v4532_v47 = vmax.bf16 %v12259_v6, %v4404_v63  ;;  %v2610_v59 = vadd.bf16 %v9901_v34, %v12333_v21  ;;  %v2739_v63 = vmax.bf16 %v12259_v6, %v2611_v17 }
 0x270   :  { %v3540_v56 = vpop.f32.mrf.mxu1 }
 0x271   :  { %v4531_v42 = vmax.bf16 %v12259_v6, %v4403_v49  ;;  %v2738_v26 = vmax.bf16 %v12259_v6, %v2610_v59 }
 0x272   :  { %v8650_v50 = vpop.f32.mrf.mxu1 }
 0x273   :  { %v4270_v8 = vpack.c.bf16 %v8650_v50, %v8649_v29  ;;  %8903 = vmatprep.mubr.msk.bf16.mxu0 %vm2785_vm2, %v4531_v42  ;;  %v12342_v42 = vpack.c.bf16 %v12340_v46, %v12341_v10 }
 0x274   :  { %v3543_v57 = vpop.f32.mrf.mxu1  ;;  %8904 = vmatmul.mubr.msk.bf16.gmra.mxu0 %vm2785_vm2, %v4532_v47 }
 0x275   :  { %v4269_v3 = vpack.c.bf16 %v3543_v57, %v3540_v56  ;;  %v4406_v44 = vadd.bf16 %v10708_v40, %v4270_v8  ;;  %v12339_v56 = vpack.c.bf16 %v12337_v9, %v12338_v54  ;;  %v2613_v47 = vadd.bf16 %v9901_v34, %v12342_v42 }
 0x276   :  { %v8653_v48 = vpop.f32.mrf.mxu1  ;;  %8748 = vmatmul.mubr.msk.bf16.gmra.mxu1 %vm2785_vm2, %v2734_v25 }
 0x277   :  { %v4405_v61 = vadd.bf16 %v10708_v40, %v4269_v3  ;;  %8751 = vmatprep.mubr.msk.bf16.mxu1 %vm2785_vm2, %v2735_v2  ;;  %v4534_v41 = vmax.bf16 %v12259_v6, %v4406_v44  ;;  %v2612_v24 = vadd.bf16 %v9901_v34, %v12339_v56  ;;  %v2741_v44 = vmax.bf16 %v12259_v6, %v2613_v47  ;;  %v12355_v47 = vld [vmem:[#allocation59_spill] sm:$0xff] }
 0x278   :  { %v3556_v13 = vpop.f32.mrf.mxu1 }
 0x279   :  { %v4533_v19 = vmax.bf16 %v12259_v6, %v4405_v61  ;;  %v2740_v2 = vmax.bf16 %v12259_v6, %v2612_v24 }
 0x27a   :  { %v8654_v20 = vpop.f32.mrf.mxu1 }
 0x27b   :  { %v4272_v22 = vpack.c.bf16 %v8654_v20, %v8653_v48  ;;  %8907 = vmatprep.mubr.msk.bf16.mxu0 %vm2785_vm2, %v4533_v19  ;;  %v12348_v19 = vpack.c.bf16 %v12346_v0, %v12347_v60 }
 0x27c   :  { %v3559_v43 = vpop.f32.mrf.mxu1  ;;  %8908 = vmatmul.mubr.msk.bf16.gmra.mxu0 %vm2785_vm2, %v4534_v41 }
 0x27d   :  { %v4271_v58 = vpack.c.bf16 %v3559_v43, %v3556_v13  ;;  %v4408_v12 = vadd.bf16 %v10708_v40, %v4272_v22  ;;  %v12345_v13 = vpack.c.bf16 %v12343_v23, %v12344_v35  ;;  %v2615_v41 = vadd.bf16 %v9901_v34, %v12348_v19 }
 0x27e   :  { %v8657_v18 = vpop.f32.mrf.mxu1  ;;  %8752 = vmatmul.mubr.msk.bf16.gmra.mxu1 %vm2785_vm2, %v2736_v39 }
 0x27f   :  { %v4407_v30 = vadd.bf16 %v10708_v40, %v4271_v58  ;;  %8755 = vmatprep.mubr.msk.bf16.mxu1 %vm2785_vm2, %v2737_v52  ;;  %v4536_v62 = vmax.bf16 %v12259_v6, %v4408_v12  ;;  %v2614_v11 = vadd.bf16 %v9901_v34, %v12345_v13 }
 0x280   :  { %v3572_v7 = vpop.f32.mrf.mxu1 }
 0x281   :  { %v4535_v31 = vmax.bf16 %v12259_v6, %v4407_v30  ;;  %v2742_v52 = vmax.bf16 %v12259_v6, %v2614_v11 }
 0x282   :  { %v8658_v37 = vpop.f32.mrf.mxu1 }
 0x283   :  { %v4274_v36 = vpack.c.bf16 %v8658_v37, %v8657_v18  ;;  %8911 = vmatprep.mubr.msk.bf16.mxu0 %vm2785_vm2, %v4535_v31  ;;  %v2743_v18 = vmax.bf16 %v12259_v6, %v2615_v41  ;;  %v12353_v37 = vld [vmem:[#allocation58_spill] sm:$0xff] }
 0x284   :  { %v3575_v33 = vpop.f32.mrf.mxu1  ;;  %8912 = vmatmul.mubr.msk.bf16.gmra.mxu0 %vm2785_vm2, %v4536_v62  ;;  %v12352_v62 = vld [vmem:[#allocation60_spill] sm:$0xff] }
 0x285   :  { %v4273_v29 = vpack.c.bf16 %v3575_v33, %v3572_v7  ;;  %v4410_v49 = vadd.bf16 %v10708_v40, %v4274_v36  ;;  %v12349_v7 = vld [vmem:[#allocation55_spill] sm:$0xff]  ;;  %v12354_v36 = vpack.c.bf16 %v12352_v62, %v12353_v37 }
 0x286   :  { %v8661_v53 = vpop.f32.mrf.mxu1  ;;  %8756 = vmatmul.mubr.msk.bf16.gmra.mxu1 %vm2785_vm2, %v2738_v26  ;;  %v12351_v45 = vpack.c.bf16 %v12349_v7, %v12350_v51 }
 0x287   :  { %v4409_v1 = vadd.bf16 %v10708_v40, %v4273_v29  ;;  %8759 = vmatprep.mubr.msk.bf16.mxu1 %vm2785_vm2, %v2739_v63  ;;  %v4538_v8 = vmax.bf16 %v12259_v6, %v4410_v49  ;;  %v2617_v26 = vadd.bf16 %v9901_v34, %v12354_v36 }
 0x288   :  { %v3588_v15 = vpop.f32.mrf.mxu1  ;;  %v2616_v55 = vadd.bf16 %v9901_v34, %v12351_v45 }
 0x289   :  { %v4537_v50 = vmax.bf16 %v12259_v6, %v4409_v1  ;;  %v2745_v56 = vmax.bf16 %v12259_v6, %v2617_v26 }
 0x28a   :  { %v8662_v25 = vpop.f32.mrf.mxu1  ;;  %v2744_v1 = vmax.bf16 %v12259_v6, %v2616_v55  ;;  %v6204_v55 = vld [vmem:[%s12059_s6] sm:$0x1]  ;;  %s9243_s6 = smov [#allocation2]  }
 0x28b   :  { %v4276_v57 = vpack.c.bf16 %v8662_v25, %v8661_v53  ;;  %8915 = vmatprep.mubr.msk.bf16.mxu0 %vm2785_vm2, %v4537_v50  ;;  %v12356_v50 = vld [vmem:[#allocation57_spill] sm:$0xff]  ;;  %s7384_s19 = sshll.u32 %s9243_s6, 4  ;;  %s7385_s19 = int_to_ptr.vmem [resolvable:$true] %s7384_s19 }
 0x28c   :  { %v3591_v3 = vpop.f32.mrf.mxu1  ;;  %8916 = vmatmul.mubr.msk.bf16.gmra.mxu0 %vm2785_vm2, %v4538_v8  ;;  %v12357_v8 = vpack.c.bf16 %v12355_v47, %v12356_v50  ;;  %s9220_s20 = scalar_lea.vmem %s7385_s19, 1024  ;;  %p9225_p1 = scmp.lt.s32.totalorder %s7385_s19, %s7385_s19 }
 0x28d   :  { %v4275_v48 = vpack.c.bf16 %v3591_v3, %v3588_v15  ;;  %v4412_v61 = vadd.bf16 %v10708_v40, %v4276_v57  ;;  %v12358_v3 = vld [vmem:[#allocation64_spill] sm:$0xff]  ;;  %p9221_p0 = scmp.ne.s32.totalorder %s7385_s19, %s9220_s20  ;;  %p9226_p2 = scmp.lt.s32.totalorder %s9220_s20, %s9220_s20 }
 0x28e   :  { %v8665_v4 = vpop.f32.mrf.mxu1  ;;  %8760 = vmatmul.mubr.msk.bf16.gmra.mxu1 %vm2785_vm2, %v2740_v2  ;;  %v2618_v25 = vadd.bf16 %v9901_v34, %v12357_v8 }
 0x28f   :  { %v4411_v16 = vadd.bf16 %v10708_v40, %v4275_v48  ;;  %8763 = vmatprep.mubr.msk.bf16.mxu1 %vm2785_vm2, %v2741_v44  ;;  %v4540_v22 = vmax.bf16 %v12259_v6, %v4412_v61  ;;  %v12359_v44 = vld [vmem:[#allocation62_spill] sm:$0xff]  ;;  %p9227_p3 = por %p9226_p2, %p9225_p1 }
 0x290   :  { %v3604_v27 = vpop.f32.mrf.mxu1  ;;  %v12360_v48 = vpack.c.bf16 %v12358_v3, %v12359_v44  ;;  %v2746_v11 = vmax.bf16 %v12259_v6, %v2618_v25  ;;  %v12370_v3 = vld [vmem:[#allocation72_spill] sm:$0xff]  ;;  %v12371_v44 = vld [vmem:[#allocation70_spill] sm:$0xff] }
 0x291   :  { %v4539_v20 = vmax.bf16 %v12259_v6, %v4411_v16  ;;  %p9228_p4 = pnand %p9227_p3, %p9221_p0 }
 0x292   :  { %v8666_v39 = vpop.f32.mrf.mxu1  ;;  %v2619_v61 = vadd.bf16 %v9901_v34, %v12360_v48  ;;  %v12372_v48 = vpack.c.bf16 %v12370_v3, %v12371_v44 }
 0x293   :  { %v4278_v43 = vpack.c.bf16 %v8666_v39, %v8665_v4  ;;  %8919 = vmatprep.mubr.msk.bf16.mxu0 %vm2785_vm2, %v4539_v20 }
 0x294   :  { %v3607_v58 = vpop.f32.mrf.mxu1  ;;  %v11152_v12 = vpop.f32.mrf.mxu0  ;;  %8920 = vmatmul.mubr.msk.bf16.gmra.mxu0 %vm2785_vm2, %v4540_v22  ;;  %v2747_v60 = vmax.bf16 %v12259_v6, %v2619_v61  ;;  %v2623_v61 = vadd.bf16 %v9901_v34, %v12372_v48 }
 0x295   :  { %v4277_v30 = vpack.c.bf16 %v3607_v58, %v3604_v27  ;;  %v4414_v38 = vadd.bf16 %v10708_v40, %v4278_v43  ;;  %v12361_v43 = vld [vmem:[#allocation63_spill] sm:$0xff] }
 0x296   :  { %v8669_v32 = vpop.f32.mrf.mxu1  ;;  %8764 = vmatmul.mubr.msk.bf16.gmra.mxu1 %vm2785_vm2, %v2742_v52  ;;  %v11158_v21 = vpop.f32.mrf.mxu0  ;;  %v12362_v52 = vld [vmem:[#allocation61_spill] sm:$0xff] }
 0x297   :  { %v4413_v59 = vadd.bf16 %v10708_v40, %v4277_v30  ;;  %8767 = vmatprep.mubr.msk.bf16.mxu1 %vm2785_vm2, %v2743_v18  ;;  %v4542_v63 = vmax.bf16 %v12259_v6, %v4414_v38  ;;  %v12363_v58 = vpack.c.bf16 %v12361_v43, %v12362_v52 }
 0x298   :  { %v3620_v17 = vpop.f32.mrf.mxu1  ;;  %v11166_v31 = vpop.f32.mrf.mxu0 }
 0x299   :  { %v4541_v33 = vmax.bf16 %v12259_v6, %v4413_v59  ;;  %v2620_v18 = vadd.bf16 %v9901_v34, %v12363_v58  ;;  %v12365_v59 = vld [vmem:[#allocation66_spill] sm:$0xff] }
 0x29a   :  { %v8670_v29 = vpop.f32.mrf.mxu1  ;;  %v11174_v49 = vpop.f32.mrf.mxu0 }
 0x29b   :  { %v4280_v53 = vpack.c.bf16 %v8670_v29, %v8669_v32  ;;  %8923 = vmatprep.mubr.msk.bf16.mxu0 %vm2785_vm2, %v4541_v33  ;;  %v12364_v32 = vld [vmem:[#allocation68_spill] sm:$0xff]  ;;  %v2748_v26 = vmax.bf16 %v12259_v6, %v2620_v18  ;;  %v6076_v50 = vpack.c.bf16 %v11174_v49, %v11158_v21 }
 0x29c   :  { %v3623_v9 = vpop.f32.mrf.mxu1  ;;  %v11178_v54 = vpop.f32.mrf.mxu0  ;;  %8924 = vmatmul.mubr.msk.bf16.gmra.mxu0 %vm2785_vm2, %v4542_v63  ;;  %v12366_v7 = vpack.c.bf16 %v12364_v32, %v12365_v59  ;;  %v12373_v32 = vld [vmem:[#allocation71_spill] sm:$0xff]  ;;  %v12374_v59 = vld [vmem:[#allocation69_spill] sm:$0xff] }
 0x29d   :  { %v4279_v24 = vpack.c.bf16 %v3623_v9, %v3620_v17  ;;  %v4416_v15 = vadd.bf16 %v10708_v40, %v4280_v53  ;;  %v6206_v53 = vpack.i.b16 %v6204_v55, %v6204_v55  ;;  %v12377_v55 = vld [vmem:[#allocation74_spill] sm:$0xff] }
 0x29e   :  { %v8673_v46 = vpop.f32.mrf.mxu1  ;;  %8768 = vmatmul.mubr.msk.bf16.gmra.mxu1 %vm2785_vm2, %v2744_v1  ;;  %v11184_v10 = vpop.f32.mrf.mxu0  ;;  %v2621_v51 = vadd.bf16 %v9901_v34, %v12366_v7  ;;  %v12375_v7 = vpack.c.bf16 %v12373_v32, %v12374_v59 }
 0x29f   :  { %v4415_v42 = vadd.bf16 %v10708_v40, %v4279_v24  ;;  %8771 = vmatprep.mubr.msk.bf16.mxu1 %vm2785_vm2, %v2745_v56  ;;  %v4544_v16 = vmax.bf16 %v12259_v6, %v4416_v15  ;;  %v12367_v24 = vld [vmem:[#allocation67_spill] sm:$0xff]  ;;  %v12368_v15 = vld [vmem:[#allocation65_spill] sm:$0xff] }
 0x2a0   :  { %v3636_v57 = vpop.f32.mrf.mxu1  ;;  %v11192_v2 = vpop.f32.mrf.mxu0  ;;  %v2749_v29 = vmax.bf16 %v12259_v6, %v2621_v51  ;;  %v2624_v51 = vadd.bf16 %v9901_v34, %v12375_v7 }
 0x2a1   :  { %v4543_v4 = vmax.bf16 %v12259_v6, %v4415_v42  ;;  %v6079_v21 = vpack.c.bf16 %v11192_v2, %v11178_v54  ;;  %v2751_v54 = vmax.bf16 %v12259_v6, %v2623_v61 }
 0x2a2   :  { %v8674_v23 = vpop.f32.mrf.mxu1  ;;  %v11200_v35 = vpop.f32.mrf.mxu0 }
 0x2a3   :  { %v4282_v13 = vpack.c.bf16 %v8674_v23, %v8673_v46  ;;  %8927 = vmatprep.mubr.msk.bf16.mxu0 %vm2785_vm2, %v4543_v4  ;;  %v12369_v46 = vpack.c.bf16 %v12367_v24, %v12368_v15  ;;  %v11246_v4 = vrot.slane %v6206_v53, %v9878_v5  ;;  %v6077_v23 = vpack.c.bf16 %v11166_v31, %v11152_v12 }
 0x2a4   :  { %v3639_v27 = vpop.f32.mrf.mxu1  ;;  %v11204_v0 = vpop.f32.mrf.mxu0  ;;  %8928 = vmatmul.mubr.msk.bf16.gmra.mxu0 %vm2785_vm2, %v4544_v16  ;;  %v6078_v16 = vpack.c.bf16 %v11200_v35, %v11184_v10 }
 0x2a5   :  { %v4281_v19 = vpack.c.bf16 %v3639_v27, %v3636_v57  ;;  %v4418_v41 = vadd.bf16 %v10708_v40, %v4282_v13  ;;  %v2622_v42 = vadd.bf16 %v9901_v34, %v12369_v46  ;;  %v6212_v5 = vadd.bf16 %v11246_v4, %v6076_v50 }
 0x2a6   :  { %v8677_v20 = vpop.f32.mrf.mxu1  ;;  %8772 = vmatmul.mubr.msk.bf16.gmra.mxu1 %vm2785_vm2, %v2746_v11  ;;  %v5085_v22 = vpop.f32.mrf.mxu0  ;;  %v6214_v2 = vadd.bf16 %v11246_v4, %v6078_v16  ;;  %v6215_v43 = vadd.bf16 %v11246_v4, %v6079_v21 }
 0x2a7   :  { %v4417_v39 = vadd.bf16 %v10708_v40, %v4281_v19  ;;  %8775 = vmatprep.mubr.msk.bf16.mxu1 %vm2785_vm2, %v2747_v60  ;;  %v4546_v17 = vmax.bf16 %v12259_v6, %v4418_v41  ;;  %v2750_v60 = vmax.bf16 %v12259_v6, %v2622_v42 }
 0x2a8   :  { %v3652_v30 = vpop.f32.mrf.mxu1  ;;  %v11216_v38 = vpop.f32.mrf.mxu0 }
 0x2a9   :  { %v4545_v45 = vmax.bf16 %v12259_v6, %v4417_v39  ;;  %v6081_v10 = vpack.c.bf16 %v11216_v38, %v11204_v0  ;;  %v6213_v39 = vadd.bf16 %v11246_v4, %v6077_v23 }
 0x2aa   :  { %v8678_v62 = vpop.f32.mrf.mxu1  ;;  %v5088_v37 = vpop.f32.mrf.mxu0 }
 0x2ab   :  { %v4284_v36 = vpack.c.bf16 %v8678_v62, %v8677_v20  ;;  %8931 = vmatprep.mubr.msk.bf16.mxu0 %vm2785_vm2, %v4545_v45  ;;  %v6080_v49 = vpack.c.bf16 %v5088_v37, %v5085_v22  ;;  %v12376_v45 = vld [vmem:[#allocation76_spill] sm:$0xff]  ;;  %v6340_v37 = vmax.bf16 %v12259_v6, %v6212_v5 }
 0x2ac   :  { %v3655_v33 = vpop.f32.mrf.mxu1  ;;  %v8837_v63 = vpop.f32.mrf.mxu0  ;;  %8932 = vmatmul.mubr.msk.bf16.gmra.mxu0 %vm2785_vm2, %v4546_v17  ;;  %v12378_v17 = vpack.c.bf16 %v12376_v45, %v12377_v55 }
 0x2ad   :  { %v4283_v1 = vpack.c.bf16 %v3655_v33, %v3652_v30  ;;  %v4420_v47 = vadd.bf16 %v10708_v40, %v4284_v36  ;;  %v6216_v0 = vadd.bf16 %v11246_v4, %v6080_v49  ;;  %v6217_v36 = vadd.bf16 %v11246_v4, %v6081_v10 }
 0x2ae   :  { %v8681_v9 = vpop.f32.mrf.mxu1  ;;  %8776 = vmatmul.mubr.msk.bf16.gmra.mxu1 %vm2785_vm2, %v2748_v26  ;;  %v5101_v56 = vpop.f32.mrf.mxu0  ;;  %v2625_v62 = vadd.bf16 %v9901_v34, %v12378_v17 }
 0x2af   :  { %8779 = vmatprep.mubr.msk.bf16.mxu1 %vm2785_vm2, %v2749_v29  ;;  %v4419_v8 = vadd.bf16 %v10708_v40, %v4283_v1  ;;  %v4548_v19 = vmax.bf16 %v12259_v6, %v4420_v47  ;;  %v6344_v24 = vmax.bf16 %v12259_v6, %v6216_v0  ;;  %v6345_v44 = vmax.bf16 %v12259_v6, %v6217_v36  ;;  %v12386_v36 = vld [vmem:[#allocation77_spill] sm:$0xff] }
 0x2b0   :  { %v3668_v25 = vpop.f32.mrf.mxu1  ;;  %v8838_v57 = vpop.f32.mrf.mxu0  ;;  %v2753_v16 = vmax.bf16 %v12259_v6, %v2625_v62 }
 0x2b1   :  { %v4547_v13 = vmax.bf16 %v12259_v6, %v4419_v8  ;;  %v6083_v20 = vpack.c.bf16 %v8838_v57, %v8837_v63  ;;  %v6342_v63 = vmax.bf16 %v12259_v6, %v6214_v2  ;;  %v2752_v57 = vmax.bf16 %v12259_v6, %v2624_v51  ;;  %v12382_v2 = vld [vmem:[#allocation80_spill] sm:$0xff] }
 0x2b2   :  { %v8682_v11 = vpop.f32.mrf.mxu1  ;;  %v5104_v27 = vpop.f32.mrf.mxu0 }
 0x2b3   :  { %v4286_v35 = vpack.c.bf16 %v8682_v11, %v8681_v9  ;;  %v6082_v41 = vpack.c.bf16 %v5104_v27, %v5101_v56  ;;  %8935 = vmatprep.mubr.msk.bf16.mxu0 %vm2785_vm2, %v4547_v13  ;;  %v6219_v29 = vadd.bf16 %v11246_v4, %v6083_v20  ;;  %v6341_v9 = vmax.bf16 %v12259_v6, %v6213_v39  ;;  %v12379_v13 = vld [vmem:[#allocation75_spill] sm:$0xff]  ;;  %v12380_v11 = vld [vmem:[#allocation73_spill] sm:$0xff]  ;;  %v12383_v20 = vld [vmem:[#allocation78_spill] sm:$0xff] }
 0x2b4   :  { %v3671_v12 = vpop.f32.mrf.mxu1  ;;  %v8841_v31 = vpop.f32.mrf.mxu0  ;;  %8936 = vmatmul.mubr.msk.bf16.gmra.mxu0 %vm2785_vm2, %v4548_v19  ;;  %v6343_v56 = vmax.bf16 %v12259_v6, %v6215_v43  ;;  %v12381_v27 = vpack.c.bf16 %v12379_v13, %v12380_v11  ;;  %v6490_v19 = vmax.bf16 %v6345_v44, %v6344_v24 }
 0x2b5   :  { %v4285_v22 = vpack.c.bf16 %v3671_v12, %v3668_v25  ;;  %v4422_v52 = vadd.bf16 %v10708_v40, %v4286_v35  ;;  %v6218_v30 = vadd.bf16 %v11246_v4, %v6082_v41  ;;  %v6468_v3 = vmax.bf16 %v6341_v9, %v6340_v37  ;;  %v12385_v37 = vld [vmem:[#allocation79_spill] sm:$0xff] }
 0x2b6   :  { %v8685_v58 = vpop.f32.mrf.mxu1  ;;  %8780 = vmatmul.mubr.msk.bf16.gmra.mxu1 %vm2785_vm2, %v2750_v60  ;;  %v5117_v18 = vpop.f32.mrf.mxu0  ;;  %v6479_v23 = vmax.bf16 %v6343_v56, %v6342_v63  ;;  %v6347_v21 = vmax.bf16 %v12259_v6, %v6219_v29  ;;  %v2626_v60 = vadd.bf16 %v9901_v34, %v12381_v27  ;;  %v6491_v7 = vunpack.i.l.bf16 %v6490_v19 }
 0x2b7   :  { %v4421_v38 = vadd.bf16 %v10708_v40, %v4285_v22  ;;  %8783 = vmatprep.mubr.msk.bf16.mxu1 %vm2785_vm2, %v2751_v54  ;;  %v4550_v15 = vmax.bf16 %v12259_v6, %v4422_v52  ;;  %v6346_v47 = vmax.bf16 %v12259_v6, %v6218_v30  ;;  %v12384_v22 = vpack.c.bf16 %v12382_v2, %v12383_v20 }
 0x2b8   :  { %v3684_v26 = vpop.f32.mrf.mxu1  ;;  %v8842_v33 = vpop.f32.mrf.mxu0  ;;  %v6469_v43 = vunpack.i.l.bf16 %v6468_v3  ;;  %v6480_v30 = vunpack.i.l.bf16 %v6479_v23  ;;  %v6481_v59 = vunpack.i.h.bf16 %v6479_v23  ;;  %v6492_v51 = vunpack.i.h.bf16 %v6490_v19  ;;  %v12389_v19 = vld [vmem:[#allocation82_spill] sm:$0xff] }
 0x2b9   :  { %v4549_v53 = vmax.bf16 %v12259_v6, %v4421_v38  ;;  %v6085_v1 = vpack.c.bf16 %v8842_v33, %v8841_v31  ;;  %v6501_v41 = vmax.bf16 %v6347_v21, %v6346_v47  ;;  %v2627_v39 = vadd.bf16 %v9901_v34, %v12384_v22 }
 0x2ba   :  { %v8686_v46 = vpop.f32.mrf.mxu1  ;;  %v5120_v42 = vpop.f32.mrf.mxu0  ;;  %v2754_v62 = vmax.bf16 %v12259_v6, %v2626_v60  ;;  %v12388_v60 = vld [vmem:[#allocation84_spill] sm:$0xff] }
 0x2bb   :  { %v6221_v50 = vadd.bf16 %v11246_v4, %v6085_v1  ;;  %v4288_v8 = vpack.c.bf16 %v8686_v46, %v8685_v58  ;;  %v6084_v25 = vpack.c.bf16 %v5120_v42, %v5117_v18  ;;  %8939 = vmatprep.mubr.msk.bf16.mxu0 %vm2785_vm2, %v4549_v53  ;;  %v6470_v18 = vunpack.i.h.bf16 %v6468_v3 }
 0x2bc   :  { %v3687_v48 = vpop.f32.mrf.mxu1  ;;  %v8845_v61 = vpop.f32.mrf.mxu0  ;;  %8940 = vmatmul.mubr.msk.bf16.gmra.mxu0 %vm2785_vm2, %v4550_v15  ;;  %v6502_v63 = vunpack.i.l.bf16 %v6501_v41  ;;  %v6503_v53 = vunpack.i.h.bf16 %v6501_v41  ;;  %v2755_v46 = vmax.bf16 %v12259_v6, %v2627_v39 }
 0x2bd   :  { %v6220_v49 = vadd.bf16 %v11246_v4, %v6084_v25  ;;  %v4287_v5 = vpack.c.bf16 %v3687_v48, %v3684_v26  ;;  %v6349_v12 = vmax.bf16 %v12259_v6, %v6221_v50  ;;  %v4424_v31 = vadd.bf16 %v10708_v40, %v4288_v8 }
 0x2be   :  { %v8689_v10 = vpop.f32.mrf.mxu1  ;;  %8784 = vmatmul.mubr.msk.bf16.gmra.mxu1 %vm2785_vm2, %v2752_v57  ;;  %v5133_v35 = vpop.f32.mrf.mxu0  ;;  %v12387_v26 = vpack.c.bf16 %v12385_v37, %v12386_v36  ;;  %v6471_v8 = vmax.f32 %v6469_v43, %v6470_v18  ;;  %v6482_v25 = vmax.f32 %v6480_v30, %v6481_v59  ;;  %v6493_v57 = vmax.f32 %v6491_v7, %v6492_v51  ;;  %v12391_v18 = vld [vmem:[#allocation83_spill] sm:$0xff]  ;;  %v12392_v30 = vld [vmem:[#allocation81_spill] sm:$0xff] }
 0x2bf   :  { %v6348_v54 = vmax.bf16 %v12259_v6, %v6220_v49  ;;  %8787 = vmatprep.mubr.msk.bf16.mxu1 %vm2785_vm2, %v2753_v16  ;;  %v4423_v0 = vadd.bf16 %v10708_v40, %v4287_v5  ;;  %v4552_v29 = vmax.bf16 %v12259_v6, %v4424_v31  ;;  %v6504_v21 = vmax.f32 %v6502_v63, %v6503_v53 }
 0x2c0   :  { %v3700_v52 = vpop.f32.mrf.mxu1  ;;  %v8846_v58 = vpop.f32.mrf.mxu0  ;;  %v2628_v33 = vadd.bf16 %v9901_v34, %v12387_v26  ;;  %v12390_v5 = vpack.c.bf16 %v12388_v60, %v12389_v19  ;;  %v6472_v31 = vrot.slane %v6471_v8, 4  ;;  %v6494_v2 = vrot.slane %v6493_v57, 4 }
 0x2c1   :  { %v6512_v38 = vmax.bf16 %v6349_v12, %v6348_v54  ;;  %v6087_v32 = vpack.c.bf16 %v8846_v58, %v8845_v61  ;;  %v4551_v45 = vmax.bf16 %v12259_v6, %v4423_v0  ;;  %v6483_v54 = vrot.slane %v6482_v25, 4 }
 0x2c2   :  { %v8690_v55 = vpop.f32.mrf.mxu1  ;;  %v5136_v17 = vpop.f32.mrf.mxu0  ;;  %v2756_v23 = vmax.bf16 %v12259_v6, %v2628_v33  ;;  %v6505_v59 = vrot.slane %v6504_v21, 4  ;;  %v6473_v36 = vmax.f32 %v6471_v8, %v6472_v31 }
 0x2c3   :  { %v6223_v1 = vadd.bf16 %v11246_v4, %v6087_v32  ;;  %v4290_v9 = vpack.c.bf16 %v8690_v55, %v8689_v10  ;;  %v6086_v56 = vpack.c.bf16 %v5136_v17, %v5133_v35  ;;  %8943 = vmatprep.mubr.msk.bf16.mxu0 %vm2785_vm2, %v4551_v45  ;;  %v6513_v42 = vunpack.i.l.bf16 %v6512_v38 }
 0x2c4   :  { %v3703_v24 = vpop.f32.mrf.mxu1  ;;  %v8849_v15 = vpop.f32.mrf.mxu0  ;;  %v6514_v47 = vunpack.i.h.bf16 %v6512_v38  ;;  %8944 = vmatmul.mubr.msk.bf16.gmra.mxu0 %vm2785_vm2, %v4552_v29  ;;  %v2629_v10 = vadd.bf16 %v9901_v34, %v12390_v5  ;;  %v12393_v38 = vpack.c.bf16 %v12391_v18, %v12392_v30  ;;  %v6484_v26 = vmax.f32 %v6482_v25, %v6483_v54  ;;  %v12394_v25 = vld [vmem:[#allocation88_spill] sm:$0xff] }
 0x2c5   :  { %v4289_v50 = vpack.c.bf16 %v3703_v24, %v3700_v52  ;;  %v6222_v3 = vadd.bf16 %v11246_v4, %v6086_v56  ;;  %v4426_v61 = vadd.bf16 %v10708_v40, %v4290_v9  ;;  %v6351_v49 = vmax.bf16 %v12259_v6, %v6223_v1 }
 0x2c6   :  { %v8693_v44 = vpop.f32.mrf.mxu1  ;;  %8788 = vmatmul.mubr.msk.bf16.gmra.mxu1 %vm2785_vm2, %v2754_v62  ;;  %v5149_v48 = vpop.f32.mrf.mxu0  ;;  %v6515_v35 = vmax.f32 %v6513_v42, %v6514_v47  ;;  %v2630_v32 = vadd.bf16 %v9901_v34, %v12393_v38  ;;  %v2757_v17 = vmax.bf16 %v12259_v6, %v2629_v10  ;;  %v6495_v1 = vmax.f32 %v6493_v57, %v6494_v2 }
 0x2c7   :  { %v4425_v16 = vadd.bf16 %v10708_v40, %v4289_v50  ;;  %8791 = vmatprep.mubr.msk.bf16.mxu1 %vm2785_vm2, %v2755_v46  ;;  %v6350_v13 = vmax.bf16 %v12259_v6, %v6222_v3  ;;  %v4554_v43 = vmax.bf16 %v12259_v6, %v4426_v61  ;;  %v6506_v46 = vmax.f32 %v6504_v21, %v6505_v59  ;;  %v12395_v3 = vld [vmem:[#allocation86_spill] sm:$0xff] }
 0x2c8   :  { %v3716_v11 = vpop.f32.mrf.mxu1  ;;  %v8850_v27 = vpop.f32.mrf.mxu0  ;;  %v6516_v62 = vrot.slane %v6515_v35, 4  ;;  %v6496_v60 = vrot.slane %v6495_v1, 2 }
 0x2c9   :  { %v4553_v41 = vmax.bf16 %v12259_v6, %v4425_v16  ;;  %v6089_v12 = vpack.c.bf16 %v8850_v27, %v8849_v15  ;;  %v6523_v20 = vmax.bf16 %v6351_v49, %v6350_v13  ;;  %v2758_v15 = vmax.bf16 %v12259_v6, %v2630_v32 }
 0x2ca   :  { %v8694_v22 = vpop.f32.mrf.mxu1  ;;  %v5152_v39 = vpop.f32.mrf.mxu0  ;;  %v6485_v49 = vrot.slane %v6484_v26, 2 }
 0x2cb   :  { %v6225_v0 = vadd.bf16 %v11246_v4, %v6089_v12  ;;  %v4292_v52 = vpack.c.bf16 %v8694_v22, %v8693_v44  ;;  %v6088_v58 = vpack.c.bf16 %v5152_v39, %v5149_v48  ;;  %8947 = vmatprep.mubr.msk.bf16.mxu0 %vm2785_vm2, %v4553_v41  ;;  %v6524_v7 = vunpack.i.l.bf16 %v6523_v20 }
 0x2cc   :  { %v6525_v51 = vunpack.i.h.bf16 %v6523_v20  ;;  %v3719_v45 = vpop.f32.mrf.mxu1  ;;  %v8853_v55 = vpop.f32.mrf.mxu0  ;;  %8948 = vmatmul.mubr.msk.bf16.gmra.mxu0 %vm2785_vm2, %v4554_v43  ;;  %v12396_v44 = vpack.c.bf16 %v12394_v25, %v12395_v3  ;;  %v6517_v48 = vmax.f32 %v6515_v35, %v6516_v62  ;;  %v6507_v41 = vrot.slane %v6506_v46, 2 }
 0x2cd   :  { %v6224_v37 = vadd.bf16 %v11246_v4, %v6088_v58  ;;  %v4291_v63 = vpack.c.bf16 %v3719_v45, %v3716_v11  ;;  %v6353_v9 = vmax.bf16 %v12259_v6, %v6225_v0  ;;  %v4428_v56 = vadd.bf16 %v10708_v40, %v4292_v52  ;;  %v12397_v0 = vld [vmem:[#allocation87_spill] sm:$0xff]  ;;  %v12398_v52 = vld [vmem:[#allocation85_spill] sm:$0xff] }
 0x2ce   :  { %v6526_v33 = vmax.f32 %v6524_v7, %v6525_v51  ;;  %v8697_v29 = vpop.f32.mrf.mxu1  ;;  %8792 = vmatmul.mubr.msk.bf16.gmra.mxu1 %vm2785_vm2, %v2756_v23  ;;  %v5165_v53 = vpop.f32.mrf.mxu0  ;;  %v2631_v57 = vadd.bf16 %v9901_v34, %v12396_v44  ;;  %v6474_v23 = vrot.slane %v6473_v36, 2  ;;  %v6518_v22 = vrot.slane %v6517_v48, 2 }
 0x2cf   :  { %v6352_v24 = vmax.bf16 %v12259_v6, %v6224_v37  ;;  %8795 = vmatprep.mubr.msk.bf16.mxu1 %vm2785_vm2, %v2757_v17  ;;  %v4427_v47 = vadd.bf16 %v10708_v40, %v4291_v63  ;;  %v4556_v19 = vmax.bf16 %v12259_v6, %v4428_v56  ;;  %v12399_v58 = vpack.c.bf16 %v12397_v0, %v12398_v52 }
 0x2d0   :  { %v6527_v42 = vrot.slane %v6526_v33, 4  ;;  %v3732_v50 = vpop.f32.mrf.mxu1  ;;  %v8854_v8 = vpop.f32.mrf.mxu0  ;;  %v2759_v20 = vmax.bf16 %v12259_v6, %v2631_v57  ;;  %v6486_v30 = vmax.f32 %v6484_v26, %v6485_v49  ;;  %v6497_v51 = vmax.f32 %v6495_v1, %v6496_v60 }
 0x2d1   :  { %v6534_v61 = vmax.bf16 %v6353_v9, %v6352_v24  ;;  %v6091_v16 = vpack.c.bf16 %v8854_v8, %v8853_v55  ;;  %v4555_v11 = vmax.bf16 %v12259_v6, %v4427_v47  ;;  %v2632_v18 = vadd.bf16 %v9901_v34, %v12399_v58  ;;  %v12401_v9 = vld [vmem:[#allocation90_spill] sm:$0xff] }
 0x2d2   :  { %v6528_v13 = vmax.f32 %v6526_v33, %v6527_v42  ;;  %v8698_v27 = vpop.f32.mrf.mxu1  ;;  %v5168_v21 = vpop.f32.mrf.mxu0  ;;  %v6475_v62 = vmax.f32 %v6473_v36, %v6474_v23  ;;  %v6508_v37 = vmax.f32 %v6506_v46, %v6507_v41  ;;  %v6519_v24 = vmax.f32 %v6517_v48, %v6518_v22 }
 0x2d3   :  { %v6535_v5 = vunpack.i.l.bf16 %v6534_v61  ;;  %v6536_v10 = vunpack.i.h.bf16 %v6534_v61  ;;  %v6227_v12 = vadd.bf16 %v11246_v4, %v6091_v16  ;;  %v4294_v31 = vpack.c.bf16 %v8698_v27, %v8697_v29  ;;  %8951 = vmatprep.mubr.msk.bf16.mxu0 %vm2785_vm2, %v4555_v11 }
 0x2d4   :  { %v6090_v54 = vpack.c.bf16 %v5168_v21, %v5165_v53  ;;  %v3735_v35 = vpop.f32.mrf.mxu1  ;;  %v11361_v2 = vpop.f32.mrf.mxu0  ;;  %8952 = vmatmul.mubr.msk.bf16.gmra.mxu0 %vm2785_vm2, %v4556_v19  ;;  %v6529_v38 = vrot.slane %v6528_v13, 2  ;;  %v12400_v53 = vld [vmem:[#allocation92_spill] sm:$0xff]  ;;  %v2760_v47 = vmax.bf16 %v12259_v6, %v2632_v18  ;;  %v6487_v36 = vrot.slane %v6486_v30, 1  ;;  %v12403_v21 = vld [vmem:[#allocation91_spill] sm:$0xff] }
 0x2d5   :  { %v6537_v39 = vmax.f32 %v6535_v5, %v6536_v10  ;;  %v4293_v43 = vpack.c.bf16 %v3735_v35, %v3732_v50  ;;  %v4430_v55 = vadd.bf16 %v10708_v40, %v4294_v31  ;;  %v6355_v26 = vmax.bf16 %v12259_v6, %v6227_v12 }
 0x2d6   :  { %v6226_v32 = vadd.bf16 %v11246_v4, %v6090_v54  ;;  %v8701_v59 = vpop.f32.mrf.mxu1  ;;  %8796 = vmatmul.mubr.msk.bf16.gmra.mxu1 %vm2785_vm2, %v2758_v15  ;;  %v11371_v7 = vpop.f32.mrf.mxu0  ;;  %v12402_v56 = vpack.c.bf16 %v12400_v53, %v12401_v9  ;;  %v6530_v46 = vmax.f32 %v6528_v13, %v6529_v38  ;;  %v6498_v3 = vrot.slane %v6497_v51, 1  ;;  %v12404_v13 = vld [vmem:[#allocation89_spill] sm:$0xff]  ;;  %v12408_v9 = vld [vmem:[#allocation95_spill] sm:$0xff] }
 0x2d7   :  { %v6538_v45 = vrot.slane %v6537_v39, 4  ;;  %v4429_v17 = vadd.bf16 %v10708_v40, %v4293_v43  ;;  %8799 = vmatprep.mubr.msk.bf16.mxu1 %vm2785_vm2, %v2759_v20  ;;  %v4558_v57 = vmax.bf16 %v12259_v6, %v4430_v55  ;;  %v6476_v16 = vrot.slane %v6475_v62, 1 }
 0x2d8   :  { %v6354_v33 = vmax.bf16 %v12259_v6, %v6226_v32  ;;  %v3748_v63 = vpop.f32.mrf.mxu1  ;;  %v11378_v29 = vpop.f32.mrf.mxu0  ;;  %v2633_v1 = vadd.bf16 %v9901_v34, %v12402_v56  ;;  %v6509_v48 = vrot.slane %v6508_v37, 1  ;;  %v12405_v60 = vpack.c.bf16 %v12403_v21, %v12404_v13  ;;  %v12409_v56 = vld [vmem:[#allocation93_spill] sm:$0xff] }
 0x2d9   :  { %v6539_v15 = vmax.f32 %v6537_v39, %v6538_v45  ;;  %v4557_v42 = vmax.bf16 %v12259_v6, %v4429_v17  ;;  %v6520_v10 = vrot.slane %v6519_v24, 1  ;;  %v6488_v12 = vmax.f32 %v6486_v30, %v6487_v36  ;;  %v12406_v45 = vld [vmem:[#allocation94_spill] sm:$0xff] }
 0x2da   :  { %v6545_v50 = vmax.bf16 %v6355_v26, %v6354_v33  ;;  %v8702_v8 = vpop.f32.mrf.mxu1  ;;  %v11386_v25 = vpop.f32.mrf.mxu0  ;;  %v2634_v19 = vadd.bf16 %v9901_v34, %v12405_v60  ;;  %v2761_v5 = vmax.bf16 %v12259_v6, %v2633_v1  ;;  %v6531_v31 = vrot.slane %v6530_v46, 1 }
 0x2db   :  { %v6540_v44 = vrot.slane %v6539_v15, 2  ;;  %v4296_v61 = vpack.c.bf16 %v8702_v8, %v8701_v59  ;;  %8955 = vmatprep.mubr.msk.bf16.mxu0 %vm2785_vm2, %v4557_v42  ;;  %v6499_v39 = vmax.f32 %v6497_v51, %v6498_v3  ;;  %v6477_v52 = vmax.f32 %v6475_v62, %v6476_v16 }
 0x2dc   :  { %v6546_v23 = vunpack.i.l.bf16 %v6545_v50  ;;  %v6547_v49 = vunpack.i.h.bf16 %v6545_v50  ;;  %v3751_v11 = vpop.f32.mrf.mxu1  ;;  %v11390_v27 = vpop.f32.mrf.mxu0  ;;  %8956 = vmatmul.mubr.msk.bf16.gmra.mxu0 %vm2785_vm2, %v4558_v57  ;;  %v6510_v58 = vmax.f32 %v6508_v37, %v6509_v48  ;;  %v2762_v59 = vmax.bf16 %v12259_v6, %v2634_v19  ;;  %v12411_v57 = vld [vmem:[#allocation97_spill] sm:$0xff] }
 0x2dd   :  { %v6541_v41 = vmax.f32 %v6539_v15, %v6540_v44  ;;  %v4295_v35 = vpack.c.bf16 %v3751_v11, %v3748_v63  ;;  %v4432_v0 = vadd.bf16 %v10708_v40, %v4296_v61  ;;  %v12407_v55 = vpack.c.bf16 %v10640_v14, %v12406_v45 }
 0x2de   :  { %v6548_v54 = vmax.f32 %v6546_v23, %v6547_v49  ;;  %v8705_v20 = vpop.f32.mrf.mxu1  ;;  %8800 = vmatmul.mubr.msk.bf16.gmra.mxu1 %vm2785_vm2, %v2760_v47  ;;  %v11399_v22 = vpop.f32.mrf.mxu0  ;;  %v6521_v17 = vmax.f32 %v6519_v24, %v6520_v10  ;;  %v6489_v26 = vpack.i.bf16 %v6488_v12, %v6488_v12  ;;  %v6532_v33 = vmax.f32 %v6530_v46, %v6531_v31 }
 0x2df   :  { %v6542_v43 = vrot.slane %v6541_v41, 1  ;;  %8803 = vmatprep.mubr.msk.bf16.mxu1 %vm2785_vm2, %v2761_v5  ;;  %v4431_v38 = vadd.bf16 %v10708_v40, %v4295_v35  ;;  %v2635_v51 = vadd.bf16 %v9901_v34, %v12407_v55  ;;  %v12410_v1 = vpack.c.bf16 %v12408_v9, %v12409_v56 }
 0x2e0   :  { %v6549_v18 = vrot.slane %v6548_v54, 4  ;;  %v3764_v30 = vpop.f32.mrf.mxu1  ;;  %v11404_v32 = vpop.f32.mrf.mxu0  ;;  %v6500_v42 = vpack.i.bf16 %v6499_v39, %v6499_v39  ;;  %v4560_v14 = vmax.bf16 %v12259_v6, %v4432_v0  ;;  %v6478_v36 = vpack.i.bf16 %v6477_v52, %v6477_v52 }
 0x2e1   :  { %v4559_v62 = vmax.bf16 %v12259_v6, %v4431_v38  ;;  %v2636_v15 = vadd.bf16 %v9901_v34, %v12410_v1  ;;  %v6543_v47 = vmax.f32 %v6541_v41, %v6542_v43  ;;  %v6511_v50 = vpack.i.bf16 %v6510_v58, %v6510_v58 }
 0x2e2   :  { %v6550_v63 = vmax.f32 %v6548_v54, %v6549_v18  ;;  %v8706_v37 = vpop.f32.mrf.mxu1  ;;  %v11412_v53 = vpop.f32.mrf.mxu0  ;;  %v2763_v44 = vmax.bf16 %v12259_v6, %v2635_v51  ;;  %v12412_v61 = vpack.c.bf16 %v10668_v28, %v12411_v57  ;;  %v6522_v48 = vpack.i.bf16 %v6521_v17, %v6521_v17 }
 0x2e3   :  { %v4298_v8 = vpack.c.bf16 %v8706_v37, %v8705_v20  ;;  %8959 = vmatprep.mubr.msk.bf16.mxu0 %vm2785_vm2, %v4559_v62  ;;  %v7173_v49 = vunpack.c.l.bf16 %v6489_v26  ;;  %v6533_v11 = vpack.i.bf16 %v6532_v33, %v6532_v33  ;;  %v7174_v19 = vunpack.c.l.bf16 %v6500_v42  ;;  %v12413_v42 = vld [vmem:[#allocation98_spill] sm:$0xff] }
 0x2e4   :  { %v6551_v24 = vrot.slane %v6550_v63, 2  ;;  %v3767_v46 = vpop.f32.mrf.mxu1  ;;  %v11420_v3 = vpop.f32.mrf.mxu0  ;;  %v2637_v16 = vadd.bf16 %v9901_v34, %v12412_v61  ;;  %8960 = vmatmul.mubr.msk.bf16.gmra.mxu0 %vm2785_vm2, %v4560_v14  ;;  %v6544_v5 = vpack.i.bf16 %v6543_v47, %v6543_v47  ;;  %v7172_v41 = vunpack.c.l.bf16 %v6478_v36  ;;  %v12414_v47 = vld [vmem:[#allocation96_spill] sm:$0xff] }
 0x2e5   :  { %v4297_v23 = vpack.c.bf16 %v3767_v46, %v3764_v30  ;;  %v4434_v10 = vadd.bf16 %v10708_v40, %v4298_v8  ;;  %v7175_v12 = vunpack.c.l.bf16 %v6511_v50  ;;  %v7176_v20 = vunpack.c.l.bf16 %v6522_v48  ;;  %v12417_v48 = vld [vmem:[#allocation100_spill] sm:$0xff] }
 0x2e6   :  { %v6552_v21 = vmax.f32 %v6550_v63, %v6551_v24  ;;  %v8709_v13 = vpop.f32.mrf.mxu1  ;;  %8804 = vmatmul.mubr.msk.bf16.gmra.mxu1 %vm2785_vm2, %v2762_v59  ;;  %v11429_v60 = vpop.f32.mrf.mxu0  ;;  %v7301_v43 = vsel %vm7300_vm3, %v7173_v49, %v7172_v41  ;;  %v7177_v0 = vunpack.c.l.bf16 %v6533_v11  ;;  %v7178_v30 = vunpack.c.l.bf16 %v6544_v5 }
 0x2e7   :  { %v4433_v28 = vadd.bf16 %v10708_v40, %v4297_v23  ;;  %8807 = vmatprep.mubr.msk.bf16.mxu1 %vm2785_vm2, %v2763_v44  ;;  %v7303_v38 = vsel %vm7302_vm4, %v7174_v19, %v7301_v43  ;;  %v4562_v59 = vmax.bf16 %v12259_v6, %v4434_v10  ;;  %v2764_v55 = vmax.bf16 %v12259_v6, %v2636_v15 }
 0x2e8   :  { %v6553_v31 = vrot.slane %v6552_v21, 1  ;;  %v3780_v54 = vpop.f32.mrf.mxu1  ;;  %v11434_v35 = vpop.f32.mrf.mxu0  ;;  %v7305_v51 = vsel %vm7304_vm5, %v7175_v12, %v7303_v38  ;;  %v2765_v63 = vmax.bf16 %v12259_v6, %v2637_v16  ;;  %v12415_v14 = vpack.c.bf16 %v12413_v42, %v12414_v47  ;;  %v12416_v16 = vld [vmem:[#allocation102_spill] sm:$0xff] }
 0x2e9   :  { %v4561_v39 = vmax.bf16 %v12259_v6, %v4433_v28  ;;  %v7307_v62 = vsel %vm7306_vm6, %v7176_v20, %v7305_v51  ;;  %v6092_v46 = vpack.c.bf16 %v11386_v25, %v11371_v7  ;;  %v12418_v23 = vpack.c.bf16 %v12416_v16, %v12417_v48 }
 0x2ea   :  { %v6554_v52 = vmax.f32 %v6552_v21, %v6553_v31  ;;  %v8710_v58 = vpop.f32.mrf.mxu1  ;;  %v5216_v18 = vpop.f32.mrf.mxu0  ;;  %v7309_v37 = vsel %vm7308_vm7, %v7177_v0, %v7307_v62  ;;  %v2638_v36 = vadd.bf16 %v9901_v34, %v12415_v14  ;;  %v6094_v11 = vpack.c.bf16 %v11412_v53, %v11399_v22 }
 0x2eb   :  { %v4300_v45 = vpack.c.bf16 %v8710_v58, %v8709_v13  ;;  %8963 = vmatprep.mubr.msk.bf16.mxu0 %vm2785_vm2, %v4561_v39  ;;  %v7311_v50 = vsel %vm7310_vm8, %v7178_v30, %v7309_v37  ;;  %v2639_v49 = vadd.bf16 %v9901_v34, %v12418_v23  ;;  %v6093_v21 = vpack.c.bf16 %v11378_v29, %v11361_v2  ;;  %v12419_v58 = vld [vmem:[#allocation101_spill] sm:$0xff] }
 0x2ec   :  { %v6555_v17 = vpack.i.bf16 %v6554_v52, %v6554_v52  ;;  %v3783_v26 = vpop.f32.mrf.mxu1  ;;  %v8869_v33 = vpop.f32.mrf.mxu0  ;;  %8964 = vmatmul.mubr.msk.bf16.gmra.mxu0 %vm2785_vm2, %v4562_v59  ;;  %v6095_v13 = vpack.c.bf16 %v11404_v32, %v11390_v27  ;;  %v6096_v7 = vpack.c.bf16 %v5216_v18, %v11429_v60  ;;  %v2766_v10 = vmax.bf16 %v12259_v6, %v2638_v36  ;;  %v12420_v18 = vld [vmem:[#allocation99_spill] sm:$0xff] }
 0x2ed   :  { %v4299_v56 = vpack.c.bf16 %v3783_v26, %v3780_v54  ;;  %v4436_v24 = vadd.bf16 %v10708_v40, %v4300_v45  ;;  %v6228_v41 = vadd.bf16 %v11246_v4, %v6092_v46  ;;  %v6097_v22 = vpack.c.bf16 %v11434_v35, %v11420_v3 }
 0x2ee   :  { %v7179_v9 = vunpack.c.l.bf16 %v6555_v17  ;;  %v8713_v1 = vpop.f32.mrf.mxu1  ;;  %8808 = vmatmul.mubr.msk.bf16.gmra.mxu1 %vm2785_vm2, %v2764_v55  ;;  %v5229_v15 = vpop.f32.mrf.mxu0  ;;  %v2767_v32 = vmax.bf16 %v12259_v6, %v2639_v49  ;;  %v6230_v60 = vadd.bf16 %v11246_v4, %v6094_v11  ;;  %v6229_v54 = vadd.bf16 %v11246_v4, %v6093_v21 }
 0x2ef   :  { %8811 = vmatprep.mubr.msk.bf16.mxu1 %vm2785_vm2, %v2765_v63  ;;  %v4435_v44 = vadd.bf16 %v10708_v40, %v4299_v56  ;;  %v4564_v28 = vmax.bf16 %v12259_v6, %v4436_v24  ;;  %v6231_v20 = vadd.bf16 %v11246_v4, %v6095_v13  ;;  %v6232_v3 = vadd.bf16 %v11246_v4, %v6096_v7 }
 0x2f0   :  { %v7313_v8 = vsel %vm7312_vm9, %v7179_v9, %v7311_v50  ;;  %v3796_v57 = vpop.f32.mrf.mxu1  ;;  %v8870_v61 = vpop.f32.mrf.mxu0  ;;  %v12421_v38 = vpack.c.bf16 %v12419_v58, %v12420_v18  ;;  %v6356_v59 = vmax.bf16 %v12259_v6, %v6228_v41  ;;  %v6233_v45 = vadd.bf16 %v11246_v4, %v6097_v22 }
 0x2f1   :  { %7371 = vst [vmem:[#allocation2] sm:$0xff] %v7313_v8  ;;  %v4563_v25 = vmax.bf16 %v12259_v6, %v4435_v44  ;;  %v6099_v12 = vpack.c.bf16 %v8870_v61, %v8869_v33  ;;  %v6358_v17 = vmax.bf16 %v12259_v6, %v6230_v60  ;;  %v6357_v62 = vmax.bf16 %v12259_v6, %v6229_v54 }
 0x2f2   :  { %v8714_v19 = vpop.f32.mrf.mxu1  ;;  %v5232_v5 = vpop.f32.mrf.mxu0  ;;  %v2640_v30 = vadd.bf16 %v9901_v34, %v12421_v38  ;;  %v6359_v37 = vmax.bf16 %v12259_v6, %v6231_v20  ;;  %v6360_v9 = vmax.bf16 %v12259_v6, %v6232_v3  ;;  %v6361_v24 = vmax.bf16 %v12259_v6, %v6233_v45 }
 0x2f3   :  { %v4302_v53 = vpack.c.bf16 %v8714_v19, %v8713_v1  ;;  %v6098_v2 = vpack.c.bf16 %v5232_v5, %v5229_v15  ;;  %8967 = vmatprep.mubr.msk.bf16.mxu0 %vm2785_vm2, %v4563_v25  ;;  %v6235_v26 = vadd.bf16 %v11246_v4, %v6099_v12  ;;  %v6556_v50 = vmax.bf16 %v6357_v62, %v6356_v59 }
 0x2f4   :  { %v3799_v29 = vpop.f32.mrf.mxu1  ;;  %v8873_v27 = vpop.f32.mrf.mxu0  ;;  %8968 = vmatmul.mubr.msk.bf16.gmra.mxu0 %vm2785_vm2, %v4564_v28  ;;  %v2768_v36 = vmax.bf16 %v12259_v6, %v2640_v30  ;;  %v6567_v44 = vmax.bf16 %v6359_v37, %v6358_v17  ;;  %v6578_v16 = vmax.bf16 %v6361_v24, %v6360_v9 }
 0x2f5   :  { %v4301_v31 = vpack.c.bf16 %v3799_v29, %v3796_v57  ;;  %v4438_v35 = vadd.bf16 %v10708_v40, %v4302_v53  ;;  %v6234_v0 = vadd.bf16 %v11246_v4, %v6098_v2  ;;  %v6363_v57 = vmax.bf16 %v12259_v6, %v6235_v26 }
 0x2f6   :  { %v8717_v39 = vpop.f32.mrf.mxu1  ;;  %8812 = vmatmul.mubr.msk.bf16.gmra.mxu1 %vm2785_vm2, %v2766_v10  ;;  %v5245_v43 = vpop.f32.mrf.mxu0  ;;  %v6557_v25 = vunpack.i.l.bf16 %v6556_v50  ;;  %v6558_v28 = vunpack.i.h.bf16 %v6556_v50  ;;  %v6568_v41 = vunpack.i.l.bf16 %v6567_v44  ;;  %v6569_v2 = vunpack.i.h.bf16 %v6567_v44 }
 0x2f7   :  { %v4437_v52 = vadd.bf16 %v10708_v40, %v4301_v31  ;;  %8815 = vmatprep.mubr.msk.bf16.mxu1 %vm2785_vm2, %v2767_v32  ;;  %v4566_v34 = vmax.bf16 %v12259_v6, %v4438_v35  ;;  %v6362_v15 = vmax.bf16 %v12259_v6, %v6234_v0  ;;  %v6579_v29 = vunpack.i.l.bf16 %v6578_v16 }
 0x2f8   :  { %v3812_v55 = vpop.f32.mrf.mxu1  ;;  %v8874_v51 = vpop.f32.mrf.mxu0  ;;  %v6559_v38 = vmax.f32 %v6557_v25, %v6558_v28  ;;  %v6570_v30 = vmax.f32 %v6568_v41, %v6569_v2 }
 0x2f9   :  { %v4565_v33 = vmax.bf16 %v12259_v6, %v4437_v52  ;;  %v6101_v63 = vpack.c.bf16 %v8874_v51, %v8873_v27  ;;  %v6589_v11 = vmax.bf16 %v6363_v57, %v6362_v15  ;;  %v6580_v27 = vunpack.i.h.bf16 %v6578_v16 }
 0x2fa   :  { %v8718_v56 = vpop.f32.mrf.mxu1  ;;  %v5248_v1 = vpop.f32.mrf.mxu0  ;;  %v6560_v15 = vrot.slane %v6559_v38, 4 }
 0x2fb   :  { %v6237_v42 = vadd.bf16 %v11246_v4, %v6101_v63  ;;  %v4304_v47 = vpack.c.bf16 %v8718_v56, %v8717_v39  ;;  %v6100_v14 = vpack.c.bf16 %v5248_v1, %v5245_v43  ;;  %8971 = vmatprep.mubr.msk.bf16.mxu0 %vm2785_vm2, %v4565_v33  ;;  %v6590_v31 = vunpack.i.l.bf16 %v6589_v11 }
 0x2fc   :  { %v3815_v8 = vpop.f32.mrf.mxu1  ;;  %v8877_v46 = vpop.f32.mrf.mxu0  ;;  %8972 = vmatmul.mubr.msk.bf16.gmra.mxu0 %vm2785_vm2, %v4566_v34  ;;  %v6591_v20 = vunpack.i.h.bf16 %v6589_v11  ;;  %v6581_v59 = vmax.f32 %v6579_v29, %v6580_v27 }
 0x2fd   :  { %v6236_v61 = vadd.bf16 %v11246_v4, %v6100_v14  ;;  %v4303_v48 = vpack.c.bf16 %v3815_v8, %v3812_v55  ;;  %v6365_v21 = vmax.bf16 %v12259_v6, %v6237_v42  ;;  %v4440_v13 = vadd.bf16 %v10708_v40, %v4304_v47 }
 0x2fe   :  { %v8721_v23 = vpop.f32.mrf.mxu1  ;;  %8816 = vmatmul.mubr.msk.bf16.gmra.mxu1 %vm2785_vm2, %v2768_v36  ;;  %v5261_v49 = vpop.f32.mrf.mxu0  ;;  %v6592_v33 = vmax.f32 %v6590_v31, %v6591_v20  ;;  %v6571_v42 = vrot.slane %v6570_v30, 4  ;;  %v6582_v47 = vrot.slane %v6581_v59, 4 }
 0x2ff   :  { %v6364_v7 = vmax.bf16 %v12259_v6, %v6236_v61  ;;  %v4439_v19 = vadd.bf16 %v10708_v40, %v4303_v48  ;;  %v4568_v54 = vmax.bf16 %v12259_v6, %v4440_v13 }
 0x300   :  { %v3828_v5 = vpop.f32.mrf.mxu1  ;;  %v8878_v10 = vpop.f32.mrf.mxu0  ;;  %v6593_v57 = vrot.slane %v6592_v33, 4  ;;  %v6572_v13 = vmax.f32 %v6570_v30, %v6571_v42 }
 0x301   :  { %v6600_v22 = vmax.bf16 %v6365_v21, %v6364_v7  ;;  %v6103_v53 = vpack.c.bf16 %v8878_v10, %v8877_v46  ;;  %v4567_v32 = vmax.bf16 %v12259_v6, %v4439_v19  ;;  %v6561_v21 = vmax.f32 %v6559_v38, %v6560_v15 }
 0x302   :  { %v8722_v60 = vpop.f32.mrf.mxu1  ;;  %v5264_v12 = vpop.f32.mrf.mxu0  ;;  %v6583_v10 = vmax.f32 %v6581_v59, %v6582_v47  ;;  %v6573_v20 = vrot.slane %v6572_v13, 2 }
 0x303   :  { %v6239_v3 = vadd.bf16 %v11246_v4, %v6103_v53  ;;  %v4306_v35 = vpack.c.bf16 %v8722_v60, %v8721_v23  ;;  %v6102_v39 = vpack.c.bf16 %v5264_v12, %v5261_v49  ;;  %8975 = vmatprep.mubr.msk.bf16.mxu0 %vm2785_vm2, %v4567_v32  ;;  %v6601_v52 = vunpack.i.l.bf16 %v6600_v22 }
 0x304   :  { %v3831_v43 = vpop.f32.mrf.mxu1  ;;  %v8881_v0 = vpop.f32.mrf.mxu0  ;;  %v6602_v58 = vunpack.i.h.bf16 %v6600_v22  ;;  %8976 = vmatmul.mubr.msk.bf16.gmra.mxu0 %vm2785_vm2, %v4568_v54  ;;  %v6594_v53 = vmax.f32 %v6592_v33, %v6593_v57  ;;  %v6562_v54 = vrot.slane %v6561_v21, 2 }
 0x305   :  { %v4305_v18 = vpack.c.bf16 %v3831_v43, %v3828_v5  ;;  %v6238_v45 = vadd.bf16 %v11246_v4, %v6102_v39  ;;  %v4442_v17 = vadd.bf16 %v10708_v40, %v4306_v35  ;;  %v6367_v63 = vmax.bf16 %v12259_v6, %v6239_v3 }
 0x306   :  { %v8725_v55 = vpop.f32.mrf.mxu1  ;;  %v5277_v51 = vpop.f32.mrf.mxu0  ;;  %v6603_v34 = vmax.f32 %v6601_v52, %v6602_v58  ;;  %v6595_v38 = vrot.slane %v6594_v53, 2  ;;  %v6563_v47 = vmax.f32 %v6561_v21, %v6562_v54 }
 0x307   :  { %v4441_v26 = vadd.bf16 %v10708_v40, %v4305_v18  ;;  %v6366_v62 = vmax.bf16 %v12259_v6, %v6238_v45  ;;  %v4570_v24 = vmax.bf16 %v12259_v6, %v4442_v17 }
 0x308   :  { %v3844_v37 = vpop.f32.mrf.mxu1  ;;  %v8882_v9 = vpop.f32.mrf.mxu0  ;;  %v6604_v49 = vrot.slane %v6603_v34, 4 }
 0x309   :  { %v4569_v56 = vmax.bf16 %v12259_v6, %v4441_v26  ;;  %v6105_v1 = vpack.c.bf16 %v8882_v9, %v8881_v0  ;;  %v6611_v14 = vmax.bf16 %v6367_v63, %v6366_v62  ;;  %v6584_v0 = vrot.slane %v6583_v10, 2 }
 0x30a   :  { %v8726_v36 = vpop.f32.mrf.mxu1  ;;  %v5280_v50 = vpop.f32.mrf.mxu0  ;;  %v6605_v60 = vmax.f32 %v6603_v34, %v6604_v49  ;;  %v6574_v63 = vmax.f32 %v6572_v13, %v6573_v20 }
 0x30b   :  { %v6241_v8 = vadd.bf16 %v11246_v4, %v6105_v1  ;;  %v4308_v46 = vpack.c.bf16 %v8726_v36, %v8725_v55  ;;  %v6104_v44 = vpack.c.bf16 %v5280_v50, %v5277_v51  ;;  %8979 = vmatprep.mubr.msk.bf16.mxu0 %vm2785_vm2, %v4569_v56  ;;  %v6612_v61 = vunpack.i.l.bf16 %v6611_v14 }
 0x30c   :  { %v6613_v16 = vunpack.i.h.bf16 %v6611_v14  ;;  %v3847_v48 = vpop.f32.mrf.mxu1  ;;  %v8885_v23 = vpop.f32.mrf.mxu0  ;;  %8980 = vmatmul.mubr.msk.bf16.gmra.mxu0 %vm2785_vm2, %v4570_v24  ;;  %v6606_v17 = vrot.slane %v6605_v60, 2  ;;  %v6585_v56 = vmax.f32 %v6583_v10, %v6584_v0  ;;  %v6596_v14 = vmax.f32 %v6594_v53, %v6595_v38 }
 0x30d   :  { %v6240_v11 = vadd.bf16 %v11246_v4, %v6104_v44  ;;  %v4307_v25 = vpack.c.bf16 %v3847_v48, %v3844_v37  ;;  %v6369_v28 = vmax.bf16 %v12259_v6, %v6241_v8  ;;  %v4444_v41 = vadd.bf16 %v10708_v40, %v4308_v46 }
 0x30e   :  { %v6614_v7 = vmax.f32 %v6612_v61, %v6613_v16  ;;  %v8729_v19 = vpop.f32.mrf.mxu1  ;;  %v5293_v5 = vpop.f32.mrf.mxu0  ;;  %v6607_v46 = vmax.f32 %v6605_v60, %v6606_v17  ;;  %v6575_v61 = vrot.slane %v6574_v63, 1 }
 0x30f   :  { %v6368_v22 = vmax.bf16 %v12259_v6, %v6240_v11  ;;  %v4443_v29 = vadd.bf16 %v10708_v40, %v4307_v25  ;;  %v4572_v52 = vmax.bf16 %v12259_v6, %v4444_v41  ;;  %v6586_v11 = vrot.slane %v6585_v56, 1 }
 0x310   :  { %v6615_v2 = vrot.slane %v6614_v7, 4  ;;  %v3860_v27 = vpop.f32.mrf.mxu1  ;;  %v8886_v32 = vpop.f32.mrf.mxu0  ;;  %v6564_v25 = vrot.slane %v6563_v47, 1 }
 0x311   :  { %v6622_v12 = vmax.bf16 %v6369_v28, %v6368_v22  ;;  %v6107_v31 = vpack.c.bf16 %v8886_v32, %v8885_v23  ;;  %v4571_v35 = vmax.bf16 %v12259_v6, %v4443_v29  ;;  %v6608_v22 = vrot.slane %v6607_v46, 1 }
 0x312   :  { %v6616_v3 = vmax.f32 %v6614_v7, %v6615_v2  ;;  %v8730_v39 = vpop.f32.mrf.mxu1  ;;  %v5296_v43 = vpop.f32.mrf.mxu0  ;;  %v6576_v2 = vmax.f32 %v6574_v63, %v6575_v61 }
 0x313   :  { %v6623_v58 = vunpack.i.l.bf16 %v6622_v12  ;;  %v6624_v18 = vunpack.i.h.bf16 %v6622_v12  ;;  %v6243_v30 = vadd.bf16 %v11246_v4, %v6107_v31  ;;  %v4310_v59 = vpack.c.bf16 %v8730_v39, %v8729_v19  ;;  %8983 = vmatprep.mubr.msk.bf16.mxu0 %vm2785_vm2, %v4571_v35 }
 0x314   :  { %v6106_v45 = vpack.c.bf16 %v5296_v43, %v5293_v5  ;;  %v3863_v55 = vpop.f32.mrf.mxu1  ;;  %v11538_v51 = vpop.f32.mrf.mxu0  ;;  %8984 = vmatmul.mubr.msk.bf16.gmra.mxu0 %vm2785_vm2, %v4572_v52  ;;  %v6617_v62 = vrot.slane %v6616_v3, 2  ;;  %v6597_v19 = vrot.slane %v6596_v14, 1  ;;  %v6587_v31 = vmax.f32 %v6585_v56, %v6586_v11 }
 0x315   :  { %v6625_v26 = vmax.f32 %v6623_v58, %v6624_v18  ;;  %v4309_v33 = vpack.c.bf16 %v3863_v55, %v3860_v27  ;;  %v4446_v15 = vadd.bf16 %v10708_v40, %v4310_v59  ;;  %v6371_v36 = vmax.bf16 %v12259_v6, %v6243_v30 }
 0x316   :  { %v6242_v37 = vadd.bf16 %v11246_v4, %v6106_v45  ;;  %v8733_v9 = vpop.f32.mrf.mxu1  ;;  %v11542_v34 = vpop.f32.mrf.mxu0  ;;  %v6618_v16 = vmax.f32 %v6616_v3, %v6617_v62  ;;  %v6565_v3 = vmax.f32 %v6563_v47, %v6564_v25  ;;  %v6598_v35 = vmax.f32 %v6596_v14, %v6597_v19 }
 0x317   :  { %v6626_v1 = vrot.slane %v6625_v26, 4  ;;  %v4445_v42 = vadd.bf16 %v10708_v40, %v4309_v33  ;;  %v4574_v13 = vmax.bf16 %v12259_v6, %v4446_v15  ;;  %v6609_v58 = vmax.f32 %v6607_v46, %v6608_v22 }
 0x318   :  { %v6370_v50 = vmax.bf16 %v12259_v6, %v6242_v37  ;;  %v3876_v24 = vpop.f32.mrf.mxu1  ;;  %v11548_v8 = vpop.f32.mrf.mxu0  ;;  %v6619_v29 = vrot.slane %v6618_v16, 1  ;;  %v6577_v18 = vpack.i.bf16 %v6576_v2, %v6576_v2  ;;  %v6588_v17 = vpack.i.bf16 %v6587_v31, %v6587_v31 }
 0x319   :  { %v6627_v44 = vmax.f32 %v6625_v26, %v6626_v1  ;;  %v4573_v57 = vmax.bf16 %v12259_v6, %v4445_v42  ;;  %v6566_v63 = vpack.i.bf16 %v6565_v3, %v6565_v3  ;;  %v6599_v62 = vpack.i.bf16 %v6598_v35, %v6598_v35 }
 0x31a   :  { %v6633_v48 = vmax.bf16 %v6371_v36, %v6370_v50  ;;  %v8734_v23 = vpop.f32.mrf.mxu1  ;;  %v11551_v49 = vpop.f32.mrf.mxu0  ;;  %v6620_v38 = vmax.f32 %v6618_v16, %v6619_v29  ;;  %v6610_v15 = vpack.i.bf16 %v6609_v58, %v6609_v58  ;;  %v7181_v47 = vunpack.c.l.bf16 %v6577_v18 }
 0x31b   :  { %v6628_v21 = vrot.slane %v6627_v44, 2  ;;  %v4312_v7 = vpack.c.bf16 %v8734_v23, %v8733_v9  ;;  %8987 = vmatprep.mubr.msk.bf16.mxu0 %vm2785_vm2, %v4573_v57  ;;  %v7182_v46 = vunpack.c.l.bf16 %v6588_v17  ;;  %v7180_v16 = vunpack.c.l.bf16 %v6566_v63 }
 0x31c   :  { %v6634_v5 = vunpack.i.l.bf16 %v6633_v48  ;;  %v6635_v10 = vunpack.i.h.bf16 %v6633_v48  ;;  %v3879_v28 = vpop.f32.mrf.mxu1  ;;  %v11555_v41 = vpop.f32.mrf.mxu0  ;;  %8988 = vmatmul.mubr.msk.bf16.gmra.mxu0 %vm2785_vm2, %v4574_v13  ;;  %v6621_v14 = vpack.i.bf16 %v6620_v38, %v6620_v38  ;;  %v7183_v48 = vunpack.c.l.bf16 %v6599_v62 }
 0x31d   :  { %v6629_v53 = vmax.f32 %v6627_v44, %v6628_v21  ;;  %v4311_v32 = vpack.c.bf16 %v3879_v28, %v3876_v24  ;;  %v4448_v20 = vadd.bf16 %v10708_v40, %v4312_v7  ;;  %v7184_v13 = vunpack.c.l.bf16 %v6610_v15 }
 0x31e   :  { %v6636_v27 = vmax.f32 %v6634_v5, %v6635_v10  ;;  %v8737_v60 = vpop.f32.mrf.mxu1  ;;  %v11558_v12 = vpop.f32.mrf.mxu0  ;;  %v7314_v25 = vsel %vm7300_vm3, %v7181_v47, %v7180_v16  ;;  %v7185_v19 = vunpack.c.l.bf16 %v6621_v14  ;;  %v6108_v38 = vpack.c.bf16 %v11551_v49, %v11542_v34 }
 0x31f   :  { %v6630_v54 = vrot.slane %v6629_v53, 1  ;;  %v4447_v43 = vadd.bf16 %v10708_v40, %v4311_v32  ;;  %v4576_v33 = vmax.bf16 %v12259_v6, %v4448_v20  ;;  %v7315_v22 = vsel %vm7302_vm4, %v7182_v46, %v7314_v25 }
 0x320   :  { %v6637_v39 = vrot.slane %v6636_v27, 4  ;;  %v3892_v0 = vpop.f32.mrf.mxu1  ;;  %v11562_v52 = vpop.f32.mrf.mxu0 }
 0x321   :  { %v4575_v59 = vmax.bf16 %v12259_v6, %v4447_v43  ;;  %v6631_v26 = vmax.f32 %v6629_v53, %v6630_v54 }
 0x322   :  { %v6638_v30 = vmax.f32 %v6636_v27, %v6637_v39  ;;  %v8738_v45 = vpop.f32.mrf.mxu1  ;;  %v11565_v55 = vpop.f32.mrf.mxu0  ;;  %v7316_v27 = vsel %vm7304_vm5, %v7183_v48, %v7315_v22 }
 0x323   :  { %v4314_v9 = vpack.c.bf16 %v8738_v45, %v8737_v60  ;;  %8991 = vmatprep.mubr.msk.bf16.mxu0 %vm2785_vm2, %v4575_v59  ;;  %v6632_v44 = vpack.i.bf16 %v6631_v26, %v6631_v26  ;;  %v7317_v54 = vsel %vm7306_vm6, %v7184_v13, %v7316_v27  ;;  %v6110_v17 = vpack.c.bf16 %v11565_v55, %v11558_v12 }
 0x324   :  { %v6639_v37 = vrot.slane %v6638_v30, 2  ;;  %v3895_v56 = vpop.f32.mrf.mxu1  ;;  %v11569_v1 = vpop.f32.mrf.mxu0  ;;  %8992 = vmatmul.mubr.msk.bf16.gmra.mxu0 %vm2785_vm2, %v4576_v33  ;;  %v7318_v20 = vsel %vm7308_vm7, %v7185_v19, %v7317_v54  ;;  %v6109_v26 = vpack.c.bf16 %v11548_v8, %v11538_v51  ;;  %v6111_v33 = vpack.c.bf16 %v11562_v52, %v11555_v41 }
 0x325   :  { %v4313_v42 = vpack.c.bf16 %v3895_v56, %v3892_v0  ;;  %v4450_v57 = vadd.bf16 %v10708_v40, %v4314_v9  ;;  %v7186_v53 = vunpack.c.l.bf16 %v6632_v44  ;;  %v6244_v9 = vadd.bf16 %v11246_v4, %v6108_v38 }
 0x326   :  { %v6640_v36 = vmax.f32 %v6638_v30, %v6639_v37  ;;  %v8741_v50 = vpop.f32.mrf.mxu1  ;;  %v11572_v24 = vpop.f32.mrf.mxu0  ;;  %v6246_v41 = vadd.bf16 %v11246_v4, %v6110_v17  ;;  %v6247_v47 = vadd.bf16 %v11246_v4, %v6111_v33 }
 0x327   :  { %v4449_v61 = vadd.bf16 %v10708_v40, %v4313_v42  ;;  %v4578_v2 = vmax.bf16 %v12259_v6, %v4450_v57  ;;  %v7319_v0 = vsel %vm7310_vm8, %v7186_v53, %v7318_v20  ;;  %v6245_v42 = vadd.bf16 %v11246_v4, %v6109_v26 }
 0x328   :  { %v6641_v23 = vrot.slane %v6640_v36, 1  ;;  %v3908_v11 = vpop.f32.mrf.mxu1  ;;  %v8898_v21 = vpop.f32.mrf.mxu0  ;;  %v6372_v44 = vmax.bf16 %v12259_v6, %v6244_v9  ;;  %v6374_v48 = vmax.bf16 %v12259_v6, %v6246_v41 }
 0x329   :  { %v4577_v7 = vmax.bf16 %v12259_v6, %v4449_v61  ;;  %v6113_v56 = vpack.c.bf16 %v8898_v21, %v11569_v1  ;;  %v6373_v13 = vmax.bf16 %v12259_v6, %v6245_v42 }
 0x32a   :  { %v6642_v5 = vmax.f32 %v6640_v36, %v6641_v23  ;;  %v8742_v10 = vpop.f32.mrf.mxu1  ;;  %v5344_v28 = vpop.f32.mrf.mxu0 }
 0x32b   :  { %v4316_v29 = vpack.c.bf16 %v8742_v10, %v8741_v50  ;;  %8995 = vmatprep.mubr.msk.bf16.mxu0 %vm2785_vm2, %v4577_v7  ;;  %v6112_v63 = vpack.c.bf16 %v5344_v28, %v11572_v24  ;;  %v6249_v57 = vadd.bf16 %v11246_v4, %v6113_v56  ;;  %v6375_v7 = vmax.bf16 %v12259_v6, %v6247_v47 }
 0x32c   :  { %v6643_v32 = vpack.i.bf16 %v6642_v5, %v6642_v5  ;;  %v3911_v60 = vpop.f32.mrf.mxu1  ;;  %v8901_v31 = vpop.f32.mrf.mxu0  ;;  %8996 = vmatmul.mubr.msk.bf16.gmra.mxu0 %vm2785_vm2, %v4578_v2 }
 0x32d   :  { %v4315_v35 = vpack.c.bf16 %v3911_v60, %v3908_v11  ;;  %v4452_v58 = vadd.bf16 %v10708_v40, %v4316_v29  ;;  %v6248_v14 = vadd.bf16 %v11246_v4, %v6112_v63  ;;  %v6644_v29 = vmax.bf16 %v6373_v13, %v6372_v44 }
 0x32e   :  { %v7187_v3 = vunpack.c.l.bf16 %v6643_v32  ;;  %v8745_v39 = vpop.f32.mrf.mxu1  ;;  %v5357_v43 = vpop.f32.mrf.mxu0  ;;  %v6377_v27 = vmax.bf16 %v12259_v6, %v6249_v57 }
 0x32f   :  { %v4451_v30 = vadd.bf16 %v10708_v40, %v4315_v35  ;;  %v4580_v49 = vmax.bf16 %v12259_v6, %v4452_v58  ;;  %v6376_v25 = vmax.bf16 %v12259_v6, %v6248_v14  ;;  %v6646_v26 = vunpack.i.h.bf16 %v6644_v29 }
 0x330   :  { %v7320_v18 = vsel %vm7312_vm9, %v7187_v3, %v7319_v0  ;;  %v3924_v59 = vpop.f32.mrf.mxu1  ;;  %v8902_v45 = vpop.f32.mrf.mxu0 }
 0x331   :  { %7372 = vst [vmem:[#allocation2 + $0x8] sm:$0xff] %v7320_v18  ;;  %v4579_v62 = vmax.bf16 %v12259_v6, %v4451_v30  ;;  %v6115_v52 = vpack.c.bf16 %v8902_v45, %v8901_v31  ;;  %v6655_v31 = vmax.bf16 %v6375_v7, %v6374_v48  ;;  %v6666_v3 = vmax.bf16 %v6377_v27, %v6376_v25 }
 0x332   :  { %v8746_v37 = vpop.f32.mrf.mxu1  ;;  %v5360_v34 = vpop.f32.mrf.mxu0  ;;  %v6645_v30 = vunpack.i.l.bf16 %v6644_v29 }
 0x333   :  { %v4318_v15 = vpack.c.bf16 %v8746_v37, %v8745_v39  ;;  %v6114_v12 = vpack.c.bf16 %v5360_v34, %v5357_v43  ;;  %8999 = vmatprep.mubr.msk.bf16.mxu0 %vm2785_vm2, %v4579_v62  ;;  %v6251_v23 = vadd.bf16 %v11246_v4, %v6115_v52  ;;  %v6656_v33 = vunpack.i.l.bf16 %v6655_v31 }
 0x334   :  { %v3927_v51 = vpop.f32.mrf.mxu1  ;;  %v8905_v8 = vpop.f32.mrf.mxu0  ;;  %9000 = vmatmul.mubr.msk.bf16.gmra.mxu0 %vm2785_vm2, %v4580_v49  ;;  %v6657_v37 = vunpack.i.h.bf16 %v6655_v31  ;;  %v6667_v34 = vunpack.i.l.bf16 %v6666_v3  ;;  %v6668_v49 = vunpack.i.h.bf16 %v6666_v3 }
 0x335   :  { %v4317_v55 = vpack.c.bf16 %v3927_v51, %v3924_v59  ;;  %v4454_v1 = vadd.bf16 %v10708_v40, %v4318_v15  ;;  %v6250_v24 = vadd.bf16 %v11246_v4, %v6114_v12  ;;  %v6379_v54 = vmax.bf16 %v12259_v6, %v6251_v23 }
 0x336   :  { %v8749_v36 = vpop.f32.mrf.mxu1  ;;  %v5373_v50 = vpop.f32.mrf.mxu0 }
 0x337   :  { %v4453_v46 = vadd.bf16 %v10708_v40, %v4317_v55  ;;  %v4582_v19 = vmax.bf16 %v12259_v6, %v4454_v1  ;;  %v6378_v28 = vmax.bf16 %v12259_v6, %v6250_v24  ;;  %v6658_v24 = vmax.f32 %v6656_v33, %v6657_v37 }
 0x338   :  { %v3940_v61 = vpop.f32.mrf.mxu1  ;;  %v8906_v16 = vpop.f32.mrf.mxu0 }
 0x339   :  { %v4581_v11 = vmax.bf16 %v12259_v6, %v4453_v46  ;;  %v6117_v21 = vpack.c.bf16 %v8906_v16, %v8905_v8  ;;  %v6677_v0 = vmax.bf16 %v6379_v54, %v6378_v28  ;;  %v6669_v46 = vmax.f32 %v6667_v34, %v6668_v49 }
 0x33a   :  { %v8750_v5 = vpop.f32.mrf.mxu1  ;;  %v5376_v10 = vpop.f32.mrf.mxu0  ;;  %v6659_v28 = vrot.slane %v6658_v24, 4 }
 0x33b   :  { %v6253_v22 = vadd.bf16 %v11246_v4, %v6117_v21  ;;  %v4320_v53 = vpack.c.bf16 %v8750_v5, %v8749_v36  ;;  %v6116_v2 = vpack.c.bf16 %v5376_v10, %v5373_v50  ;;  %9003 = vmatprep.mubr.msk.bf16.mxu0 %vm2785_vm2, %v4581_v11  ;;  %v6678_v12 = vunpack.i.l.bf16 %v6677_v0 }
 0x33c   :  { %v3943_v32 = vpop.f32.mrf.mxu1  ;;  %v8909_v60 = vpop.f32.mrf.mxu0  ;;  %9004 = vmatmul.mubr.msk.bf16.gmra.mxu0 %vm2785_vm2, %v4582_v19  ;;  %v6679_v8 = vunpack.i.h.bf16 %v6677_v0  ;;  %v6647_v50 = vmax.f32 %v6645_v30, %v6646_v26 }
 0x33d   :  { %v6252_v20 = vadd.bf16 %v11246_v4, %v6116_v2  ;;  %v4319_v35 = vpack.c.bf16 %v3943_v32, %v3940_v61  ;;  %v6381_v58 = vmax.bf16 %v12259_v6, %v6253_v22  ;;  %v4456_v18 = vadd.bf16 %v10708_v40, %v4320_v53 }
 0x33e   :  { %v8753_v39 = vpop.f32.mrf.mxu1  ;;  %v5389_v43 = vpop.f32.mrf.mxu0  ;;  %v6680_v23 = vmax.f32 %v6678_v12, %v6679_v8  ;;  %v6648_v10 = vrot.slane %v6647_v50, 4  ;;  %v6670_v22 = vrot.slane %v6669_v46, 4 }
 0x33f   :  { %v6380_v38 = vmax.bf16 %v12259_v6, %v6252_v20  ;;  %v4455_v59 = vadd.bf16 %v10708_v40, %v4319_v35  ;;  %v4584_v51 = vmax.bf16 %v12259_v6, %v4456_v18  ;;  %v6660_v18 = vmax.f32 %v6658_v24, %v6659_v28 }
 0x340   :  { %v3956_v45 = vpop.f32.mrf.mxu1  ;;  %v8910_v17 = vpop.f32.mrf.mxu0  ;;  %v6681_v54 = vrot.slane %v6680_v23, 4 }
 0x341   :  { %v6688_v63 = vmax.bf16 %v6381_v58, %v6380_v38  ;;  %v6119_v62 = vpack.c.bf16 %v8910_v17, %v8909_v60  ;;  %v4583_v9 = vmax.bf16 %v12259_v6, %v4455_v59  ;;  %v6649_v58 = vmax.f32 %v6647_v50, %v6648_v10 }
 0x342   :  { %v8754_v56 = vpop.f32.mrf.mxu1  ;;  %v5392_v15 = vpop.f32.mrf.mxu0  ;;  %v6671_v17 = vmax.f32 %v6669_v46, %v6670_v22  ;;  %v6661_v8 = vrot.slane %v6660_v18, 2 }
 0x343   :  { %v6255_v41 = vadd.bf16 %v11246_v4, %v6119_v62  ;;  %v4322_v52 = vpack.c.bf16 %v8754_v56, %v8753_v39  ;;  %v6118_v55 = vpack.c.bf16 %v5392_v15, %v5389_v43  ;;  %9007 = vmatprep.mubr.msk.bf16.mxu0 %vm2785_vm2, %v4583_v9  ;;  %v6689_v14 = vunpack.i.l.bf16 %v6688_v63 }
 0x344   :  { %v3959_v42 = vpop.f32.mrf.mxu1  ;;  %v8913_v47 = vpop.f32.mrf.mxu0  ;;  %v6690_v1 = vunpack.i.h.bf16 %v6688_v63  ;;  %9008 = vmatmul.mubr.msk.bf16.gmra.mxu0 %vm2785_vm2, %v4584_v51  ;;  %v6682_v62 = vmax.f32 %v6680_v23, %v6681_v54  ;;  %v6650_v51 = vrot.slane %v6649_v58, 2 }
 0x345   :  { %v4321_v36 = vpack.c.bf16 %v3959_v42, %v3956_v45  ;;  %v6254_v44 = vadd.bf16 %v11246_v4, %v6118_v55  ;;  %v4458_v16 = vadd.bf16 %v10708_v40, %v4322_v52  ;;  %v6383_v11 = vmax.bf16 %v12259_v6, %v6255_v41 }
 0x346   :  { %v8757_v57 = vpop.f32.mrf.mxu1  ;;  %v5405_v61 = vpop.f32.mrf.mxu0  ;;  %v6691_v25 = vmax.f32 %v6689_v14, %v6690_v1  ;;  %v6683_v50 = vrot.slane %v6682_v62, 2  ;;  %v6651_v22 = vmax.f32 %v6649_v58, %v6650_v51 }
 0x347   :  { %v4457_v48 = vadd.bf16 %v10708_v40, %v4321_v36  ;;  %v6382_v21 = vmax.bf16 %v12259_v6, %v6254_v44  ;;  %v4586_v27 = vmax.bf16 %v12259_v6, %v4458_v16 }
 0x348   :  { %v3972_v13 = vpop.f32.mrf.mxu1  ;;  %v8914_v7 = vpop.f32.mrf.mxu0  ;;  %v6692_v43 = vrot.slane %v6691_v25, 4 }
 0x349   :  { %v4585_v19 = vmax.bf16 %v12259_v6, %v4457_v48  ;;  %v6121_v5 = vpack.c.bf16 %v8914_v7, %v8913_v47  ;;  %v6699_v53 = vmax.bf16 %v6383_v11, %v6382_v21  ;;  %v6672_v47 = vrot.slane %v6671_v17, 2 }
 0x34a   :  { %v8758_v2 = vpop.f32.mrf.mxu1  ;;  %v5408_v29 = vpop.f32.mrf.mxu0  ;;  %v6693_v56 = vmax.f32 %v6691_v25, %v6692_v43  ;;  %v6662_v11 = vmax.f32 %v6660_v18, %v6661_v8 }
 0x34b   :  { %v6257_v32 = vadd.bf16 %v11246_v4, %v6121_v5  ;;  %v4324_v60 = vpack.c.bf16 %v8758_v2, %v8757_v57  ;;  %v6120_v31 = vpack.c.bf16 %v5408_v29, %v5405_v61  ;;  %9011 = vmatprep.mubr.msk.bf16.mxu0 %vm2785_vm2, %v4585_v19  ;;  %v6700_v20 = vunpack.i.l.bf16 %v6699_v53 }
 0x34c   :  { %v6701_v3 = vunpack.i.h.bf16 %v6699_v53  ;;  %v3975_v35 = vpop.f32.mrf.mxu1  ;;  %v8917_v39 = vpop.f32.mrf.mxu0  ;;  %9012 = vmatmul.mubr.msk.bf16.gmra.mxu0 %vm2785_vm2, %v4586_v27  ;;  %v6694_v16 = vrot.slane %v6693_v56, 2  ;;  %v6673_v19 = vmax.f32 %v6671_v17, %v6672_v47  ;;  %v6684_v53 = vmax.f32 %v6682_v62, %v6683_v50 }
 0x34d   :  { %v6256_v0 = vadd.bf16 %v11246_v4, %v6120_v31  ;;  %v4323_v30 = vpack.c.bf16 %v3975_v35, %v3972_v13  ;;  %v6385_v26 = vmax.bf16 %v12259_v6, %v6257_v32  ;;  %v4460_v33 = vadd.bf16 %v10708_v40, %v4324_v60 }
 0x34e   :  { %v6702_v38 = vmax.f32 %v6700_v20, %v6701_v3  ;;  %v8761_v59 = vpop.f32.mrf.mxu1  ;;  %v5421_v45 = vpop.f32.mrf.mxu0  ;;  %v6695_v60 = vmax.f32 %v6693_v56, %v6694_v16  ;;  %v6663_v20 = vrot.slane %v6662_v11, 1 }
 0x34f   :  { %v6384_v63 = vmax.bf16 %v12259_v6, %v6256_v0  ;;  %v4459_v34 = vadd.bf16 %v10708_v40, %v4323_v30  ;;  %v4588_v14 = vmax.bf16 %v12259_v6, %v4460_v33  ;;  %v6674_v0 = vrot.slane %v6673_v19, 1 }
 0x350   :  { %v6703_v37 = vrot.slane %v6702_v38, 4  ;;  %v3988_v49 = vpop.f32.mrf.mxu1  ;;  %v8918_v9 = vpop.f32.mrf.mxu0  ;;  %v6652_v30 = vrot.slane %v6651_v22, 1 }
 0x351   :  { %v6710_v15 = vmax.bf16 %v6385_v26, %v6384_v63  ;;  %v6123_v12 = vpack.c.bf16 %v8918_v9, %v8917_v39  ;;  %v4587_v52 = vmax.bf16 %v12259_v6, %v4459_v34  ;;  %v6696_v63 = vrot.slane %v6695_v60, 1 }
 0x352   :  { %v6704_v41 = vmax.f32 %v6702_v38, %v6703_v37  ;;  %v8762_v55 = vpop.f32.mrf.mxu1  ;;  %v5424_v42 = vpop.f32.mrf.mxu0  ;;  %v6664_v37 = vmax.f32 %v6662_v11, %v6663_v20 }
 0x353   :  { %v6711_v1 = vunpack.i.l.bf16 %v6710_v15  ;;  %v6712_v36 = vunpack.i.h.bf16 %v6710_v15  ;;  %v6259_v24 = vadd.bf16 %v11246_v4, %v6123_v12  ;;  %v4326_v46 = vpack.c.bf16 %v8762_v55, %v8761_v59  ;;  %9015 = vmatprep.mubr.msk.bf16.mxu0 %vm2785_vm2, %v4587_v52 }
 0x354   :  { %v6122_v44 = vpack.c.bf16 %v5424_v42, %v5421_v45  ;;  %v3991_v57 = vpop.f32.mrf.mxu1  ;;  %v11655_v61 = vpop.f32.mrf.mxu0  ;;  %9016 = vmatmul.mubr.msk.bf16.gmra.mxu0 %vm2785_vm2, %v4588_v14  ;;  %v6705_v21 = vrot.slane %v6704_v41, 2  ;;  %v6685_v59 = vrot.slane %v6684_v53, 1  ;;  %v6675_v12 = vmax.f32 %v6673_v19, %v6674_v0 }
 0x355   :  { %v6713_v48 = vmax.f32 %v6711_v1, %v6712_v36  ;;  %v4325_v23 = vpack.c.bf16 %v3991_v57, %v3988_v49  ;;  %v4462_v10 = vadd.bf16 %v10708_v40, %v4326_v46  ;;  %v6387_v2 = vmax.bf16 %v12259_v6, %v6259_v24 }
 0x356   :  { %v6258_v13 = vadd.bf16 %v11246_v4, %v6122_v44  ;;  %v8765_v7 = vpop.f32.mrf.mxu1  ;;  %v11659_v25 = vpop.f32.mrf.mxu0  ;;  %v6706_v3 = vmax.f32 %v6704_v41, %v6705_v21  ;;  %v6653_v41 = vmax.f32 %v6651_v22, %v6652_v30  ;;  %v6686_v52 = vmax.f32 %v6684_v53, %v6685_v59 }
 0x357   :  { %v6714_v5 = vrot.slane %v6713_v48, 4  ;;  %v4461_v28 = vadd.bf16 %v10708_v40, %v4325_v23  ;;  %v4590_v18 = vmax.bf16 %v12259_v6, %v4462_v10  ;;  %v6697_v1 = vmax.f32 %v6695_v60, %v6696_v63 }
 0x358   :  { %v6386_v29 = vmax.bf16 %v12259_v6, %v6258_v13  ;;  %v4004_v27 = vpop.f32.mrf.mxu1  ;;  %v11665_v32 = vpop.f32.mrf.mxu0  ;;  %v6707_v34 = vrot.slane %v6706_v3, 1  ;;  %v6665_v36 = vpack.i.bf16 %v6664_v37, %v6664_v37  ;;  %v6676_v16 = vpack.i.bf16 %v6675_v12, %v6675_v12 }
 0x359   :  { %v6715_v31 = vmax.f32 %v6713_v48, %v6714_v5  ;;  %v4589_v54 = vmax.bf16 %v12259_v6, %v4461_v28  ;;  %v6654_v11 = vpack.i.bf16 %v6653_v41, %v6653_v41  ;;  %v6687_v21 = vpack.i.bf16 %v6686_v52, %v6686_v52 }
 0x35a   :  { %v6721_v35 = vmax.bf16 %v6387_v2, %v6386_v29  ;;  %v8766_v39 = vpop.f32.mrf.mxu1  ;;  %v11668_v43 = vpop.f32.mrf.mxu0  ;;  %v6708_v50 = vmax.f32 %v6706_v3, %v6707_v34  ;;  %v6698_v10 = vpack.i.bf16 %v6697_v1, %v6697_v1  ;;  %v7189_v22 = vunpack.c.l.bf16 %v6665_v36 }
 0x35b   :  { %v6716_v58 = vrot.slane %v6715_v31, 2  ;;  %v4328_v38 = vpack.c.bf16 %v8766_v39, %v8765_v7  ;;  %9019 = vmatprep.mubr.msk.bf16.mxu0 %vm2785_vm2, %v4589_v54  ;;  %v7190_v60 = vunpack.c.l.bf16 %v6676_v16  ;;  %v7188_v3 = vunpack.c.l.bf16 %v6654_v11 }
 0x35c   :  { %v6722_v45 = vunpack.i.l.bf16 %v6721_v35  ;;  %v6723_v17 = vunpack.i.h.bf16 %v6721_v35  ;;  %v4007_v26 = vpop.f32.mrf.mxu1  ;;  %v11672_v33 = vpop.f32.mrf.mxu0  ;;  %9020 = vmatmul.mubr.msk.bf16.gmra.mxu0 %vm2785_vm2, %v4590_v18  ;;  %v6709_v53 = vpack.i.bf16 %v6708_v50, %v6708_v50  ;;  %v7191_v35 = vunpack.c.l.bf16 %v6687_v21 }
 0x35d   :  { %v6717_v62 = vmax.f32 %v6715_v31, %v6716_v58  ;;  %v4327_v9 = vpack.c.bf16 %v4007_v26, %v4004_v27  ;;  %v4464_v8 = vadd.bf16 %v10708_v40, %v4328_v38  ;;  %v7192_v18 = vunpack.c.l.bf16 %v6698_v10 }
 0x35e   :  { %v6724_v49 = vmax.f32 %v6722_v45, %v6723_v17  ;;  %v8769_v56 = vpop.f32.mrf.mxu1  ;;  %v11675_v15 = vpop.f32.mrf.mxu0  ;;  %v7321_v30 = vsel %vm7300_vm3, %v7189_v22, %v7188_v3  ;;  %v7193_v59 = vunpack.c.l.bf16 %v6709_v53  ;;  %v6124_v1 = vpack.c.bf16 %v11668_v43, %v11659_v25 }
 0x35f   :  { %v6718_v51 = vrot.slane %v6717_v62, 1  ;;  %v4463_v42 = vadd.bf16 %v10708_v40, %v4327_v9  ;;  %v4592_v23 = vmax.bf16 %v12259_v6, %v4464_v8  ;;  %v7322_v63 = vsel %vm7302_vm4, %v7190_v60, %v7321_v30 }
 0x360   :  { %v6725_v55 = vrot.slane %v6724_v49, 4  ;;  %v4020_v47 = vpop.f32.mrf.mxu1  ;;  %v11679_v14 = vpop.f32.mrf.mxu0  ;;  %v6125_v16 = vpack.c.bf16 %v11665_v32, %v11655_v61  ;;  %v6260_v43 = vadd.bf16 %v11246_v4, %v6124_v1 }
 0x361   :  { %v4591_v46 = vmax.bf16 %v12259_v6, %v4463_v42  ;;  %v6719_v48 = vmax.f32 %v6717_v62, %v6718_v51 }
 0x362   :  { %v6726_v24 = vmax.f32 %v6724_v49, %v6725_v55  ;;  %v8770_v44 = vpop.f32.mrf.mxu1  ;;  %v11682_v57 = vpop.f32.mrf.mxu0  ;;  %v7323_v49 = vsel %vm7304_vm5, %v7191_v35, %v7322_v63  ;;  %v6261_v32 = vadd.bf16 %v11246_v4, %v6125_v16 }
 0x363   :  { %v4330_v7 = vpack.c.bf16 %v8770_v44, %v8769_v56  ;;  %9023 = vmatprep.mubr.msk.bf16.mxu0 %vm2785_vm2, %v4591_v46  ;;  %v6720_v31 = vpack.i.bf16 %v6719_v48, %v6719_v48  ;;  %v7324_v51 = vsel %vm7306_vm6, %v7192_v18, %v7323_v49  ;;  %v6126_v48 = vpack.c.bf16 %v11682_v57, %v11675_v15 }
 0x364   :  { %v6727_v13 = vrot.slane %v6726_v24, 2  ;;  %v4023_v19 = vpop.f32.mrf.mxu1  ;;  %v11686_v5 = vpop.f32.mrf.mxu0  ;;  %9024 = vmatmul.mubr.msk.bf16.gmra.mxu0 %vm2785_vm2, %v4592_v23  ;;  %v7325_v8 = vsel %vm7308_vm7, %v7193_v59, %v7324_v51  ;;  %v6389_v3 = vmax.bf16 %v12259_v6, %v6261_v32 }
 0x365   :  { %v4329_v28 = vpack.c.bf16 %v4023_v19, %v4020_v47  ;;  %v4466_v54 = vadd.bf16 %v10708_v40, %v4330_v7  ;;  %v7194_v62 = vunpack.c.l.bf16 %v6720_v31  ;;  %v6127_v7 = vpack.c.bf16 %v11679_v14, %v11672_v33 }
 0x366   :  { %v6728_v2 = vmax.f32 %v6726_v24, %v6727_v13  ;;  %v8773_v29 = vpop.f32.mrf.mxu1  ;;  %v5469_v27 = vpop.f32.mrf.mxu0  ;;  %v6262_v22 = vadd.bf16 %v11246_v4, %v6126_v48 }
 0x367   :  { %v4465_v20 = vadd.bf16 %v10708_v40, %v4329_v28  ;;  %v4594_v37 = vmax.bf16 %v12259_v6, %v4466_v54  ;;  %v7326_v47 = vsel %vm7310_vm8, %v7194_v62, %v7325_v8  ;;  %v6263_v60 = vadd.bf16 %v11246_v4, %v6127_v7 }
 0x368   :  { %v6729_v39 = vrot.slane %v6728_v2, 1  ;;  %v4036_v0 = vpop.f32.mrf.mxu1  ;;  %v8930_v58 = vpop.f32.mrf.mxu0 }
 0x369   :  { %v4593_v38 = vmax.bf16 %v12259_v6, %v4465_v20  ;;  %v6129_v19 = vpack.c.bf16 %v8930_v58, %v11686_v5  ;;  %v6391_v63 = vmax.bf16 %v12259_v6, %v6263_v60 }
 0x36a   :  { %v6730_v45 = vmax.f32 %v6728_v2, %v6729_v39  ;;  %v8774_v17 = vpop.f32.mrf.mxu1  ;;  %v5472_v26 = vpop.f32.mrf.mxu0 }
 0x36b   :  { %v4332_v34 = vpack.c.bf16 %v8774_v17, %v8773_v29  ;;  %9027 = vmatprep.mubr.msk.bf16.mxu0 %vm2785_vm2, %v4593_v38  ;;  %v6128_v23 = vpack.c.bf16 %v5472_v26, %v5469_v27  ;;  %v6388_v27 = vmax.bf16 %v12259_v6, %v6260_v43  ;;  %v6265_v31 = vadd.bf16 %v11246_v4, %v6129_v19 }
 0x36c   :  { %v6731_v9 = vpack.i.bf16 %v6730_v45, %v6730_v45  ;;  %v4039_v56 = vpop.f32.mrf.mxu1  ;;  %v8933_v12 = vpop.f32.mrf.mxu0  ;;  %9028 = vmatmul.mubr.msk.bf16.gmra.mxu0 %vm2785_vm2, %v4594_v37 }
 0x36d   :  { %v4331_v52 = vpack.c.bf16 %v4039_v56, %v4036_v0  ;;  %v4468_v36 = vadd.bf16 %v10708_v40, %v4332_v34  ;;  %v6264_v53 = vadd.bf16 %v11246_v4, %v6128_v23  ;;  %v6390_v0 = vmax.bf16 %v12259_v6, %v6262_v22 }
 0x36e   :  { %v7195_v41 = vunpack.c.l.bf16 %v6731_v9  ;;  %v8777_v55 = vpop.f32.mrf.mxu1  ;;  %v5485_v42 = vpop.f32.mrf.mxu0  ;;  %v6732_v26 = vmax.bf16 %v6389_v3, %v6388_v27  ;;  %v6393_v62 = vmax.bf16 %v12259_v6, %v6265_v31 }
 0x36f   :  { %v4467_v24 = vadd.bf16 %v10708_v40, %v4331_v52  ;;  %v4596_v13 = vmax.bf16 %v12259_v6, %v4468_v36  ;;  %v6392_v58 = vmax.bf16 %v12259_v6, %v6264_v53  ;;  %v6743_v51 = vmax.bf16 %v6391_v63, %v6390_v0 }
 0x370   :  { %v7327_v50 = vsel %vm7312_vm9, %v7195_v41, %v7326_v47  ;;  %v4052_v46 = vpop.f32.mrf.mxu1  ;;  %v8934_v44 = vpop.f32.mrf.mxu0  ;;  %v6733_v36 = vunpack.i.l.bf16 %v6732_v26 }
 0x371   :  { %7373 = vst [vmem:[#allocation2 + $0x10] sm:$0xff] %v7327_v50  ;;  %v4595_v11 = vmax.bf16 %v12259_v6, %v4467_v24  ;;  %v6131_v2 = vpack.c.bf16 %v8934_v44, %v8933_v12  ;;  %v6754_v8 = vmax.bf16 %v6393_v62, %v6392_v58 }
 0x372   :  { %v8778_v21 = vpop.f32.mrf.mxu1  ;;  %v5488_v25 = vpop.f32.mrf.mxu0 }
 0x373   :  { %v4334_v10 = vpack.c.bf16 %v8778_v21, %v8777_v55  ;;  %v6130_v28 = vpack.c.bf16 %v5488_v25, %v5485_v42  ;;  %9031 = vmatprep.mubr.msk.bf16.mxu0 %vm2785_vm2, %v4595_v11  ;;  %v6267_v18 = vadd.bf16 %v11246_v4, %v6131_v2  ;;  %v6744_v11 = vunpack.i.l.bf16 %v6743_v51 }
 0x374   :  { %v4055_v61 = vpop.f32.mrf.mxu1  ;;  %v8937_v57 = vpop.f32.mrf.mxu0  ;;  %9032 = vmatmul.mubr.msk.bf16.gmra.mxu0 %vm2785_vm2, %v4596_v13  ;;  %v6745_v21 = vunpack.i.h.bf16 %v6743_v51  ;;  %v6755_v25 = vunpack.i.l.bf16 %v6754_v8  ;;  %v6756_v7 = vunpack.i.h.bf16 %v6754_v8 }
 0x375   :  { %v4333_v15 = vpack.c.bf16 %v4055_v61, %v4052_v46  ;;  %v4470_v33 = vadd.bf16 %v10708_v40, %v4334_v10  ;;  %v6266_v54 = vadd.bf16 %v11246_v4, %v6130_v28  ;;  %v6395_v41 = vmax.bf16 %v12259_v6, %v6267_v18 }
 0x376   :  { %v8781_v29 = vpop.f32.mrf.mxu1  ;;  %v5501_v5 = vpop.f32.mrf.mxu0  ;;  %v6734_v46 = vunpack.i.h.bf16 %v6732_v26 }
 0x377   :  { %v4469_v14 = vadd.bf16 %v10708_v40, %v4333_v15  ;;  %v4598_v59 = vmax.bf16 %v12259_v6, %v4470_v33  ;;  %v6394_v37 = vmax.bf16 %v12259_v6, %v6266_v54  ;;  %v6757_v54 = vmax.f32 %v6755_v25, %v6756_v7 }
 0x378   :  { %v4068_v20 = vpop.f32.mrf.mxu1  ;;  %v8938_v39 = vpop.f32.mrf.mxu0  ;;  %v6735_v2 = vmax.f32 %v6733_v36, %v6734_v46 }
 0x379   :  { %v4597_v35 = vmax.bf16 %v12259_v6, %v4469_v14  ;;  %v6133_v38 = vpack.c.bf16 %v8938_v39, %v8937_v57  ;;  %v6765_v50 = vmax.bf16 %v6395_v41, %v6394_v37  ;;  %v6758_v37 = vrot.slane %v6757_v54, 4 }
 0x37a   :  { %v8782_v30 = vpop.f32.mrf.mxu1  ;;  %v5504_v17 = vpop.f32.mrf.mxu0 }
 0x37b   :  { %v4336_v45 = vpack.c.bf16 %v8782_v30, %v8781_v29  ;;  %9035 = vmatprep.mubr.msk.bf16.mxu0 %vm2785_vm2, %v4597_v35  ;;  %v6269_v49 = vadd.bf16 %v11246_v4, %v6133_v38  ;;  %v6132_v9 = vpack.c.bf16 %v5504_v17, %v5501_v5  ;;  %v6766_v32 = vunpack.i.l.bf16 %v6765_v50 }
 0x37c   :  { %v4071_v34 = vpop.f32.mrf.mxu1  ;;  %v8941_v12 = vpop.f32.mrf.mxu0  ;;  %9036 = vmatmul.mubr.msk.bf16.gmra.mxu0 %vm2785_vm2, %v4598_v59  ;;  %v6767_v15 = vunpack.i.h.bf16 %v6765_v50  ;;  %v6746_v5 = vmax.f32 %v6744_v11, %v6745_v21  ;;  %v6736_v38 = vrot.slane %v6735_v2, 4  ;;  %v6759_v46 = vmax.f32 %v6757_v54, %v6758_v37 }
 0x37d   :  { %v4335_v56 = vpack.c.bf16 %v4071_v34, %v4068_v20  ;;  %v4472_v55 = vadd.bf16 %v10708_v40, %v4336_v45  ;;  %v6268_v42 = vadd.bf16 %v11246_v4, %v6132_v9  ;;  %v6397_v44 = vmax.bf16 %v12259_v6, %v6269_v49 }
 0x37e   :  { %v8785_v52 = vpop.f32.mrf.mxu1  ;;  %v5517_v1 = vpop.f32.mrf.mxu0  ;;  %v6768_v35 = vmax.f32 %v6766_v32, %v6767_v15  ;;  %v6747_v45 = vrot.slane %v6746_v5, 4 }
 0x37f   :  { %v4471_v47 = vadd.bf16 %v10708_v40, %v4335_v56  ;;  %v6396_v16 = vmax.bf16 %v12259_v6, %v6268_v42  ;;  %v4600_v19 = vmax.bf16 %v12259_v6, %v4472_v55 }
 0x380   :  { %v4084_v24 = vpop.f32.mrf.mxu1  ;;  %v8942_v23 = vpop.f32.mrf.mxu0  ;;  %v6769_v56 = vrot.slane %v6768_v35, 4  ;;  %v6748_v36 = vmax.f32 %v6746_v5, %v6747_v45 }
 0x381   :  { %v4599_v48 = vmax.bf16 %v12259_v6, %v4471_v47  ;;  %v6135_v43 = vpack.c.bf16 %v8942_v23, %v8941_v12  ;;  %v6776_v10 = vmax.bf16 %v6397_v44, %v6396_v16 }
 0x382   :  { %v8786_v13 = vpop.f32.mrf.mxu1  ;;  %v5520_v61 = vpop.f32.mrf.mxu0  ;;  %v6770_v11 = vmax.f32 %v6768_v35, %v6769_v56 }
 0x383   :  { %v4338_v28 = vpack.c.bf16 %v8786_v13, %v8785_v52  ;;  %9039 = vmatprep.mubr.msk.bf16.mxu0 %vm2785_vm2, %v4599_v48  ;;  %v6271_v57 = vadd.bf16 %v11246_v4, %v6135_v43  ;;  %v6134_v22 = vpack.c.bf16 %v5520_v61, %v5517_v1  ;;  %v6777_v29 = vunpack.i.l.bf16 %v6776_v10 }
 0x384   :  { %v4087_v53 = vpop.f32.mrf.mxu1  ;;  %v6778_v33 = vunpack.i.h.bf16 %v6776_v10  ;;  %v8945_v14 = vpop.f32.mrf.mxu0  ;;  %9040 = vmatmul.mubr.msk.bf16.gmra.mxu0 %vm2785_vm2, %v4600_v19  ;;  %v6737_v1 = vmax.f32 %v6735_v2, %v6736_v38  ;;  %v6749_v61 = vrot.slane %v6748_v36, 2 }
 0x385   :  { %v6270_v27 = vadd.bf16 %v11246_v4, %v6134_v22  ;;  %v4337_v60 = vpack.c.bf16 %v4087_v53, %v4084_v24  ;;  %v4474_v20 = vadd.bf16 %v10708_v40, %v4338_v28  ;;  %v6399_v39 = vmax.bf16 %v12259_v6, %v6271_v57 }
 0x386   :  { %v8789_v31 = vpop.f32.mrf.mxu1  ;;  %v5533_v3 = vpop.f32.mrf.mxu0  ;;  %v6779_v30 = vmax.f32 %v6777_v29, %v6778_v33  ;;  %v6738_v28 = vrot.slane %v6737_v1, 2  ;;  %v6760_v22 = vrot.slane %v6759_v46, 2  ;;  %v6750_v35 = vmax.f32 %v6748_v36, %v6749_v61 }
 0x387   :  { %v6398_v0 = vmax.bf16 %v12259_v6, %v6270_v27  ;;  %v4473_v58 = vadd.bf16 %v10708_v40, %v4337_v60  ;;  %v4602_v34 = vmax.bf16 %v12259_v6, %v4474_v20 }
 0x388   :  { %v4100_v18 = vpop.f32.mrf.mxu1  ;;  %v8946_v59 = vpop.f32.mrf.mxu0  ;;  %v6780_v41 = vrot.slane %v6779_v30, 4  ;;  %v6739_v38 = vmax.f32 %v6737_v1, %v6738_v28 }
 0x389   :  { %v6787_v17 = vmax.bf16 %v6399_v39, %v6398_v0  ;;  %v4601_v26 = vmax.bf16 %v12259_v6, %v4473_v58  ;;  %v6137_v63 = vpack.c.bf16 %v8946_v59, %v8945_v14  ;;  %v6771_v14 = vrot.slane %v6770_v11, 2 }
 0x38a   :  { %v8790_v62 = vpop.f32.mrf.mxu1  ;;  %v5536_v9 = vpop.f32.mrf.mxu0  ;;  %v6781_v43 = vmax.f32 %v6779_v30, %v6780_v41  ;;  %v6761_v30 = vmax.f32 %v6759_v46, %v6760_v22 }
 0x38b   :  { %v4340_v49 = vpack.c.bf16 %v8790_v62, %v8789_v31  ;;  %v6788_v12 = vunpack.i.l.bf16 %v6787_v17  ;;  %v6789_v51 = vunpack.i.h.bf16 %v6787_v17  ;;  %9043 = vmatprep.mubr.msk.bf16.mxu0 %vm2785_vm2, %v4601_v26  ;;  %v6273_v52 = vadd.bf16 %v11246_v4, %v6137_v63 }
 0x38c   :  { %v4103_v8 = vpop.f32.mrf.mxu1  ;;  %v6136_v55 = vpack.c.bf16 %v5536_v9, %v5533_v3  ;;  %v8949_v47 = vpop.f32.mrf.mxu0  ;;  %9044 = vmatmul.mubr.msk.bf16.gmra.mxu0 %vm2785_vm2, %v4602_v34  ;;  %v6782_v31 = vrot.slane %v6781_v43, 2  ;;  %v6772_v26 = vmax.f32 %v6770_v11, %v6771_v14 }
 0x38d   :  { %v4339_v42 = vpack.c.bf16 %v4103_v8, %v4100_v18  ;;  %v6790_v50 = vmax.f32 %v6788_v12, %v6789_v51  ;;  %v4476_v44 = vadd.bf16 %v10708_v40, %v4340_v49  ;;  %v6401_v13 = vmax.bf16 %v12259_v6, %v6273_v52 }
 0x38e   :  { %v8793_v24 = vpop.f32.mrf.mxu1  ;;  %v6272_v16 = vadd.bf16 %v11246_v4, %v6136_v55  ;;  %v5549_v23 = vpop.f32.mrf.mxu0  ;;  %v6783_v49 = vmax.f32 %v6781_v43, %v6782_v31  ;;  %v6751_v12 = vrot.slane %v6750_v35, 1  ;;  %v6762_v55 = vrot.slane %v6761_v30, 1 }
 0x38f   :  { %v4475_v48 = vadd.bf16 %v10708_v40, %v4339_v42  ;;  %v6791_v21 = vrot.slane %v6790_v50, 4  ;;  %v4604_v53 = vmax.bf16 %v12259_v6, %v4476_v44 }
 0x390   :  { %v4116_v25 = vpop.f32.mrf.mxu1  ;;  %v6400_v7 = vmax.bf16 %v12259_v6, %v6272_v16  ;;  %v8950_v10 = vpop.f32.mrf.mxu0 }
 0x391   :  { %v4603_v19 = vmax.bf16 %v12259_v6, %v4475_v48  ;;  %v6792_v32 = vmax.f32 %v6790_v50, %v6791_v21  ;;  %v6139_v15 = vpack.c.bf16 %v8950_v10, %v8949_v47  ;;  %v6740_v50 = vrot.slane %v6739_v38, 1 }
 0x392   :  { %v8794_v57 = vpop.f32.mrf.mxu1  ;;  %v6798_v2 = vmax.bf16 %v6401_v13, %v6400_v7  ;;  %v5552_v33 = vpop.f32.mrf.mxu0  ;;  %v6784_v48 = vrot.slane %v6783_v49, 1 }
 0x393   :  { %v4342_v29 = vpack.c.bf16 %v8794_v57, %v8793_v24  ;;  %9047 = vmatprep.mubr.msk.bf16.mxu0 %vm2785_vm2, %v4603_v19  ;;  %v6275_v5 = vadd.bf16 %v11246_v4, %v6139_v15  ;;  %v6138_v27 = vpack.c.bf16 %v5552_v33, %v5549_v23  ;;  %v6793_v39 = vrot.slane %v6792_v32, 2 }
 0x394   :  { %v4119_v60 = vpop.f32.mrf.mxu1  ;;  %v6799_v54 = vunpack.i.l.bf16 %v6798_v2  ;;  %v6800_v20 = vunpack.i.h.bf16 %v6798_v2  ;;  %v11769_v3 = vpop.f32.mrf.mxu0  ;;  %9048 = vmatmul.mubr.msk.bf16.gmra.mxu0 %vm2785_vm2, %v4604_v53  ;;  %v6773_v24 = vrot.slane %v6772_v26, 1  ;;  %v6763_v19 = vmax.f32 %v6761_v30, %v6762_v55 }
 0x395   :  { %v6274_v0 = vadd.bf16 %v11246_v4, %v6138_v27  ;;  %v4341_v58 = vpack.c.bf16 %v4119_v60, %v4116_v25  ;;  %v4478_v45 = vadd.bf16 %v10708_v40, %v4342_v29  ;;  %v6403_v63 = vmax.bf16 %v12259_v6, %v6275_v5 }
 0x396   :  { %v8797_v18 = vpop.f32.mrf.mxu1  ;;  %v6801_v59 = vmax.f32 %v6799_v54, %v6800_v20  ;;  %v11774_v17 = vpop.f32.mrf.mxu0  ;;  %v6794_v51 = vmax.f32 %v6792_v32, %v6793_v39  ;;  %v6752_v25 = vmax.f32 %v6750_v35, %v6751_v12  ;;  %v6741_v15 = vmax.f32 %v6739_v38, %v6740_v50 }
 0x397   :  { %v6402_v62 = vmax.bf16 %v12259_v6, %v6274_v0  ;;  %v4477_v37 = vadd.bf16 %v10708_v40, %v4341_v58  ;;  %v4606_v47 = vmax.bf16 %v12259_v6, %v4478_v45  ;;  %v6774_v57 = vmax.f32 %v6772_v26, %v6773_v24 }
 0x398   :  { %v4132_v34 = vpop.f32.mrf.mxu1  ;;  %v6802_v9 = vrot.slane %v6801_v59, 4  ;;  %v11779_v56 = vpop.f32.mrf.mxu0  ;;  %v6795_v43 = vrot.slane %v6794_v51, 1  ;;  %v6785_v2 = vmax.f32 %v6783_v49, %v6784_v48  ;;  %v6753_v5 = vpack.i.bf16 %v6752_v25, %v6752_v25 }
 0x399   :  { %v6809_v8 = vmax.bf16 %v6403_v63, %v6402_v62  ;;  %v4605_v41 = vmax.bf16 %v12259_v6, %v4477_v37  ;;  %v6764_v54 = vpack.i.bf16 %v6763_v19, %v6763_v19  ;;  %v6742_v58 = vpack.i.bf16 %v6741_v15, %v6741_v15 }
 0x39a   :  { %v8798_v52 = vpop.f32.mrf.mxu1  ;;  %v6803_v42 = vmax.f32 %v6801_v59, %v6802_v9  ;;  %v11783_v36 = vpop.f32.mrf.mxu0  ;;  %v6796_v27 = vmax.f32 %v6794_v51, %v6795_v43  ;;  %v6786_v59 = vpack.i.bf16 %v6785_v2, %v6785_v2  ;;  %v7197_v26 = vunpack.c.l.bf16 %v6753_v5 }
 0x39b   :  { %v4344_v1 = vpack.c.bf16 %v8798_v52, %v8797_v18  ;;  %v6810_v46 = vunpack.i.l.bf16 %v6809_v8  ;;  %v6811_v44 = vunpack.i.h.bf16 %v6809_v8  ;;  %9051 = vmatprep.mubr.msk.bf16.mxu0 %vm2785_vm2, %v4605_v41  ;;  %v6775_v18 = vpack.i.bf16 %v6774_v57, %v6774_v57 }
 0x39c   :  { %v4135_v16 = vpop.f32.mrf.mxu1  ;;  %v6804_v23 = vrot.slane %v6803_v42, 2  ;;  %v11786_v21 = vpop.f32.mrf.mxu0  ;;  %9052 = vmatmul.mubr.msk.bf16.gmra.mxu0 %vm2785_vm2, %v4606_v47  ;;  %v6797_v63 = vpack.i.bf16 %v6796_v27, %v6796_v27  ;;  %v7198_v49 = vunpack.c.l.bf16 %v6764_v54  ;;  %v7196_v8 = vunpack.c.l.bf16 %v6742_v58 }
 0x39d   :  { %v4343_v11 = vpack.c.bf16 %v4135_v16, %v4132_v34  ;;  %v6812_v13 = vmax.f32 %v6810_v46, %v6811_v44  ;;  %v4480_v28 = vadd.bf16 %v10708_v40, %v4344_v1  ;;  %v7199_v41 = vunpack.c.l.bf16 %v6775_v18 }
 0x39e   :  { %v8801_v7 = vpop.f32.mrf.mxu1  ;;  %v6805_v10 = vmax.f32 %v6803_v42, %v6804_v23  ;;  %v11791_v32 = vpop.f32.mrf.mxu0  ;;  %v7200_v47 = vunpack.c.l.bf16 %v6786_v59  ;;  %v7328_v50 = vsel %vm7300_vm3, %v7197_v26, %v7196_v8  ;;  %v7201_v24 = vunpack.c.l.bf16 %v6797_v63 }
 0x39f   :  { %v4479_v61 = vadd.bf16 %v10708_v40, %v4343_v11  ;;  %v6813_v22 = vrot.slane %v6812_v13, 4  ;;  %v4608_v35 = vmax.bf16 %v12259_v6, %v4480_v28  ;;  %v7329_v48 = vsel %vm7302_vm4, %v7198_v49, %v7328_v50 }
 0x3a0   :  { %v4148_v53 = vpop.f32.mrf.mxu1  ;;  %v6806_v29 = vrot.slane %v6805_v10, 1  ;;  %v11794_v14 = vpop.f32.mrf.mxu0  ;;  %v6140_v2 = vpack.c.bf16 %v11783_v36, %v11774_v17 }
 0x3a1   :  { %v4607_v33 = vmax.bf16 %v12259_v6, %v4479_v61  ;;  %v6814_v60 = vmax.f32 %v6812_v13, %v6813_v22  ;;  %v7330_v13 = vsel %vm7304_vm5, %v7199_v41, %v7329_v48 }
 0x3a2   :  { %v8802_v31 = vpop.f32.mrf.mxu1  ;;  %v6807_v20 = vmax.f32 %v6805_v10, %v6806_v29  ;;  %v11797_v0 = vpop.f32.mrf.mxu0  ;;  %v7331_v10 = vsel %vm7306_vm6, %v7200_v47, %v7330_v13  ;;  %v6276_v36 = vadd.bf16 %v11246_v4, %v6140_v2 }
 0x3a3   :  { %v4346_v39 = vpack.c.bf16 %v8802_v31, %v8801_v7  ;;  %9055 = vmatprep.mubr.msk.bf16.mxu0 %vm2785_vm2, %v4607_v33  ;;  %v6815_v38 = vrot.slane %v6814_v60, 2  ;;  %v7332_v15 = vsel %vm7308_vm7, %v7201_v24, %v7331_v10  ;;  %v6141_v31 = vpack.c.bf16 %v11779_v56, %v11769_v3 }
 0x3a4   :  { %v4151_v30 = vpop.f32.mrf.mxu1  ;;  %v11800_v45 = vpop.f32.mrf.mxu0  ;;  %9056 = vmatmul.mubr.msk.bf16.gmra.mxu0 %vm2785_vm2, %v4608_v35  ;;  %v6808_v9 = vpack.i.bf16 %v6807_v20, %v6807_v20  ;;  %v6142_v54 = vpack.c.bf16 %v11797_v0, %v11791_v32  ;;  %v6404_v49 = vmax.bf16 %v12259_v6, %v6276_v36 }
 0x3a5   :  { %v6816_v62 = vmax.f32 %v6814_v60, %v6815_v38  ;;  %v4345_v37 = vpack.c.bf16 %v4151_v30, %v4148_v53  ;;  %v4482_v12 = vadd.bf16 %v10708_v40, %v4346_v39  ;;  %v6143_v30 = vpack.c.bf16 %v11794_v14, %v11786_v21 }
 0x3a6   :  { %v8805_v34 = vpop.f32.mrf.mxu1  ;;  %v5597_v51 = vpop.f32.mrf.mxu0  ;;  %v7202_v23 = vunpack.c.l.bf16 %v6808_v9  ;;  %v6277_v0 = vadd.bf16 %v11246_v4, %v6141_v31  ;;  %v6278_v59 = vadd.bf16 %v11246_v4, %v6142_v54 }
 0x3a7   :  { %v6817_v52 = vrot.slane %v6816_v62, 1  ;;  %v4481_v55 = vadd.bf16 %v10708_v40, %v4345_v37  ;;  %v4610_v11 = vmax.bf16 %v12259_v6, %v4482_v12 }
 0x3a8   :  { %v4164_v42 = vpop.f32.mrf.mxu1  ;;  %v8962_v1 = vpop.f32.mrf.mxu0  ;;  %v7333_v53 = vsel %vm7310_vm8, %v7202_v23, %v7332_v15  ;;  %v6405_v41 = vmax.bf16 %v12259_v6, %v6277_v0 }
 0x3a9   :  { %v6818_v46 = vmax.f32 %v6816_v62, %v6817_v52  ;;  %v4609_v44 = vmax.bf16 %v12259_v6, %v4481_v55  ;;  %v6145_v3 = vpack.c.bf16 %v8962_v1, %v11800_v45  ;;  %v6279_v45 = vadd.bf16 %v11246_v4, %v6143_v30 }
 0x3aa   :  { %v8806_v16 = vpop.f32.mrf.mxu1  ;;  %v5600_v43 = vpop.f32.mrf.mxu0  ;;  %v6406_v52 = vmax.bf16 %v12259_v6, %v6278_v59  ;;  %v6820_v48 = vmax.bf16 %v6405_v41, %v6404_v49 }
 0x3ab   :  { %v4348_v25 = vpack.c.bf16 %v8806_v16, %v8805_v34  ;;  %v6819_v7 = vpack.i.bf16 %v6818_v46, %v6818_v46  ;;  %9059 = vmatprep.mubr.msk.bf16.mxu0 %vm2785_vm2, %v4609_v44  ;;  %v6144_v39 = vpack.c.bf16 %v5600_v43, %v5597_v51  ;;  %v6281_v9 = vadd.bf16 %v11246_v4, %v6145_v3 }
 0x3ac   :  { %v4167_v19 = vpop.f32.mrf.mxu1  ;;  %v8965_v61 = vpop.f32.mrf.mxu0  ;;  %9060 = vmatmul.mubr.msk.bf16.gmra.mxu0 %vm2785_vm2, %v4610_v11  ;;  %v6407_v23 = vmax.bf16 %v12259_v6, %v6279_v45 }
 0x3ad   :  { %v4347_v28 = vpack.c.bf16 %v4167_v19, %v4164_v42  ;;  %v7203_v57 = vunpack.c.l.bf16 %v6819_v7  ;;  %v4484_v29 = vadd.bf16 %v10708_v40, %v4348_v25  ;;  %v6280_v63 = vadd.bf16 %v11246_v4, %v6144_v39 }
 0x3ae   :  { %v8809_v22 = vpop.f32.mrf.mxu1  ;;  %v5613_v5 = vpop.f32.mrf.mxu0  ;;  %v6409_v11 = vmax.bf16 %v12259_v6, %v6281_v9 }
 0x3af   :  { %v4483_v33 = vadd.bf16 %v10708_v40, %v4347_v28  ;;  %v7334_v27 = vsel %vm7312_vm9, %v7203_v57, %v7333_v53  ;;  %v4612_v58 = vmax.bf16 %v12259_v6, %v4484_v29  ;;  %v6408_v42 = vmax.bf16 %v12259_v6, %v6280_v63 }
 0x3b0   :  { %v4180_v60 = vpop.f32.mrf.mxu1  ;;  %7374 = vst [vmem:[#allocation2 + $0x18] sm:$0xff] %v7334_v27  ;;  %v8966_v35 = vpop.f32.mrf.mxu0  ;;  %v6831_v28 = vmax.bf16 %v6407_v23, %v6406_v52 }
 0x3b1   :  { %v4611_v20 = vmax.bf16 %v12259_v6, %v4483_v33  ;;  %v6147_v62 = vpack.c.bf16 %v8966_v35, %v8965_v61  ;;  %v6842_v61 = vmax.bf16 %v6409_v11, %v6408_v42  ;;  %v6821_v33 = vunpack.i.l.bf16 %v6820_v48 }
 0x3b2   :  { %v8810_v17 = vpop.f32.mrf.mxu1  ;;  %v5616_v38 = vpop.f32.mrf.mxu0  ;;  %v6832_v39 = vunpack.i.l.bf16 %v6831_v28 }
 0x3b3   :  { %v4350_v18 = vpack.c.bf16 %v8810_v17, %v8809_v22  ;;  %9063 = vmatprep.mubr.msk.bf16.mxu0 %vm2785_vm2, %v4611_v20  ;;  %v6146_v56 = vpack.c.bf16 %v5616_v38, %v5613_v5  ;;  %v6283_v47 = vadd.bf16 %v11246_v4, %v6147_v62  ;;  %v6833_v17 = vunpack.i.h.bf16 %v6831_v28 }
 0x3b4   :  { %v4183_v32 = vpop.f32.mrf.mxu1  ;;  %v8969_v26 = vpop.f32.mrf.mxu0  ;;  %9064 = vmatmul.mubr.msk.bf16.gmra.mxu0 %vm2785_vm2, %v4612_v58  ;;  %v6843_v36 = vunpack.i.l.bf16 %v6842_v61  ;;  %v6844_v38 = vunpack.i.h.bf16 %v6842_v61 }
 0x3b5   :  { %v4349_v37 = vpack.c.bf16 %v4183_v32, %v4180_v60  ;;  %v4486_v21 = vadd.bf16 %v10708_v40, %v4350_v18  ;;  %v6282_v12 = vadd.bf16 %v11246_v4, %v6146_v56  ;;  %v6411_v15 = vmax.bf16 %v12259_v6, %v6283_v47 }
 0x3b6   :  { %v8813_v34 = vpop.f32.mrf.mxu1  ;;  %v5629_v14 = vpop.f32.mrf.mxu0  ;;  %v6822_v60 = vunpack.i.h.bf16 %v6820_v48 }
 0x3b7   :  { %v4485_v51 = vadd.bf16 %v10708_v40, %v4349_v37  ;;  %v4614_v46 = vmax.bf16 %v12259_v6, %v4486_v21  ;;  %v6410_v25 = vmax.bf16 %v12259_v6, %v6282_v12  ;;  %v6834_v21 = vmax.f32 %v6832_v39, %v6833_v17 }
 0x3b8   :  { %v4196_v8 = vpop.f32.mrf.mxu1  ;;  %v8970_v55 = vpop.f32.mrf.mxu0  ;;  %v6823_v9 = vmax.f32 %v6821_v33, %v6822_v60  ;;  %v6845_v12 = vmax.f32 %v6843_v36, %v6844_v38 }
 0x3b9   :  { %v4613_v1 = vmax.bf16 %v12259_v6, %v4485_v51  ;;  %v6149_v50 = vpack.c.bf16 %v8970_v55, %v8969_v26  ;;  %v6853_v5 = vmax.bf16 %v6411_v15, %v6410_v25 }
 0x3ba   :  { %v8814_v24 = vpop.f32.mrf.mxu1  ;;  %v5632_v16 = vpop.f32.mrf.mxu0  ;;  %v6824_v11 = vrot.slane %v6823_v9, 4 }
 0x3bb   :  { %v4352_v44 = vpack.c.bf16 %v8814_v24, %v8813_v34  ;;  %9067 = vmatprep.mubr.msk.bf16.mxu0 %vm2785_vm2, %v4613_v1  ;;  %v6285_v13 = vadd.bf16 %v11246_v4, %v6149_v50  ;;  %v6148_v7 = vpack.c.bf16 %v5632_v16, %v5629_v14  ;;  %v6854_v0 = vunpack.i.l.bf16 %v6853_v5 }
 0x3bc   :  { %v4199_v43 = vpop.f32.mrf.mxu1  ;;  %v8973_v10 = vpop.f32.mrf.mxu0  ;;  %9068 = vmatmul.mubr.msk.bf16.gmra.mxu0 %vm2785_vm2, %v4614_v46  ;;  %v6855_v59 = vunpack.i.h.bf16 %v6853_v5  ;;  %v6835_v50 = vrot.slane %v6834_v21, 4  ;;  %v6846_v16 = vrot.slane %v6845_v12, 4 }
 0x3bd   :  { %v4351_v19 = vpack.c.bf16 %v4199_v43, %v4196_v8  ;;  %v4488_v22 = vadd.bf16 %v10708_v40, %v4352_v44  ;;  %v6284_v53 = vadd.bf16 %v11246_v4, %v6148_v7  ;;  %v6413_v31 = vmax.bf16 %v12259_v6, %v6285_v13 }
 0x3be   :  { %v8817_v57 = vpop.f32.mrf.mxu1  ;;  %v5645_v29 = vpop.f32.mrf.mxu0  ;;  %v6856_v41 = vmax.f32 %v6854_v0, %v6855_v59  ;;  %v6836_v28 = vmax.f32 %v6834_v21, %v6835_v50  ;;  %v6847_v15 = vmax.f32 %v6845_v12, %v6846_v16 }
 0x3bf   :  { %v4487_v2 = vadd.bf16 %v10708_v40, %v4351_v19  ;;  %v6412_v54 = vmax.bf16 %v12259_v6, %v6284_v53  ;;  %v4616_v30 = vmax.bf16 %v12259_v6, %v4488_v22  ;;  %v6825_v53 = vmax.f32 %v6823_v9, %v6824_v11 }
 0x3c0   :  { %v4212_v27 = vpop.f32.mrf.mxu1  ;;  %v8974_v35 = vpop.f32.mrf.mxu0  ;;  %v6857_v25 = vrot.slane %v6856_v41, 4 }
 0x3c1   :  { %v4615_v20 = vmax.bf16 %v12259_v6, %v4487_v2  ;;  %v6151_v58 = vpack.c.bf16 %v8974_v35, %v8973_v10  ;;  %v6864_v3 = vmax.bf16 %v6413_v31, %v6412_v54  ;;  %v6837_v31 = vrot.slane %v6836_v28, 2 }
 0x3c2   :  { %v8818_v18 = vpop.f32.mrf.mxu1  ;;  %v5648_v32 = vpop.f32.mrf.mxu0  ;;  %v6858_v2 = vmax.f32 %v6856_v41, %v6857_v25  ;;  %v6848_v35 = vrot.slane %v6847_v15, 2  ;;  %v6826_v36 = vrot.slane %v6825_v53, 2 }
 0x3c3   :  { %v4354_v56 = vpack.c.bf16 %v8818_v18, %v8817_v57  ;;  %9071 = vmatprep.mubr.msk.bf16.mxu0 %vm2785_vm2, %v4615_v20  ;;  %v6287_v26 = vadd.bf16 %v11246_v4, %v6151_v58  ;;  %v6150_v63 = vpack.c.bf16 %v5648_v32, %v5645_v29  ;;  %v6865_v37 = vunpack.i.l.bf16 %v6864_v3 }
 0x3c4   :  { %v4215_v62 = vpop.f32.mrf.mxu1  ;;  %v6866_v34 = vunpack.i.h.bf16 %v6864_v3  ;;  %v8977_v49 = vpop.f32.mrf.mxu0  ;;  %9072 = vmatmul.mubr.msk.bf16.gmra.mxu0 %vm2785_vm2, %v4616_v30  ;;  %v6859_v58 = vrot.slane %v6858_v2, 2  ;;  %v6838_v0 = vmax.f32 %v6836_v28, %v6837_v31 }
 0x3c5   :  { %v6286_v14 = vadd.bf16 %v11246_v4, %v6150_v63  ;;  %v4353_v45 = vpack.c.bf16 %v4215_v62, %v4212_v27  ;;  %v4490_v51 = vadd.bf16 %v10708_v40, %v4354_v56  ;;  %v6415_v52 = vmax.bf16 %v12259_v6, %v6287_v26 }
 0x3c6   :  { %v5661_v8 = vpop.f32.mrf.mxu0  ;;  %v6867_v47 = vmax.f32 %v6865_v37, %v6866_v34  ;;  %v6849_v63 = vmax.f32 %v6847_v15, %v6848_v35  ;;  %v6827_v34 = vmax.f32 %v6825_v53, %v6826_v36 }
 0x3c7   :  { %v6414_v55 = vmax.bf16 %v12259_v6, %v6286_v14  ;;  %v4489_v42 = vadd.bf16 %v10708_v40, %v4353_v45  ;;  %v4618_v48 = vmax.bf16 %v12259_v6, %v4490_v51  ;;  %v6839_v51 = vrot.slane %v6838_v0, 1 }
 0x3c8   :  { %v8978_v1 = vpop.f32.mrf.mxu0  ;;  %v6868_v7 = vrot.slane %v6867_v47, 4 }
 0x3c9   :  { %v6875_v24 = vmax.bf16 %v6415_v52, %v6414_v55  ;;  %v4617_v46 = vmax.bf16 %v12259_v6, %v4489_v42  ;;  %v6153_v44 = vpack.c.bf16 %v8978_v1, %v8977_v49  ;;  %v6860_v49 = vmax.f32 %v6858_v2, %v6859_v58 }
 0x3ca   :  { %v5664_v23 = vpop.f32.mrf.mxu0  ;;  %v6869_v33 = vmax.f32 %v6867_v47, %v6868_v7  ;;  %v6850_v52 = vrot.slane %v6849_v63, 1  ;;  %v6828_v47 = vrot.slane %v6827_v34, 1 }
 0x3cb   :  { %v6876_v43 = vunpack.i.l.bf16 %v6875_v24  ;;  %v6877_v13 = vunpack.i.h.bf16 %v6875_v24  ;;  %9075 = vmatprep.mubr.msk.bf16.mxu0 %vm2785_vm2, %v4617_v46  ;;  %v6289_v40 = vadd.bf16 %v11246_v4, %v6153_v44  ;;  %v6152_v19 = vpack.c.bf16 %v5664_v23, %v5661_v8 }
 0x3cc   :  { %v8981_v10 = vpop.f32.mrf.mxu0  ;;  %9076 = vmatmul.mubr.msk.bf16.gmra.mxu0 %vm2785_vm2, %v4618_v48  ;;  %v6870_v30 = vrot.slane %v6869_v33, 2  ;;  %v6861_v1 = vrot.slane %v6860_v49, 1  ;;  %v6840_v48 = vmax.f32 %v6838_v0, %v6839_v51  ;;  %v6851_v25 = vmax.f32 %v6849_v63, %v6850_v52 }
 0x3cd   :  { %v6878_v61 = vmax.f32 %v6876_v43, %v6877_v13  ;;  %v6288_v57 = vadd.bf16 %v11246_v4, %v6152_v19  ;;  %v6417_v5 = vmax.bf16 %v12259_v6, %v6289_v40  ;;  %v6829_v7 = vmax.f32 %v6827_v34, %v6828_v47 }
 0x3ce   :  { %v5677_v22 = vpop.f32.mrf.mxu0  ;;  %v6871_v45 = vmax.f32 %v6869_v33, %v6870_v30  ;;  %v6862_v40 = vmax.f32 %v6860_v49, %v6861_v1  ;;  %v6841_v15 = vpack.i.bf16 %v6840_v48, %v6840_v48  ;;  %v6852_v53 = vpack.i.bf16 %v6851_v25, %v6851_v25 }
 0x3cf   :  { %v6879_v29 = vrot.slane %v6878_v61, 4  ;;  %v6416_v27 = vmax.bf16 %v12259_v6, %v6288_v57  ;;  %v6830_v33 = vpack.i.bf16 %v6829_v7, %v6829_v7 }
 0x3d0   :  { %v8982_v60 = vpop.f32.mrf.mxu0  ;;  %v6872_v46 = vrot.slane %v6871_v45, 1 }
 0x3d1   :  { %v6880_v54 = vmax.f32 %v6878_v61, %v6879_v29  ;;  %v6155_v20 = vpack.c.bf16 %v8982_v60, %v8981_v10  ;;  %v6886_v39 = vmax.bf16 %v6417_v5, %v6416_v27  ;;  %v6863_v5 = vpack.i.bf16 %v6862_v40, %v6862_v40 }
 0x3d2   :  { %v5680_v17 = vpop.f32.mrf.mxu0  ;;  %v6873_v10 = vmax.f32 %v6871_v45, %v6872_v46  ;;  %v7204_v58 = vunpack.c.l.bf16 %v6830_v33 }
 0x3d3   :  { %v6291_v18 = vadd.bf16 %v11246_v4, %v6155_v20  ;;  %v6154_v38 = vpack.c.bf16 %v5680_v17, %v5677_v22  ;;  %v6887_v3 = vunpack.i.l.bf16 %v6886_v39  ;;  %v6888_v56 = vunpack.i.h.bf16 %v6886_v39 }
 0x3d4   :  { %v11878_v32 = vpop.f32.mrf.mxu0  ;;  %v6881_v59 = vrot.slane %v6880_v54, 2  ;;  %v6874_v60 = vpack.i.bf16 %v6873_v10, %v6873_v10  ;;  %v7206_v39 = vunpack.c.l.bf16 %v6852_v53 }
 0x3d5   :  { %v6290_v26 = vadd.bf16 %v11246_v4, %v6154_v38  ;;  %v6889_v62 = vmax.f32 %v6887_v3, %v6888_v56  ;;  %v6419_v21 = vmax.bf16 %v12259_v6, %v6291_v18  ;;  %v7207_v18 = vunpack.c.l.bf16 %v6863_v5 }
 0x3d6   :  { %v11881_v37 = vpop.f32.mrf.mxu0  ;;  %v6882_v8 = vmax.f32 %v6880_v54, %v6881_v59  ;;  %v7205_v54 = vunpack.c.l.bf16 %v6841_v15  ;;  %v7208_v30 = vunpack.c.l.bf16 %v6874_v60 }
 0x3d7   :  { %v6418_v14 = vmax.bf16 %v12259_v6, %v6290_v26  ;;  %v6890_v9 = vrot.slane %v6889_v62, 4 }
 0x3d8   :  { %v11885_v12 = vpop.f32.mrf.mxu0  ;;  %v6883_v23 = vrot.slane %v6882_v8, 1  ;;  %v7335_v56 = vsel %vm7300_vm3, %v7205_v54, %v7204_v58 }
 0x3d9   :  { %v6897_v41 = vmax.bf16 %v6419_v21, %v6418_v14  ;;  %v6891_v55 = vmax.f32 %v6889_v62, %v6890_v9  ;;  %v7336_v26 = vsel %vm7302_vm4, %v7206_v39, %v7335_v56 }
 0x3da   :  { %v11887_v42 = vpop.f32.mrf.mxu0  ;;  %v6884_v57 = vmax.f32 %v6882_v8, %v6883_v23  ;;  %v7337_v34 = vsel %vm7304_vm5, %v7207_v18, %v7336_v26 }
 0x3db   :  { %v6898_v50 = vunpack.i.l.bf16 %v6897_v41  ;;  %v6899_v24 = vunpack.i.h.bf16 %v6897_v41  ;;  %v6892_v44 = vrot.slane %v6891_v55, 2  ;;  %v7338_v21 = vsel %vm7306_vm6, %v7208_v30, %v7337_v34 }
 0x3dc   :  { %v11889_v16 = vpop.f32.mrf.mxu0  ;;  %v6885_v20 = vpack.i.bf16 %v6884_v57, %v6884_v57 }
 0x3dd   :  { %v6900_v11 = vmax.f32 %v6898_v50, %v6899_v24  ;;  %v6893_v43 = vmax.f32 %v6891_v55, %v6892_v44  ;;  %v6156_v55 = vpack.c.bf16 %v11887_v42, %v11881_v37  ;;  %v6157_v24 = vpack.c.bf16 %v11885_v12, %v11878_v32 }
 0x3de   :  { %v5709_v13 = vpop.f32.mrf.mxu0  ;;  %v7209_v0 = vunpack.c.l.bf16 %v6885_v20 }
 0x3df   :  { %v6901_v19 = vrot.slane %v6900_v11, 4  ;;  %v6894_v28 = vrot.slane %v6893_v43, 1  ;;  %v6293_v37 = vadd.bf16 %v11246_v4, %v6157_v24 }
 0x3e0   :  { %v8990_v61 = vpop.f32.mrf.mxu0  ;;  %v7339_v45 = vsel %vm7308_vm7, %v7209_v0, %v7338_v21 }
 0x3e1   :  { %v6902_v22 = vmax.f32 %v6900_v11, %v6901_v19  ;;  %v6895_v2 = vmax.f32 %v6893_v43, %v6894_v28  ;;  %v6159_v46 = vpack.c.bf16 %v8990_v61, %v11889_v16  ;;  %v6292_v11 = vadd.bf16 %v11246_v4, %v6156_v55 }
 0x3e2   :  { %v5712_v29 = vpop.f32.mrf.mxu0  ;;  %v6421_v57 = vmax.bf16 %v12259_v6, %v6293_v37 }
 0x3e3   :  { %v6903_v27 = vrot.slane %v6902_v22, 2  ;;  %v6896_v17 = vpack.i.bf16 %v6895_v2, %v6895_v2  ;;  %v6158_v47 = vpack.c.bf16 %v5712_v29, %v5709_v13  ;;  %v6295_v42 = vadd.bf16 %v11246_v4, %v6159_v46 }
 0x3e4   :  { %v8993_v31 = vpop.f32.mrf.mxu0  ;;  %v6420_v16 = vmax.bf16 %v12259_v6, %v6292_v11 }
 0x3e5   :  { %v6904_v35 = vmax.f32 %v6902_v22, %v6903_v27  ;;  %v7210_v63 = vunpack.c.l.bf16 %v6896_v17  ;;  %v6294_v25 = vadd.bf16 %v11246_v4, %v6158_v47  ;;  %v6423_v22 = vmax.bf16 %v12259_v6, %v6295_v42 }
 0x3e6   :  { %v5725_v36 = vpop.f32.mrf.mxu0  ;;  %v6908_v27 = vmax.bf16 %v6421_v57, %v6420_v16 }
 0x3e7   :  { %v6905_v38 = vrot.slane %v6904_v35, 1  ;;  %v7340_v51 = vsel %vm7310_vm8, %v7210_v63, %v7339_v45  ;;  %v6422_v19 = vmax.bf16 %v12259_v6, %v6294_v25 }
 0x3e8   :  { %v8994_v3 = vpop.f32.mrf.mxu0  ;;  %v6909_v18 = vunpack.i.l.bf16 %v6908_v27  ;;  %v6910_v56 = vunpack.i.h.bf16 %v6908_v27 }
 0x3e9   :  { %v6906_v59 = vmax.f32 %v6904_v35, %v6905_v38  ;;  %v6161_v48 = vpack.c.bf16 %v8994_v3, %v8993_v31  ;;  %v6919_v60 = vmax.bf16 %v6423_v22, %v6422_v19 }
 0x3ea   :  { %v5728_v62 = vpop.f32.mrf.mxu0  ;;  %v6911_v55 = vmax.f32 %v6909_v18, %v6910_v56 }
 0x3eb   :  { %v6907_v49 = vpack.i.bf16 %v6906_v59, %v6906_v59  ;;  %v6160_v1 = vpack.c.bf16 %v5728_v62, %v5725_v36  ;;  %v6297_v32 = vadd.bf16 %v11246_v4, %v6161_v48  ;;  %v6920_v38 = vunpack.i.l.bf16 %v6919_v60 }
 0x3ec   :  { %v8997_v14 = vpop.f32.mrf.mxu0  ;;  %v6921_v30 = vunpack.i.h.bf16 %v6919_v60 }
 0x3ed   :  { %v7211_v9 = vunpack.c.l.bf16 %v6907_v49  ;;  %v6296_v7 = vadd.bf16 %v11246_v4, %v6160_v1  ;;  %v6425_v2 = vmax.bf16 %v12259_v6, %v6297_v32 }
 0x3ee   :  { %v5741_v8 = vpop.f32.mrf.mxu0 }
 0x3ef   :  { %v7341_v41 = vsel %vm7312_vm9, %v7211_v9, %v7340_v51  ;;  %v6424_v61 = vmax.bf16 %v12259_v6, %v6296_v7  ;;  %v6922_v51 = vmax.f32 %v6920_v38, %v6921_v30 }
 0x3f0   :  { %7375 = vst [vmem:[#allocation2 + $0x20] sm:$0xff] %v7341_v41  ;;  %v8998_v52 = vpop.f32.mrf.mxu0 }
 0x3f1   :  { %v6163_v43 = vpack.c.bf16 %v8998_v52, %v8997_v14  ;;  %v6930_v54 = vmax.bf16 %v6425_v2, %v6424_v61 }
 0x3f2   :  { %v5744_v50 = vpop.f32.mrf.mxu0 }
 0x3f3   :  { %v6162_v44 = vpack.c.bf16 %v5744_v50, %v5741_v8  ;;  %v6299_v10 = vadd.bf16 %v11246_v4, %v6163_v43  ;;  %v6931_v0 = vunpack.i.l.bf16 %v6930_v54  ;;  %v6932_v59 = vunpack.i.h.bf16 %v6930_v54 }
 0x3f4   :  { %v9001_v23 = vpop.f32.mrf.mxu0  ;;  %v6912_v43 = vrot.slane %v6911_v55, 4 }
 0x3f5   :  { %v6298_v13 = vadd.bf16 %v11246_v4, %v6162_v44  ;;  %v6427_v31 = vmax.bf16 %v12259_v6, %v6299_v10  ;;  %v6933_v41 = vmax.f32 %v6931_v0, %v6932_v59  ;;  %v6923_v44 = vrot.slane %v6922_v51, 4 }
 0x3f6   :  { %v5757_v40 = vpop.f32.mrf.mxu0 }
 0x3f7   :  { %v6426_v53 = vmax.bf16 %v12259_v6, %v6298_v13  ;;  %v6934_v11 = vrot.slane %v6933_v41, 4  ;;  %v6924_v16 = vmax.f32 %v6922_v51, %v6923_v44 }
 0x3f8   :  { %v9002_v12 = vpop.f32.mrf.mxu0 }
 0x3f9   :  { %v6165_v28 = vpack.c.bf16 %v9002_v12, %v9001_v23  ;;  %v6941_v39 = vmax.bf16 %v6427_v31, %v6426_v53  ;;  %v6935_v10 = vmax.f32 %v6933_v41, %v6934_v11 }
 0x3fa   :  { %v5760_v15 = vpop.f32.mrf.mxu0 }
 0x3fb   :  { %v6301_v29 = vadd.bf16 %v11246_v4, %v6165_v28  ;;  %v6164_v33 = vpack.c.bf16 %v5760_v15, %v5757_v40  ;;  %v6942_v62 = vunpack.i.l.bf16 %v6941_v39  ;;  %v6943_v34 = vunpack.i.h.bf16 %v6941_v39 }
 0x3fc   :  { %v9005_v5 = vpop.f32.mrf.mxu0  ;;  %v6913_v15 = vmax.f32 %v6911_v55, %v6912_v43  ;;  %v6936_v31 = vrot.slane %v6935_v10, 2 }
 0x3fd   :  { %v6300_v20 = vadd.bf16 %v11246_v4, %v6164_v33  ;;  %v6429_v17 = vmax.bf16 %v12259_v6, %v6301_v29  ;;  %v6944_v47 = vmax.f32 %v6942_v62, %v6943_v34 }
 0x3fe   :  { %v5773_v35 = vpop.f32.mrf.mxu0  ;;  %v6937_v59 = vmax.f32 %v6935_v10, %v6936_v31 }
 0x3ff   :  { %v6428_v36 = vmax.bf16 %v12259_v6, %v6300_v20  ;;  %v6945_v7 = vrot.slane %v6944_v47, 4 }
 0x400   :  { %v9006_v58 = vpop.f32.mrf.mxu0 }
 0x401   :  { %v6167_v3 = vpack.c.bf16 %v9006_v58, %v9005_v5  ;;  %v6952_v26 = vmax.bf16 %v6429_v17, %v6428_v36  ;;  %v6946_v57 = vmax.f32 %v6944_v47, %v6945_v7  ;;  %v6925_v5 = vrot.slane %v6924_v16, 2 }
 0x402   :  { %v5776_v63 = vpop.f32.mrf.mxu0 }
 0x403   :  { %v6303_v49 = vadd.bf16 %v11246_v4, %v6167_v3  ;;  %v6166_v21 = vpack.c.bf16 %v5776_v63, %v5773_v35  ;;  %v6953_v14 = vunpack.i.l.bf16 %v6952_v26  ;;  %v6954_v45 = vunpack.i.h.bf16 %v6952_v26 }
 0x404   :  { %v9009_v9 = vpop.f32.mrf.mxu0  ;;  %v6914_v35 = vrot.slane %v6913_v15, 2  ;;  %v6947_v39 = vrot.slane %v6946_v57, 2  ;;  %v6926_v3 = vmax.f32 %v6924_v16, %v6925_v5 }
 0x405   :  { %v6302_v8 = vadd.bf16 %v11246_v4, %v6166_v21  ;;  %v6431_v1 = vmax.bf16 %v12259_v6, %v6303_v49  ;;  %v6955_v24 = vmax.f32 %v6953_v14, %v6954_v45 }
 0x406   :  { %v5789_v52 = vpop.f32.mrf.mxu0  ;;  %v6915_v62 = vmax.f32 %v6913_v15, %v6914_v35  ;;  %v6948_v34 = vmax.f32 %v6946_v57, %v6947_v39  ;;  %v6927_v51 = vrot.slane %v6926_v3, 1 }
 0x407   :  { %v6430_v50 = vmax.bf16 %v12259_v6, %v6302_v8  ;;  %v6956_v42 = vrot.slane %v6955_v24, 4 }
 0x408   :  { %v9010_v46 = vpop.f32.mrf.mxu0  ;;  %v6928_v11 = vmax.f32 %v6926_v3, %v6927_v51 }
 0x409   :  { %v6963_v48 = vmax.bf16 %v6431_v1, %v6430_v50  ;;  %v6169_v23 = vpack.c.bf16 %v9010_v46, %v9009_v9  ;;  %v6957_v53 = vmax.f32 %v6955_v24, %v6956_v42  ;;  %v6916_v1 = vrot.slane %v6915_v62, 1 }
 0x40a   :  { %v5792_v25 = vpop.f32.mrf.mxu0  ;;  %v6949_v50 = vrot.slane %v6948_v34, 1  ;;  %v6929_v10 = vpack.i.bf16 %v6928_v11, %v6928_v11 }
 0x40b   :  { %v6964_v40 = vunpack.i.l.bf16 %v6963_v48  ;;  %v6965_v37 = vunpack.i.h.bf16 %v6963_v48  ;;  %v6305_v13 = vadd.bf16 %v11246_v4, %v6169_v23  ;;  %v6168_v32 = vpack.c.bf16 %v5792_v25, %v5789_v52 }
 0x40c   :  { %v9013_v12 = vpop.f32.mrf.mxu0  ;;  %v6958_v58 = vrot.slane %v6957_v53, 2  ;;  %v6938_v52 = vrot.slane %v6937_v59, 1  ;;  %v6917_v42 = vmax.f32 %v6915_v62, %v6916_v1 }
 0x40d   :  { %v6966_v19 = vmax.f32 %v6964_v40, %v6965_v37  ;;  %v6304_v28 = vadd.bf16 %v11246_v4, %v6168_v32  ;;  %v6433_v2 = vmax.bf16 %v12259_v6, %v6305_v13  ;;  %v6950_v13 = vmax.f32 %v6948_v34, %v6949_v50 }
 0x40e   :  { %v5805_v61 = vpop.f32.mrf.mxu0  ;;  %v6959_v14 = vmax.f32 %v6957_v53, %v6958_v58  ;;  %v6939_v7 = vmax.f32 %v6937_v59, %v6938_v52  ;;  %v6918_v53 = vpack.i.bf16 %v6917_v42, %v6917_v42 }
 0x40f   :  { %v6967_v22 = vrot.slane %v6966_v19, 4  ;;  %v6432_v29 = vmax.bf16 %v12259_v6, %v6304_v28 }
 0x410   :  { %v9014_v33 = vpop.f32.mrf.mxu0  ;;  %v6960_v44 = vrot.slane %v6959_v14, 1  ;;  %v6940_v15 = vpack.i.bf16 %v6939_v7, %v6939_v7  ;;  %v7212_v39 = vunpack.c.l.bf16 %v6918_v53 }
 0x411   :  { %v6968_v27 = vmax.f32 %v6966_v19, %v6967_v22  ;;  %v6171_v60 = vpack.c.bf16 %v9014_v33, %v9013_v12  ;;  %v6974_v54 = vmax.bf16 %v6433_v2, %v6432_v29  ;;  %v6951_v2 = vpack.i.bf16 %v6950_v13, %v6950_v13 }
 0x412   :  { %v5808_v20 = vpop.f32.mrf.mxu0  ;;  %v6961_v12 = vmax.f32 %v6959_v14, %v6960_v44 }
 0x413   :  { %v6307_v17 = vadd.bf16 %v11246_v4, %v6171_v60  ;;  %v6170_v36 = vpack.c.bf16 %v5808_v20, %v5805_v61  ;;  %v6975_v18 = vunpack.i.l.bf16 %v6974_v54  ;;  %v6976_v38 = vunpack.i.h.bf16 %v6974_v54 }
 0x414   :  { %v11932_v30 = vpop.f32.mrf.mxu0  ;;  %v6969_v56 = vrot.slane %v6968_v27, 2  ;;  %v6962_v33 = vpack.i.bf16 %v6961_v12, %v6961_v12  ;;  %v7214_v54 = vunpack.c.l.bf16 %v6940_v15 }
 0x415   :  { %v6306_v0 = vadd.bf16 %v11246_v4, %v6170_v36  ;;  %v6977_v26 = vmax.f32 %v6975_v18, %v6976_v38  ;;  %v6435_v49 = vmax.bf16 %v12259_v6, %v6307_v17  ;;  %v7215_v17 = vunpack.c.l.bf16 %v6951_v2 }
 0x416   :  { %v11935_v63 = vpop.f32.mrf.mxu0  ;;  %v6970_v8 = vmax.f32 %v6968_v27, %v6969_v56  ;;  %v7213_v27 = vunpack.c.l.bf16 %v6929_v10  ;;  %v7216_v58 = vunpack.c.l.bf16 %v6962_v33 }
 0x417   :  { %v6434_v21 = vmax.bf16 %v12259_v6, %v6306_v0  ;;  %v6978_v45 = vrot.slane %v6977_v26, 4 }
 0x418   :  { %v11939_v9 = vpop.f32.mrf.mxu0  ;;  %v6971_v25 = vrot.slane %v6970_v8, 1  ;;  %v7342_v38 = vsel %vm7300_vm3, %v7213_v27, %v7212_v39 }
 0x419   :  { %v6985_v41 = vmax.bf16 %v6435_v49, %v6434_v21  ;;  %v6979_v55 = vmax.f32 %v6977_v26, %v6978_v45  ;;  %v7343_v0 = vsel %vm7302_vm4, %v7214_v54, %v7342_v38 }
 0x41a   :  { %v11941_v47 = vpop.f32.mrf.mxu0  ;;  %v6972_v28 = vmax.f32 %v6970_v8, %v6971_v25  ;;  %v7344_v62 = vsel %vm7304_vm5, %v7215_v17, %v7343_v0 }
 0x41b   :  { %v6986_v24 = vunpack.i.l.bf16 %v6985_v41  ;;  %v6987_v46 = vunpack.i.h.bf16 %v6985_v41  ;;  %v6980_v48 = vrot.slane %v6979_v55, 2  ;;  %v7345_v49 = vsel %vm7306_vm6, %v7216_v58, %v7344_v62 }
 0x41c   :  { %v11943_v23 = vpop.f32.mrf.mxu0  ;;  %v6973_v60 = vpack.i.bf16 %v6972_v28, %v6972_v28 }
 0x41d   :  { %v6988_v43 = vmax.f32 %v6986_v24, %v6987_v46  ;;  %v6981_v40 = vmax.f32 %v6979_v55, %v6980_v48  ;;  %v6172_v55 = vpack.c.bf16 %v11941_v47, %v11935_v63  ;;  %v6173_v46 = vpack.c.bf16 %v11939_v9, %v11932_v30 }
 0x41e   :  { %v5837_v37 = vpop.f32.mrf.mxu0  ;;  %v7217_v3 = vunpack.c.l.bf16 %v6973_v60 }
 0x41f   :  { %v6989_v32 = vrot.slane %v6988_v43, 4  ;;  %v6982_v16 = vrot.slane %v6981_v40, 1  ;;  %v6309_v63 = vadd.bf16 %v11246_v4, %v6173_v46 }
 0x420   :  { %v9022_v19 = vpop.f32.mrf.mxu0  ;;  %v7346_v14 = vsel %vm7308_vm7, %v7217_v3, %v7345_v49 }
 0x421   :  { %v6990_v61 = vmax.f32 %v6988_v43, %v6989_v32  ;;  %v6983_v57 = vmax.f32 %v6981_v40, %v6982_v16  ;;  %v6175_v44 = vpack.c.bf16 %v9022_v19, %v11943_v23  ;;  %v6308_v43 = vadd.bf16 %v11246_v4, %v6172_v55 }
 0x422   :  { %v5840_v22 = vpop.f32.mrf.mxu0  ;;  %v6437_v28 = vmax.bf16 %v12259_v6, %v6309_v63 }
 0x423   :  { %v6991_v29 = vrot.slane %v6990_v61, 2  ;;  %v6984_v20 = vpack.i.bf16 %v6983_v57, %v6983_v57  ;;  %v6174_v1 = vpack.c.bf16 %v5840_v22, %v5837_v37  ;;  %v6311_v47 = vadd.bf16 %v11246_v4, %v6175_v44 }
 0x424   :  { %v9025_v5 = vpop.f32.mrf.mxu0  ;;  %v6436_v23 = vmax.bf16 %v12259_v6, %v6308_v43 }
 0x425   :  { %v6992_v31 = vmax.f32 %v6990_v61, %v6991_v29  ;;  %v7218_v59 = vunpack.c.l.bf16 %v6984_v20  ;;  %v6310_v7 = vadd.bf16 %v11246_v4, %v6174_v1  ;;  %v6439_v61 = vmax.bf16 %v12259_v6, %v6311_v47 }
 0x426   :  { %v5853_v35 = vpop.f32.mrf.mxu0  ;;  %v6996_v29 = vmax.bf16 %v6437_v28, %v6436_v23 }
 0x427   :  { %v6993_v36 = vrot.slane %v6992_v31, 1  ;;  %v7347_v51 = vsel %vm7310_vm8, %v7218_v59, %v7346_v14  ;;  %v6438_v32 = vmax.bf16 %v12259_v6, %v6310_v7 }
 0x428   :  { %v9026_v18 = vpop.f32.mrf.mxu0  ;;  %v6997_v17 = vunpack.i.l.bf16 %v6996_v29  ;;  %v6998_v38 = vunpack.i.h.bf16 %v6996_v29 }
 0x429   :  { %v6994_v56 = vmax.f32 %v6992_v31, %v6993_v36  ;;  %v6177_v11 = vpack.c.bf16 %v9026_v18, %v9025_v5  ;;  %v7007_v33 = vmax.bf16 %v6439_v61, %v6438_v32 }
 0x42a   :  { %v5856_v26 = vpop.f32.mrf.mxu0  ;;  %v6999_v55 = vmax.f32 %v6997_v17, %v6998_v38 }
 0x42b   :  { %v6995_v34 = vpack.i.bf16 %v6994_v56, %v6994_v56  ;;  %v6176_v50 = vpack.c.bf16 %v5856_v26, %v5853_v35  ;;  %v6313_v30 = vadd.bf16 %v11246_v4, %v6177_v11  ;;  %v7008_v36 = vunpack.i.l.bf16 %v7007_v33 }
 0x42c   :  { %v9029_v21 = vpop.f32.mrf.mxu0  ;;  %v7009_v58 = vunpack.i.h.bf16 %v7007_v33 }
 0x42d   :  { %v7219_v45 = vunpack.c.l.bf16 %v6995_v34  ;;  %v6312_v42 = vadd.bf16 %v11246_v4, %v6176_v50  ;;  %v6441_v57 = vmax.bf16 %v12259_v6, %v6313_v30 }
 0x42e   :  { %v5869_v8 = vpop.f32.mrf.mxu0 }
 0x42f   :  { %v7348_v41 = vsel %vm7312_vm9, %v7219_v45, %v7347_v51  ;;  %v6440_v19 = vmax.bf16 %v12259_v6, %v6312_v42  ;;  %v7010_v51 = vmax.f32 %v7008_v36, %v7009_v58 }
 0x430   :  { %7376 = vst [vmem:[#allocation2 + $0x28] sm:$0xff] %v7348_v41  ;;  %v9030_v52 = vpop.f32.mrf.mxu0 }
 0x431   :  { %v6179_v40 = vpack.c.bf16 %v9030_v52, %v9029_v21  ;;  %v7018_v27 = vmax.bf16 %v6441_v57, %v6440_v19 }
 0x432   :  { %v5872_v24 = vpop.f32.mrf.mxu0 }
 0x433   :  { %v6178_v48 = vpack.c.bf16 %v5872_v24, %v5869_v8  ;;  %v6315_v12 = vadd.bf16 %v11246_v4, %v6179_v40  ;;  %v7019_v3 = vunpack.i.l.bf16 %v7018_v27  ;;  %v7020_v56 = vunpack.i.h.bf16 %v7018_v27 }
 0x434   :  { %v9033_v25 = vpop.f32.mrf.mxu0  ;;  %v7000_v40 = vrot.slane %v6999_v55, 4 }
 0x435   :  { %v6314_v37 = vadd.bf16 %v11246_v4, %v6178_v48  ;;  %v6443_v5 = vmax.bf16 %v12259_v6, %v6315_v12  ;;  %v7021_v41 = vmax.f32 %v7019_v3, %v7020_v56  ;;  %v7011_v48 = vrot.slane %v7010_v51, 4 }
 0x436   :  { %v5885_v13 = vpop.f32.mrf.mxu0 }
 0x437   :  { %v6442_v15 = vmax.bf16 %v12259_v6, %v6314_v37  ;;  %v7022_v43 = vrot.slane %v7021_v41, 4  ;;  %v7012_v23 = vmax.f32 %v7010_v51, %v7011_v48 }
 0x438   :  { %v9034_v9 = vpop.f32.mrf.mxu0 }
 0x439   :  { %v6181_v16 = vpack.c.bf16 %v9034_v9, %v9033_v25  ;;  %v7029_v54 = vmax.bf16 %v6443_v5, %v6442_v15  ;;  %v7023_v12 = vmax.f32 %v7021_v41, %v7022_v43 }
 0x43a   :  { %v5888_v10 = vpop.f32.mrf.mxu0 }
 0x43b   :  { %v6317_v22 = vadd.bf16 %v11246_v4, %v6181_v16  ;;  %v6180_v53 = vpack.c.bf16 %v5888_v10, %v5885_v13  ;;  %v7030_v26 = vunpack.i.l.bf16 %v7029_v54  ;;  %v7031_v62 = vunpack.i.h.bf16 %v7029_v54 }
 0x43c   :  { %v9037_v2 = vpop.f32.mrf.mxu0  ;;  %v7001_v10 = vmax.f32 %v6999_v55, %v7000_v40  ;;  %v7024_v5 = vrot.slane %v7023_v12, 2 }
 0x43d   :  { %v6316_v60 = vadd.bf16 %v11246_v4, %v6180_v53  ;;  %v6445_v20 = vmax.bf16 %v12259_v6, %v6317_v22  ;;  %v7032_v1 = vmax.f32 %v7030_v26, %v7031_v62 }
 0x43e   :  { %v5901_v31 = vpop.f32.mrf.mxu0  ;;  %v7025_v56 = vmax.f32 %v7023_v12, %v7024_v5 }
 0x43f   :  { %v6444_v35 = vmax.bf16 %v12259_v6, %v6316_v60  ;;  %v7033_v42 = vrot.slane %v7032_v1, 4 }
 0x440   :  { %v9038_v39 = vpop.f32.mrf.mxu0 }
 0x441   :  { %v6183_v18 = vpack.c.bf16 %v9038_v39, %v9037_v2  ;;  %v7040_v0 = vmax.bf16 %v6445_v20, %v6444_v35  ;;  %v7034_v28 = vmax.f32 %v7032_v1, %v7033_v42  ;;  %v7013_v2 = vrot.slane %v7012_v23, 2 }
 0x442   :  { %v5904_v59 = vpop.f32.mrf.mxu0 }
 0x443   :  { %v6319_v34 = vadd.bf16 %v11246_v4, %v6183_v18  ;;  %v6182_v49 = vpack.c.bf16 %v5904_v59, %v5901_v31  ;;  %v7041_v21 = vunpack.i.l.bf16 %v7040_v0  ;;  %v7042_v14 = vunpack.i.h.bf16 %v7040_v0 }
 0x444   :  { %v9041_v45 = vpop.f32.mrf.mxu0  ;;  %v7002_v31 = vrot.slane %v7001_v10, 2  ;;  %v7035_v54 = vrot.slane %v7034_v28, 2  ;;  %v7014_v18 = vmax.f32 %v7012_v23, %v7013_v2 }
 0x445   :  { %v6318_v8 = vadd.bf16 %v11246_v4, %v6182_v49  ;;  %v6447_v50 = vmax.bf16 %v12259_v6, %v6319_v34  ;;  %v7043_v46 = vmax.f32 %v7041_v21, %v7042_v14 }
 0x446   :  { %v5917_v52 = vpop.f32.mrf.mxu0  ;;  %v7003_v26 = vmax.f32 %v7001_v10, %v7002_v31  ;;  %v7036_v62 = vmax.f32 %v7034_v28, %v7035_v54  ;;  %v7015_v51 = vrot.slane %v7014_v18, 1 }
 0x447   :  { %v6446_v24 = vmax.bf16 %v12259_v6, %v6318_v8  ;;  %v7044_v47 = vrot.slane %v7043_v46, 4 }
 0x448   :  { %v9042_v44 = vpop.f32.mrf.mxu0  ;;  %v7016_v43 = vmax.f32 %v7014_v18, %v7015_v51 }
 0x449   :  { %v7051_v11 = vmax.bf16 %v6447_v50, %v6446_v24  ;;  %v6185_v25 = vpack.c.bf16 %v9042_v44, %v9041_v45  ;;  %v7045_v15 = vmax.f32 %v7043_v46, %v7044_v47  ;;  %v7004_v50 = vrot.slane %v7003_v26, 1 }
 0x44a   :  { %v5920_v7 = vpop.f32.mrf.mxu0  ;;  %v7037_v24 = vrot.slane %v7036_v62, 1  ;;  %v7017_v12 = vpack.i.bf16 %v7016_v43, %v7016_v43 }
 0x44b   :  { %v7052_v13 = vunpack.i.l.bf16 %v7051_v11  ;;  %v7053_v63 = vunpack.i.h.bf16 %v7051_v11  ;;  %v6321_v37 = vadd.bf16 %v11246_v4, %v6185_v25  ;;  %v6184_v30 = vpack.c.bf16 %v5920_v7, %v5917_v52 }
 0x44c   :  { %v9045_v9 = vpop.f32.mrf.mxu0  ;;  %v7046_v39 = vrot.slane %v7045_v15, 2  ;;  %v7026_v52 = vrot.slane %v7025_v56, 1  ;;  %v7005_v47 = vmax.f32 %v7003_v26, %v7004_v50 }
 0x44d   :  { %v7054_v32 = vmax.f32 %v7052_v13, %v7053_v63  ;;  %v6320_v16 = vadd.bf16 %v11246_v4, %v6184_v30  ;;  %v6449_v57 = vmax.bf16 %v12259_v6, %v6321_v37  ;;  %v7038_v37 = vmax.f32 %v7036_v62, %v7037_v24 }
 0x44e   :  { %v5933_v19 = vpop.f32.mrf.mxu0  ;;  %v7047_v21 = vmax.f32 %v7045_v15, %v7046_v39  ;;  %v7027_v42 = vmax.f32 %v7025_v56, %v7026_v52  ;;  %v7006_v15 = vpack.i.bf16 %v7005_v47, %v7005_v47 }
 0x44f   :  { %v7055_v61 = vrot.slane %v7054_v32, 4  ;;  %v6448_v22 = vmax.bf16 %v12259_v6, %v6320_v16 }
 0x450   :  { %v9046_v53 = vpop.f32.mrf.mxu0  ;;  %v7048_v48 = vrot.slane %v7047_v21, 1  ;;  %v7028_v10 = vpack.i.bf16 %v7027_v42, %v7027_v42  ;;  %v7220_v54 = vunpack.c.l.bf16 %v7006_v15 }
 0x451   :  { %v7056_v29 = vmax.f32 %v7054_v32, %v7055_v61  ;;  %v6187_v33 = vpack.c.bf16 %v9046_v53, %v9045_v9  ;;  %v7062_v27 = vmax.bf16 %v6449_v57, %v6448_v22  ;;  %v7039_v57 = vpack.i.bf16 %v7038_v37, %v7038_v37 }
 0x452   :  { %v5936_v60 = vpop.f32.mrf.mxu0  ;;  %v7049_v9 = vmax.f32 %v7047_v21, %v7048_v48 }
 0x453   :  { %v6323_v20 = vadd.bf16 %v11246_v4, %v6187_v33  ;;  %v6186_v35 = vpack.c.bf16 %v5936_v60, %v5933_v19  ;;  %v7063_v17 = vunpack.i.l.bf16 %v7062_v27  ;;  %v7064_v36 = vunpack.i.h.bf16 %v7062_v27 }
 0x454   :  { %v11986_v58 = vpop.f32.mrf.mxu0  ;;  %v7057_v38 = vrot.slane %v7056_v29, 2  ;;  %v7050_v53 = vpack.i.bf16 %v7049_v9, %v7049_v9  ;;  %v7222_v27 = vunpack.c.l.bf16 %v7028_v10 }
 0x455   :  { %v6322_v3 = vadd.bf16 %v11246_v4, %v6186_v35  ;;  %v7065_v0 = vmax.f32 %v7063_v17, %v7064_v36  ;;  %v6451_v34 = vmax.bf16 %v12259_v6, %v6323_v20  ;;  %v7223_v20 = vunpack.c.l.bf16 %v7039_v57 }
 0x456   :  { %v11989_v59 = vpop.f32.mrf.mxu0  ;;  %v7058_v8 = vmax.f32 %v7056_v29, %v7057_v38  ;;  %v7221_v29 = vunpack.c.l.bf16 %v7017_v12  ;;  %v7224_v39 = vunpack.c.l.bf16 %v7050_v53 }
 0x457   :  { %v6450_v49 = vmax.bf16 %v12259_v6, %v6322_v3  ;;  %v7066_v14 = vrot.slane %v7065_v0, 4 }
 0x458   :  { %v11993_v45 = vpop.f32.mrf.mxu0  ;;  %v7059_v7 = vrot.slane %v7058_v8, 1  ;;  %v7349_v36 = vsel %vm7300_vm3, %v7221_v29, %v7220_v54 }
 0x459   :  { %v7073_v41 = vmax.bf16 %v6451_v34, %v6450_v49  ;;  %v7067_v55 = vmax.f32 %v7065_v0, %v7066_v14  ;;  %v7350_v3 = vsel %vm7302_vm4, %v7222_v27, %v7349_v36 }
 0x45a   :  { %v11995_v1 = vpop.f32.mrf.mxu0  ;;  %v7060_v16 = vmax.f32 %v7058_v8, %v7059_v7  ;;  %v7351_v26 = vsel %vm7304_vm5, %v7223_v20, %v7350_v3 }
 0x45b   :  { %v7074_v46 = vunpack.i.l.bf16 %v7073_v41  ;;  %v7075_v44 = vunpack.i.h.bf16 %v7073_v41  ;;  %v7068_v11 = vrot.slane %v7067_v55, 2  ;;  %v7352_v34 = vsel %vm7306_vm6, %v7224_v39, %v7351_v26 }
 0x45c   :  { %v11997_v25 = vpop.f32.mrf.mxu0  ;;  %v7061_v33 = vpack.i.bf16 %v7060_v16, %v7060_v16 }
 0x45d   :  { %v7076_v40 = vmax.f32 %v7074_v46, %v7075_v44  ;;  %v7069_v13 = vmax.f32 %v7067_v55, %v7068_v11  ;;  %v6188_v55 = vpack.c.bf16 %v11995_v1, %v11989_v59  ;;  %v6189_v44 = vpack.c.bf16 %v11993_v45, %v11986_v58 }
 0x45e   :  { %v5965_v63 = vpop.f32.mrf.mxu0  ;;  %v7225_v18 = vunpack.c.l.bf16 %v7061_v33 }
 0x45f   :  { %v7077_v30 = vrot.slane %v7076_v40, 4  ;;  %v7070_v23 = vrot.slane %v7069_v13, 1  ;;  %v6325_v59 = vadd.bf16 %v11246_v4, %v6189_v44 }
 0x460   :  { %v9054_v32 = vpop.f32.mrf.mxu0  ;;  %v7353_v21 = vsel %vm7308_vm7, %v7225_v18, %v7352_v34 }
 0x461   :  { %v7078_v19 = vmax.f32 %v7076_v40, %v7077_v30  ;;  %v7071_v28 = vmax.f32 %v7069_v13, %v7070_v23  ;;  %v6191_v48 = vpack.c.bf16 %v9054_v32, %v11997_v25  ;;  %v6324_v40 = vadd.bf16 %v11246_v4, %v6188_v55 }
 0x462   :  { %v5968_v61 = vpop.f32.mrf.mxu0  ;;  %v6453_v16 = vmax.bf16 %v12259_v6, %v6325_v59 }
 0x463   :  { %v7079_v22 = vrot.slane %v7078_v19, 2  ;;  %v7072_v60 = vpack.i.bf16 %v7071_v28, %v7071_v28  ;;  %v6190_v50 = vpack.c.bf16 %v5968_v61, %v5965_v63  ;;  %v6327_v1 = vadd.bf16 %v11246_v4, %v6191_v48 }
 0x464   :  { %v9057_v2 = vpop.f32.mrf.mxu0  ;;  %v6452_v25 = vmax.bf16 %v12259_v6, %v6324_v40 }
 0x465   :  { %v7080_v5 = vmax.f32 %v7078_v19, %v7079_v22  ;;  %v7226_v56 = vunpack.c.l.bf16 %v7072_v60  ;;  %v6326_v42 = vadd.bf16 %v11246_v4, %v6190_v50  ;;  %v6455_v19 = vmax.bf16 %v12259_v6, %v6327_v1 }
 0x466   :  { %v5981_v31 = vpop.f32.mrf.mxu0  ;;  %v7084_v22 = vmax.bf16 %v6453_v16, %v6452_v25 }
 0x467   :  { %v7081_v35 = vrot.slane %v7080_v5, 1  ;;  %v7354_v51 = vsel %vm7310_vm8, %v7226_v56, %v7353_v21  ;;  %v6454_v30 = vmax.bf16 %v12259_v6, %v6326_v42 }
 0x468   :  { %v9058_v17 = vpop.f32.mrf.mxu0  ;;  %v7085_v20 = vunpack.i.l.bf16 %v7084_v22  ;;  %v7086_v36 = vunpack.i.h.bf16 %v7084_v22 }
 0x469   :  { %v7082_v38 = vmax.f32 %v7080_v5, %v7081_v35  ;;  %v6193_v43 = vpack.c.bf16 %v9058_v17, %v9057_v2  ;;  %v7095_v53 = vmax.bf16 %v6455_v19, %v6454_v30 }
 0x46a   :  { %v5984_v0 = vpop.f32.mrf.mxu0  ;;  %v7087_v55 = vmax.f32 %v7085_v20, %v7086_v36 }
 0x46b   :  { %v7083_v62 = vpack.i.bf16 %v7082_v38, %v7082_v38  ;;  %v6192_v24 = vpack.c.bf16 %v5984_v0, %v5981_v31  ;;  %v6329_v58 = vadd.bf16 %v11246_v4, %v6193_v43  ;;  %v7096_v35 = vunpack.i.l.bf16 %v7095_v53 }
 0x46c   :  { %v9061_v49 = vpop.f32.mrf.mxu0  ;;  %v7097_v39 = vunpack.i.h.bf16 %v7095_v53 }
 0x46d   :  { %v7227_v14 = vunpack.c.l.bf16 %v7083_v62  ;;  %v6328_v47 = vadd.bf16 %v11246_v4, %v6192_v24  ;;  %v6457_v28 = vmax.bf16 %v12259_v6, %v6329_v58 }
 0x46e   :  { %v5997_v8 = vpop.f32.mrf.mxu0 }
 0x46f   :  { %v7355_v41 = vsel %vm7312_vm9, %v7227_v14, %v7354_v51  ;;  %v6456_v32 = vmax.bf16 %v12259_v6, %v6328_v47  ;;  %v7098_v51 = vmax.f32 %v7096_v35, %v7097_v39 }
 0x470   :  { %7377 = vst [vmem:[#allocation2 + $0x30] sm:$0xff] %v7355_v41  ;;  %v9062_v52 = vpop.f32.mrf.mxu0 }
 0x471   :  { %v6195_v13 = vpack.c.bf16 %v9062_v52, %v9061_v49  ;;  %v7106_v29 = vmax.bf16 %v6457_v28, %v6456_v32 }
 0x472   :  { %v6000_v46 = vpop.f32.mrf.mxu0 }
 0x473   :  { %v6194_v11 = vpack.c.bf16 %v6000_v46, %v5997_v8  ;;  %v6331_v9 = vadd.bf16 %v11246_v4, %v6195_v13  ;;  %v7107_v18 = vunpack.i.l.bf16 %v7106_v29  ;;  %v7108_v38 = vunpack.i.h.bf16 %v7106_v29 }
 0x474   :  { %v9065_v7 = vpop.f32.mrf.mxu0  ;;  %v7088_v13 = vrot.slane %v7087_v55, 4 }
 0x475   :  { %v6330_v63 = vadd.bf16 %v11246_v4, %v6194_v11  ;;  %v6459_v2 = vmax.bf16 %v12259_v6, %v6331_v9  ;;  %v7109_v41 = vmax.f32 %v7107_v18, %v7108_v38  ;;  %v7099_v11 = vrot.slane %v7098_v51, 4 }
 0x476   :  { %v6013_v37 = vpop.f32.mrf.mxu0 }
 0x477   :  { %v6458_v10 = vmax.bf16 %v12259_v6, %v6330_v63  ;;  %v7110_v40 = vrot.slane %v7109_v41, 4  ;;  %v7100_v25 = vmax.f32 %v7098_v51, %v7099_v11 }
 0x478   :  { %v9066_v45 = vpop.f32.mrf.mxu0 }
 0x479   :  { %v6197_v23 = vpack.c.bf16 %v9066_v45, %v9065_v7  ;;  %v7117_v27 = vmax.bf16 %v6459_v2, %v6458_v10  ;;  %v7111_v9 = vmax.f32 %v7109_v41, %v7110_v40 }
 0x47a   :  { %v6016_v12 = vpop.f32.mrf.mxu0 }
 0x47b   :  { %v6333_v61 = vadd.bf16 %v11246_v4, %v6197_v23  ;;  %v6196_v15 = vpack.c.bf16 %v6016_v12, %v6013_v37  ;;  %v7118_v0 = vunpack.i.l.bf16 %v7117_v27  ;;  %v7119_v26 = vunpack.i.h.bf16 %v7117_v27 }
 0x47c   :  { %v9069_v57 = vpop.f32.mrf.mxu0  ;;  %v7089_v12 = vmax.f32 %v7087_v55, %v7088_v13  ;;  %v7112_v2 = vrot.slane %v7111_v9, 2 }
 0x47d   :  { %v6332_v33 = vadd.bf16 %v11246_v4, %v6196_v15  ;;  %v6461_v60 = vmax.bf16 %v12259_v6, %v6333_v61  ;;  %v7120_v50 = vmax.f32 %v7118_v0, %v7119_v26 }
 0x47e   :  { %v6029_v5 = vpop.f32.mrf.mxu0  ;;  %v7113_v18 = vmax.f32 %v7111_v9, %v7112_v2 }
 0x47f   :  { %v6460_v31 = vmax.bf16 %v12259_v6, %v6332_v33  ;;  %v7121_v47 = vrot.slane %v7120_v50, 4 }
 0x480   :  { %v9070_v54 = vpop.f32.mrf.mxu0  ;;  %v7114_v51 = vrot.slane %v7113_v18, 1 }
 0x481   :  { %v6199_v17 = vpack.c.bf16 %v9070_v54, %v9069_v57  ;;  %v7128_v3 = vmax.bf16 %v6461_v60, %v6460_v31  ;;  %v7122_v16 = vmax.f32 %v7120_v50, %v7121_v47  ;;  %v7101_v57 = vrot.slane %v7100_v25, 2 }
 0x482   :  { %v6032_v56 = vpop.f32.mrf.mxu0  ;;  %v7115_v11 = vmax.f32 %v7113_v18, %v7114_v51 }
 0x483   :  { %v6335_v62 = vadd.bf16 %v11246_v4, %v6199_v17  ;;  %v6198_v34 = vpack.c.bf16 %v6032_v56, %v6029_v5  ;;  %v7129_v49 = vunpack.i.l.bf16 %v7128_v3  ;;  %v7130_v21 = vunpack.i.h.bf16 %v7128_v3 }
 0x484   :  { %v9073_v14 = vpop.f32.mrf.mxu0  ;;  %v7090_v5 = vrot.slane %v7089_v12, 2  ;;  %v7123_v27 = vrot.slane %v7122_v16, 2  ;;  %v7102_v39 = vmax.f32 %v7100_v25, %v7101_v57 }
 0x485   :  { %v6334_v8 = vadd.bf16 %v11246_v4, %v6198_v34  ;;  %v6463_v24 = vmax.bf16 %v12259_v6, %v6335_v62  ;;  %v7131_v44 = vmax.f32 %v7129_v49, %v7130_v21 }
 0x486   :  { %v6045_v52 = vpop.f32.mrf.mxu0  ;;  %v7091_v3 = vmax.f32 %v7089_v12, %v7090_v5  ;;  %v7124_v56 = vmax.f32 %v7122_v16, %v7123_v27  ;;  %v7103_v49 = vrot.slane %v7102_v39, 1 }
 0x487   :  { %v6462_v46 = vmax.bf16 %v12259_v6, %v6334_v8  ;;  %v7132_v1 = vrot.slane %v7131_v44, 4 }
 0x488   :  { %v9074_v48 = vpop.f32.mrf.mxu0  ;;  %v7092_v41 = vrot.slane %v7091_v3, 1 }
 0x489   :  { %v7139_v43 = vmax.bf16 %v6463_v24, %v6462_v46  ;;  %v6201_v7 = vpack.c.bf16 %v9074_v48, %v9073_v14  ;;  %v7133_v10 = vmax.f32 %v7131_v44, %v7132_v1  ;;  %v7104_v46 = vmax.f32 %v7102_v39, %v7103_v49 }
 0x48a   :  { %v6048_v42 = vpop.f32.mrf.mxu0  ;;  %v7116_v1 = vpack.i.bf16 %v7115_v11, %v7115_v11 }
 0x48b   :  { %v7140_v37 = vunpack.i.l.bf16 %v7139_v43  ;;  %v7141_v59 = vunpack.i.h.bf16 %v7139_v43  ;;  %v6337_v63 = vadd.bf16 %v11246_v4, %v6201_v7  ;;  %v6200_v58 = vpack.c.bf16 %v6048_v42, %v6045_v52 }
 0x48c   :  { %v9077_v45 = vpop.f32.mrf.mxu0  ;;  %v7134_v54 = vrot.slane %v7133_v10, 2  ;;  %v7125_v52 = vrot.slane %v7124_v56, 1  ;;  %v7093_v7 = vmax.f32 %v7091_v3, %v7092_v41  ;;  %v7105_v47 = vpack.i.bf16 %v7104_v46, %v7104_v46 }
 0x48d   :  { %v7142_v30 = vmax.f32 %v7140_v37, %v7141_v59  ;;  %v6336_v23 = vadd.bf16 %v11246_v4, %v6200_v58  ;;  %v6465_v28 = vmax.bf16 %v12259_v6, %v6337_v63  ;;  %v7230_v12 = vunpack.c.l.bf16 %v7116_v1 }
 0x48e   :  { %v6061_v32 = vpop.f32.mrf.mxu0  ;;  %v7135_v62 = vmax.f32 %v7133_v10, %v7134_v54  ;;  %v7094_v58 = vpack.i.bf16 %v7093_v7, %v7093_v7  ;;  %v7229_v9 = vunpack.c.l.bf16 %v7105_v47 }
 0x48f   :  { %v7143_v19 = vrot.slane %v7142_v30, 4  ;;  %v6464_v61 = vmax.bf16 %v12259_v6, %v6336_v23 }
 0x490   :  { %v9078_v15 = vpop.f32.mrf.mxu0 }
 0x491   :  { %v7144_v22 = vmax.f32 %v7142_v30, %v7143_v19  ;;  %v6203_v53 = vpack.c.bf16 %v9078_v15, %v9077_v45  ;;  %v7150_v29 = vmax.bf16 %v6465_v28, %v6464_v61  ;;  %v7228_v19 = vunpack.c.l.bf16 %v7094_v58 }
 0x492   :  { %v6064_v33 = vpop.f32.mrf.mxu0 }
 0x493   :  { %v6339_v60 = vadd.bf16 %v11246_v4, %v6203_v53  ;;  %v6202_v31 = vpack.c.bf16 %v6064_v33, %v6061_v32  ;;  %v7151_v20 = vunpack.i.l.bf16 %v7150_v29  ;;  %v7152_v35 = vunpack.i.h.bf16 %v7150_v29 }
 0x494   :  { %v7145_v17 = vrot.slane %v7144_v22, 2  ;;  %v7356_v15 = vsel %vm7300_vm3, %v7229_v9, %v7228_v19 }
 0x495   :  { %v6338_v36 = vadd.bf16 %v11246_v4, %v6202_v31  ;;  %v7153_v38 = vmax.f32 %v7151_v20, %v7152_v35  ;;  %v6467_v0 = vmax.bf16 %v12259_v6, %v6339_v60  ;;  %v7136_v4 = vrot.slane %v7135_v62, 1 }
 0x496   :  { %v7146_v21 = vmax.f32 %v7144_v22, %v7145_v17  ;;  %v7357_v53 = vsel %vm7302_vm4, %v7230_v12, %v7356_v15 }
 0x497   :  { %v6466_v26 = vmax.bf16 %v12259_v6, %v6338_v36  ;;  %v7154_v34 = vrot.slane %v7153_v38, 4  ;;  %v7126_v6 = vmax.f32 %v7124_v56, %v7125_v52  ;;  %v7137_v42 = vmax.f32 %v7135_v62, %v7136_v4 }
 0x498   :  { %v7147_v44 = vrot.slane %v7146_v21, 1 }
 0x499   :  { %v7161_v14 = vmax.bf16 %v6467_v0, %v6466_v26  ;;  %v7155_v8 = vmax.f32 %v7153_v38, %v7154_v34  ;;  %v7127_v45 = vpack.i.bf16 %v7126_v6, %v7126_v6  ;;  %v7138_v30 = vpack.i.bf16 %v7137_v42, %v7137_v42 }
 0x49a   :  { %v7148_v37 = vmax.f32 %v7146_v21, %v7147_v44 }
 0x49b   :  { %v7162_v55 = vunpack.i.l.bf16 %v7161_v14  ;;  %v7163_v50 = vunpack.i.h.bf16 %v7161_v14  ;;  %v7156_v24 = vrot.slane %v7155_v8, 2  ;;  %v7231_v10 = vunpack.c.l.bf16 %v7127_v45 }
 0x49c   :  { %v7149_v23 = vpack.i.bf16 %v7148_v37, %v7148_v37  ;;  %v7232_v61 = vunpack.c.l.bf16 %v7138_v30 }
 0x49d   :  { %v7164_v48 = vmax.f32 %v7162_v55, %v7163_v50  ;;  %v7157_v43 = vmax.f32 %v7155_v8, %v7156_v24  ;;  %v7358_v29 = vsel %vm7304_vm5, %v7231_v10, %v7357_v53 }
 0x49e   :  { %v7233_v57 = vunpack.c.l.bf16 %v7149_v23  ;;  %v7359_v5 = vsel %vm7306_vm6, %v7232_v61, %v7358_v29 }
 0x49f   :  { %v7165_v40 = vrot.slane %v7164_v48, 4  ;;  %v7158_v13 = vrot.slane %v7157_v43, 1 }
 0x4a0   :  { %v7360_v27 = vsel %vm7308_vm7, %v7233_v57, %v7359_v5 }
 0x4a1   :  { %v7166_v59 = vmax.f32 %v7164_v48, %v7165_v40  ;;  %v7159_v63 = vmax.f32 %v7157_v43, %v7158_v13 }
 0x4a3   :  { %v7167_v25 = vrot.slane %v7166_v59, 2  ;;  %v7160_v16 = vpack.i.bf16 %v7159_v63, %v7159_v63 }
 0x4a5   :  { %v7168_v32 = vmax.f32 %v7166_v59, %v7167_v25  ;;  %v7234_v2 = vunpack.c.l.bf16 %v7160_v16 }
 0x4a7   :  { %v7169_v28 = vrot.slane %v7168_v32, 1  ;;  %v7361_v31 = vsel %vm7310_vm8, %v7234_v2, %v7360_v27 }
 0x4a9   :  { %v7170_v22 = vmax.f32 %v7168_v32, %v7169_v28 }
 0x4ab   :  { %v7171_v33 = vpack.i.bf16 %v7170_v22, %v7170_v22 }
 0x4ad   :  { %v7235_v60 = vunpack.c.l.bf16 %v7171_v33 }
 0x4af   :  { %v7362_v54 = vsel %vm7312_vm9, %v7235_v60, %v7361_v31 }
 0x4b0   :  { %7378 = vst [vmem:[#allocation2 + $0x38] sm:$0xff] %v7362_v54 }
 0x4b1   :  { %9231 = shalt.err (!%p9228_p4)
}
 0x4b2   :  { %s9244_s21 = smov 128   ;;  %s9245_s22 = smov 8  }
 0x4b3   :  { %7390 = dma.vmem_to_hbm [thread:$0]  %s7385_s19, 1024, %s12060_s7, [#allocation3], %s9244_s21, %s9244_s21, %s9245_s22  }
 0x4b4   :  { %9240 = dma.done.wait [#allocation3], 1024  }
 0x4b5   :  { %9241 = vsyncadd [#allocation3], 4294966272 }
 0x4b6   :  { %7394 = vsyncpa [#allocation3], 1 }

</bundles_post_ra>
